<compile_context>
chip_gen: v7x
topology: tpu7x:2x2x1
jax: 0.10.0
libtpu: 0.0.40
codegen_flags: <defaults>
</compile_context>

<pallas_src>
import functools
import math

import jax
import jax.numpy as jnp
from jax.experimental import pallas as pl
from jax.experimental.pallas import tpu as pltpu


ROW_TILE = 8192  # rows of x0 processed per grid step (multiple of pack * 8)


def _round_up(x, m):
    return ((x + m - 1) // m) * m


def _mlp_kernel(x_ref, w1_ref, b1_ref, w2_ref, b2_ref, w3_ref, b3_ref, o_ref,
                *, dim, pack):
    # Fused concat, top half: x0 passthrough as a full-width (lane-dense) copy.
    o_ref[0, ...] = x_ref[...].astype(o_ref.dtype)

    w1 = w1_ref[...]
    b1 = b1_ref[...]
    w2 = w2_ref[...]
    b2 = b2_ref[...]
    w3 = w3_ref[...]
    b3 = b3_ref[...]

    # Bottom half: the 3-layer MLP, one `dim`-wide lane group at a time.
    # Lane group s holds the tile's rows congruent to s (mod pack); its result
    # goes back to the same lanes, so the HBM writeback of the whole (R, 128)
    # block stays dense even though these per-group VMEM stores are masked.
    for s in range(pack):                          # static unroll
        x_s = x_ref[:, s * dim:(s + 1) * dim]      # (R, dim) rows of x0

        h = jnp.dot(x_s, w1, preferred_element_type=jnp.float32) + b1
        h = jnp.clip(h, -5.0, 5.0)                 # Hardtanh(-5, 5)
        h = jnp.dot(h, w2, preferred_element_type=jnp.float32) + b2
        h = jnp.clip(h, -5.0, 5.0)                 # Hardtanh(-5, 5)
        out_s = jnp.dot(h, w3, preferred_element_type=jnp.float32) + b3

        o_ref[1, :, s * dim:(s + 1) * dim] = out_s.astype(o_ref.dtype)


def _pad_hidden(params, lane=128):
    """Zero-pad the hidden width to a multiple of 128 lanes.  Exactly preserves
    numerics: padded weight rows/cols and biases are zero, and clip(0) == 0."""
    w1, b1, w2, b2, w3, b3 = params
    h = w1.shape[1]
    hp = _round_up(h, lane)
    if hp == h:
        return params
    p = hp - h
    w1 = jnp.pad(w1, ((0, 0), (0, p)))
    b1 = jnp.pad(b1, ((0, 0), (0, p)))
    w2 = jnp.pad(w2, ((0, p), (0, p)))
    b2 = jnp.pad(b2, ((0, 0), (0, p)))
    w3 = jnp.pad(w3, ((0, p), (0, 0)))
    return (w1, b1, w2, b2, w3, b3)


def initial_velocity_forward(x0, params):
    """x0: (N, dim) float32.  Returns (2N, dim) == concat((x0, mlp(x0)), axis=0)."""
    n, dim = x0.shape
    w1, b1, w2, b2, w3, b3 = _pad_hidden(params)
    nh = w1.shape[1]  # padded hidden width (multiple of 128)

    # Lane packing: `pack` original rows per 128-lane row.  pack == 1 falls
    # back to the plain (tm, dim) layout for dims that do not divide 128.
    pack = 128 // dim if (dim < 128 and 128 % dim == 0) else 1
    unit = pack * 8  # keeps the packed row count sublane-aligned (multiple of 8)

    if n > ROW_TILE:
        tm = ROW_TILE
        n_pad = _round_up(n, tm)
    else:
        n_pad = _round_up(n, unit)
        tm = n_pad  # single grid step

    x_in = x0 if n_pad == n else jnp.pad(x0, ((0, n_pad - n), (0, 0)))
    if pack > 1:
        # Free reshape: (n_pad, dim) row-major == (n_pad/pack, pack*dim).
        x_in = x_in.reshape(n_pad // pack, pack * dim)

    grid = (n_pad // tm,)
    r_tile = tm // pack
    lane_w = pack * dim

    itemsize = jnp.dtype(x0.dtype).itemsize
    flops = 2 * n_pad * (dim * nh + nh * nh + nh * dim)
    bytes_accessed = (
        3 * n_pad * dim * itemsize                           # read x0, write (2,N,dim)
        + (dim * nh + nh * nh + nh * dim + 2 * nh + dim) * 4  # weights + biases
    )

    kernel = functools.partial(_mlp_kernel, dim=dim, pack=pack)
    slab = pl.pallas_call(
        kernel,
        out_shape=jax.ShapeDtypeStruct((2, n_pad // pack, lane_w), x0.dtype),
        grid=grid,
        in_specs=[
            # Lane-dense, row-tiled x0.
            pl.BlockSpec((r_tile, lane_w), lambda i: (i, 0)),
            # Weights / biases: constant block index -> VMEM-resident.
            pl.BlockSpec((dim, nh), lambda i: (0, 0)),   # w1
            pl.BlockSpec((1, nh), lambda i: (0, 0)),     # b1
            pl.BlockSpec((nh, nh), lambda i: (0, 0)),    # w2
            pl.BlockSpec((1, nh), lambda i: (0, 0)),     # b2
            pl.BlockSpec((nh, dim), lambda i: (0, 0)),   # w3
            pl.BlockSpec((1, dim), lambda i: (0, 0)),    # b3
        ],
        out_specs=pl.BlockSpec((2, r_tile, lane_w), lambda i: (0, i, 0)),
        compiler_params=pltpu.CompilerParams(
            dimension_semantics=("parallel",),  # row tiles split across v7x's 2 TCs
        ),
        cost_estimate=pl.CostEstimate(
            flops=flops, transcendentals=0, bytes_accessed=bytes_accessed
        ),
    )(x_in, w1, b1, w2, b2, w3, b3)

    # (2, N_pad/pack, 128) row-major == (2, N_pad, dim): free reshape, then
    # drop padded rows and fold the leading 2 into the concat axis.
    res = slab.reshape(2, n_pad, dim)
    if n_pad != n:
        res = res[:, :n, :]
    return res.reshape(2 * n, dim)


def init_params(key, dim, nhidden, dtype=jnp.float32):
    """Deterministic init matching torch.nn.Linear's U(-1/sqrt(fan_in), 1/sqrt(fan_in)).
    Weights stored as (in_features, out_features) for y = x @ W + b."""
    ks = jax.random.split(key, 6)

    def linear(kw, kb, fan_in, fan_out):
        bound = 1.0 / math.sqrt(fan_in)
        w = jax.random.uniform(kw, (fan_in, fan_out), dtype, -bound, bound)
        b = jax.random.uniform(kb, (1, fan_out), dtype, -bound, bound)
        return w, b

    w1, b1 = linear(ks[0], ks[1], dim, nhidden)
    w2, b2 = linear(ks[2], ks[3], nhidden, nhidden)
    w3, b3 = linear(ks[4], ks[5], nhidden, dim)
    return (w1, b1, w2, b2, w3, b3)


if __name__ == "__main__":
    key = jax.random.PRNGKey(0)
    dim, nhidden, n = 4, 32, 8

    k_x, k_p = jax.random.split(key)
    x0 = jax.random.normal(k_x, (n, dim), jnp.float32)
    params = init_params(k_p, dim, nhidden)

    fwd = jax.jit(initial_velocity_forward)
    y = jax.block_until_ready(fwd(x0, params))
    assert y.shape == (2 * n, dim)

    # Reference check in plain JAX (unpadded params).
    w1, b1, w2, b2, w3, b3 = params
    h = jnp.clip(x0 @ w1 + b1, -5.0, 5.0)
    h = jnp.clip(h @ w2 + b2, -5.0, 5.0)
    ref = jnp.concatenate((x0, h @ w3 + b3), axis=0)
    assert jnp.allclose(y[:n], x0)
    assert jnp.allclose(y, ref, atol=1e-5, rtol=1e-5)

    # Larger, ragged N: exercises the fixed 8192-row tile, wrapper padding and
    # the multi-step ("parallel") grid path.
    n_big = 10000
    x_big = jax.random.normal(jax.random.PRNGKey(1), (n_big, dim), jnp.float32)
    y_big = jax.block_until_ready(fwd(x_big, params))
    h = jnp.clip(x_big @ w1 + b1, -5.0, 5.0)
    h = jnp.clip(h @ w2 + b2, -5.0, 5.0)
    ref_big = jnp.concatenate((x_big, h @ w3 + b3), axis=0)
    assert jnp.allclose(y_big, ref_big, atol=1e-4, rtol=1e-4)

    print("KERNEL_OK")
</pallas_src>

<mosaic_0001>
module attributes {stable_mosaic.version = 11 : i64} {
  func.func @_mlp_kernel(%arg0: i32, %arg1: memref<8x128xf32, #tpu.memory_space<vmem>>, %arg2: memref<4x128xf32, #tpu.memory_space<vmem>>, %arg3: memref<1x128xf32, #tpu.memory_space<vmem>>, %arg4: memref<128x128xf32, #tpu.memory_space<vmem>>, %arg5: memref<1x128xf32, #tpu.memory_space<vmem>>, %arg6: memref<128x4xf32, #tpu.memory_space<vmem>>, %arg7: memref<1x4xf32, #tpu.memory_space<vmem>>, %arg8: memref<2x8x128xf32, #tpu.memory_space<vmem>>) attributes {dimension_semantics = [#tpu.dimension_semantics<parallel>], iteration_bounds = array<i64: 1>, scalar_prefetch = 0 : i64, scratch_operands = 0 : i64, tpu.core_type = #tpu.core_type<tc>, window_params = [{transform_indices = @transform_0, window_bounds = array<i64: 8, 128>}, {pipeline_mode = #tpu.pipeline_mode<synchronous>, transform_indices = @transform_1, window_bounds = array<i64: 4, 128>}, {pipeline_mode = #tpu.pipeline_mode<synchronous>, transform_indices = @transform_2, window_bounds = array<i64: 1, 128>}, {pipeline_mode = #tpu.pipeline_mode<synchronous>, transform_indices = @transform_3, window_bounds = array<i64: 128, 128>}, {pipeline_mode = #tpu.pipeline_mode<synchronous>, transform_indices = @transform_4, window_bounds = array<i64: 1, 128>}, {pipeline_mode = #tpu.pipeline_mode<synchronous>, transform_indices = @transform_5, window_bounds = array<i64: 128, 4>}, {pipeline_mode = #tpu.pipeline_mode<synchronous>, transform_indices = @transform_6, window_bounds = array<i64: 1, 4>}, {transform_indices = @transform_7, window_bounds = array<i64: 2, 8, 128>}]} {
    %c0 = arith.constant 0 : index
    %c0_0 = arith.constant 0 : index
    %0 = vector.load %arg1[%c0, %c0_0] : memref<8x128xf32, #tpu.memory_space<vmem>>, vector<8x128xf32>
    %c0_1 = arith.constant 0 : index
    %c0_2 = arith.constant 0 : index
    %c0_3 = arith.constant 0 : index
    %1 = vector.load %arg8[%c0_1, %c0_2, %c0_3] : memref<2x8x128xf32, #tpu.memory_space<vmem>>, vector<1x8x128xf32>
    %2 = vector.shape_cast %1 : vector<1x8x128xf32> to vector<8x128xf32>
    %3 = vector.shape_cast %0 : vector<8x128xf32> to vector<1x8x128xf32>
    tpu.vector_store %arg8[%c0_1, %c0_2, %c0_3], %3 {strides = array<i32>} : memref<2x8x128xf32, #tpu.memory_space<vmem>>, vector<1x8x128xf32>,
    %c0_4 = arith.constant 0 : index
    %c0_5 = arith.constant 0 : index
    %4 = vector.load %arg2[%c0_4, %c0_5] : memref<4x128xf32, #tpu.memory_space<vmem>>, vector<4x128xf32>
    %c0_6 = arith.constant 0 : index
    %c0_7 = arith.constant 0 : index
    %5 = vector.load %arg3[%c0_6, %c0_7] : memref<1x128xf32, #tpu.memory_space<vmem>>, vector<1x128xf32>
    %c0_8 = arith.constant 0 : index
    %c0_9 = arith.constant 0 : index
    %6 = vector.load %arg4[%c0_8, %c0_9] : memref<128x128xf32, #tpu.memory_space<vmem>>, vector<128x128xf32>
    %c0_10 = arith.constant 0 : index
    %c0_11 = arith.constant 0 : index
    %7 = vector.load %arg5[%c0_10, %c0_11] : memref<1x128xf32, #tpu.memory_space<vmem>>, vector<1x128xf32>
    %c0_12 = arith.constant 0 : index
    %c0_13 = arith.constant 0 : index
    %8 = vector.load %arg6[%c0_12, %c0_13] : memref<128x4xf32, #tpu.memory_space<vmem>>, vector<128x4xf32>
    %c0_14 = arith.constant 0 : index
    %c0_15 = arith.constant 0 : index
    %9 = vector.load %arg7[%c0_14, %c0_15] : memref<1x4xf32, #tpu.memory_space<vmem>>, vector<1x4xf32>
    %c0_16 = arith.constant 0 : index
    %c0_17 = arith.constant 0 : index
    %10 = vector.load %arg1[%c0_16, %c0_17] : memref<8x128xf32, #tpu.memory_space<vmem>>, vector<8x4xf32>
    %cst = arith.constant dense<0.000000e+00> : vector<8x128xf32>
    %11 = tpu.matmul %10, %4, %cst {dimension_numbers = #tpu.dot_dimension_numbers<[1], [0], [0], [1], [0, 0, 1, 1], [], []>} : vector<8x4xf32>, vector<4x128xf32>, vector<8x128xf32> -> vector<8x128xf32>
    %12 = vector.broadcast %5 : vector<1x128xf32> to vector<8x128xf32>
    %13 = arith.addf %11, %12 : vector<8x128xf32>
    %cst_18 = arith.constant -5.000000e+00 : f32
    %cst_19 = arith.constant 5.000000e+00 : f32
    %14 = vector.broadcast %cst_18 : f32 to vector<8x128xf32>
    %15 = arith.maximumf %14, %13 : vector<8x128xf32>
    %16 = vector.broadcast %cst_19 : f32 to vector<8x128xf32>
    %17 = arith.minimumf %16, %15 : vector<8x128xf32>
    %cst_20 = arith.constant dense<0.000000e+00> : vector<8x128xf32>
    %18 = tpu.matmul %17, %6, %cst_20 {dimension_numbers = #tpu.dot_dimension_numbers<[1], [0], [0], [1], [0, 0, 1, 1], [], []>} : vector<8x128xf32>, vector<128x128xf32>, vector<8x128xf32> -> vector<8x128xf32>
    %19 = vector.broadcast %7 : vector<1x128xf32> to vector<8x128xf32>
    %20 = arith.addf %18, %19 : vector<8x128xf32>
    %cst_21 = arith.constant -5.000000e+00 : f32
    %cst_22 = arith.constant 5.000000e+00 : f32
    %21 = vector.broadcast %cst_21 : f32 to vector<8x128xf32>
    %22 = arith.maximumf %21, %20 : vector<8x128xf32>
    %23 = vector.broadcast %cst_22 : f32 to vector<8x128xf32>
    %24 = arith.minimumf %23, %22 : vector<8x128xf32>
    %cst_23 = arith.constant dense<0.000000e+00> : vector<8x4xf32>
    %25 = tpu.matmul %24, %8, %cst_23 {dimension_numbers = #tpu.dot_dimension_numbers<[1], [0], [0], [1], [0, 0, 1, 1], [], []>} : vector<8x128xf32>, vector<128x4xf32>, vector<8x4xf32> -> vector<8x4xf32>
    %26 = vector.broadcast %9 : vector<1x4xf32> to vector<8x4xf32>
    %27 = arith.addf %25, %26 : vector<8x4xf32>
    %c1 = arith.constant 1 : index
    %c0_24 = arith.constant 0 : index
    %c0_25 = arith.constant 0 : index
    %28 = vector.load %arg8[%c1, %c0_24, %c0_25] : memref<2x8x128xf32, #tpu.memory_space<vmem>>, vector<1x8x4xf32>
    %29 = vector.shape_cast %28 : vector<1x8x4xf32> to vector<8x4xf32>
    %30 = vector.shape_cast %27 : vector<8x4xf32> to vector<1x8x4xf32>
    tpu.vector_store %arg8[%c1, %c0_24, %c0_25], %30 {strides = array<i32>} : memref<2x8x128xf32, #tpu.memory_space<vmem>>, vector<1x8x4xf32>,
    %c0_26 = arith.constant 0 : index
    %c4 = arith.constant 4 : index
    %31 = vector.load %arg1[%c0_26, %c4] : memref<8x128xf32, #tpu.memory_space<vmem>>, vector<8x4xf32>
    %cst_27 = arith.constant dense<0.000000e+00> : vector<8x128xf32>
    %32 = tpu.matmul %31, %4, %cst_27 {dimension_numbers = #tpu.dot_dimension_numbers<[1], [0], [0], [1], [0, 0, 1, 1], [], []>} : vector<8x4xf32>, vector<4x128xf32>, vector<8x128xf32> -> vector<8x128xf32>
    %33 = vector.broadcast %5 : vector<1x128xf32> to vector<8x128xf32>
    %34 = arith.addf %32, %33 : vector<8x128xf32>
    %cst_28 = arith.constant -5.000000e+00 : f32
    %cst_29 = arith.constant 5.000000e+00 : f32
    %35 = vector.broadcast %cst_28 : f32 to vector<8x128xf32>
    %36 = arith.maximumf %35, %34 : vector<8x128xf32>
    %37 = vector.broadcast %cst_29 : f32 to vector<8x128xf32>
    %38 = arith.minimumf %37, %36 : vector<8x128xf32>
    %cst_30 = arith.constant dense<0.000000e+00> : vector<8x128xf32>
    %39 = tpu.matmul %38, %6, %cst_30 {dimension_numbers = #tpu.dot_dimension_numbers<[1], [0], [0], [1], [0, 0, 1, 1], [], []>} : vector<8x128xf32>, vector<128x128xf32>, vector<8x128xf32> -> vector<8x128xf32>
    %40 = vector.broadcast %7 : vector<1x128xf32> to vector<8x128xf32>
    %41 = arith.addf %39, %40 : vector<8x128xf32>
    %cst_31 = arith.constant -5.000000e+00 : f32
    %cst_32 = arith.constant 5.000000e+00 : f32
    %42 = vector.broadcast %cst_31 : f32 to vector<8x128xf32>
    %43 = arith.maximumf %42, %41 : vector<8x128xf32>
    %44 = vector.broadcast %cst_32 : f32 to vector<8x128xf32>
    %45 = arith.minimumf %44, %43 : vector<8x128xf32>
    %cst_33 = arith.constant dense<0.000000e+00> : vector<8x4xf32>
    %46 = tpu.matmul %45, %8, %cst_33 {dimension_numbers = #tpu.dot_dimension_numbers<[1], [0], [0], [1], [0, 0, 1, 1], [], []>} : vector<8x128xf32>, vector<128x4xf32>, vector<8x4xf32> -> vector<8x4xf32>
    %47 = vector.broadcast %9 : vector<1x4xf32> to vector<8x4xf32>
    %48 = arith.addf %46, %47 : vector<8x4xf32>
    %c1_34 = arith.constant 1 : index
    %c0_35 = arith.constant 0 : index
    %c4_36 = arith.constant 4 : index
    %49 = vector.load %arg8[%c1_34, %c0_35, %c4_36] : memref<2x8x128xf32, #tpu.memory_space<vmem>>, vector<1x8x4xf32>
    %50 = vector.shape_cast %49 : vector<1x8x4xf32> to vector<8x4xf32>
    %51 = vector.shape_cast %48 : vector<8x4xf32> to vector<1x8x4xf32>
    tpu.vector_store %arg8[%c1_34, %c0_35, %c4_36], %51 {strides = array<i32>} : memref<2x8x128xf32, #tpu.memory_space<vmem>>, vector<1x8x4xf32>,
    %c0_37 = arith.constant 0 : index
    %c8 = arith.constant 8 : index
    %52 = vector.load %arg1[%c0_37, %c8] : memref<8x128xf32, #tpu.memory_space<vmem>>, vector<8x4xf32>
    %cst_38 = arith.constant dense<0.000000e+00> : vector<8x128xf32>
    %53 = tpu.matmul %52, %4, %cst_38 {dimension_numbers = #tpu.dot_dimension_numbers<[1], [0], [0], [1], [0, 0, 1, 1], [], []>} : vector<8x4xf32>, vector<4x128xf32>, vector<8x128xf32> -> vector<8x128xf32>
    %54 = vector.broadcast %5 : vector<1x128xf32> to vector<8x128xf32>
    %55 = arith.addf %53, %54 : vector<8x128xf32>
    %cst_39 = arith.constant -5.000000e+00 : f32
    %cst_40 = arith.constant 5.000000e+00 : f32
    %56 = vector.broadcast %cst_39 : f32 to vector<8x128xf32>
    %57 = arith.maximumf %56, %55 : vector<8x128xf32>
    %58 = vector.broadcast %cst_40 : f32 to vector<8x128xf32>
    %59 = arith.minimumf %58, %57 : vector<8x128xf32>
    %cst_41 = arith.constant dense<0.000000e+00> : vector<8x128xf32>
    %60 = tpu.matmul %59, %6, %cst_41 {dimension_numbers = #tpu.dot_dimension_numbers<[1], [0], [0], [1], [0, 0, 1, 1], [], []>} : vector<8x128xf32>, vector<128x128xf32>, vector<8x128xf32> -> vector<8x128xf32>
    %61 = vector.broadcast %7 : vector<1x128xf32> to vector<8x128xf32>
    %62 = arith.addf %60, %61 : vector<8x128xf32>
    %cst_42 = arith.constant -5.000000e+00 : f32
    %cst_43 = arith.constant 5.000000e+00 : f32
    %63 = vector.broadcast %cst_42 : f32 to vector<8x128xf32>
    %64 = arith.maximumf %63, %62 : vector<8x128xf32>
    %65 = vector.broadcast %cst_43 : f32 to vector<8x128xf32>
    %66 = arith.minimumf %65, %64 : vector<8x128xf32>
    %cst_44 = arith.constant dense<0.000000e+00> : vector<8x4xf32>
    %67 = tpu.matmul %66, %8, %cst_44 {dimension_numbers = #tpu.dot_dimension_numbers<[1], [0], [0], [1], [0, 0, 1, 1], [], []>} : vector<8x128xf32>, vector<128x4xf32>, vector<8x4xf32> -> vector<8x4xf32>
    %68 = vector.broadcast %9 : vector<1x4xf32> to vector<8x4xf32>
    %69 = arith.addf %67, %68 : vector<8x4xf32>
    %c1_45 = arith.constant 1 : index
    %c0_46 = arith.constant 0 : index
    %c8_47 = arith.constant 8 : index
    %70 = vector.load %arg8[%c1_45, %c0_46, %c8_47] : memref<2x8x128xf32, #tpu.memory_space<vmem>>, vector<1x8x4xf32>
    %71 = vector.shape_cast %70 : vector<1x8x4xf32> to vector<8x4xf32>
    %72 = vector.shape_cast %69 : vector<8x4xf32> to vector<1x8x4xf32>
    tpu.vector_store %arg8[%c1_45, %c0_46, %c8_47], %72 {strides = array<i32>} : memref<2x8x128xf32, #tpu.memory_space<vmem>>, vector<1x8x4xf32>,
    %c0_48 = arith.constant 0 : index
    %c12 = arith.constant 12 : index
    %73 = vector.load %arg1[%c0_48, %c12] : memref<8x128xf32, #tpu.memory_space<vmem>>, vector<8x4xf32>
    %cst_49 = arith.constant dense<0.000000e+00> : vector<8x128xf32>
    %74 = tpu.matmul %73, %4, %cst_49 {dimension_numbers = #tpu.dot_dimension_numbers<[1], [0], [0], [1], [0, 0, 1, 1], [], []>} : vector<8x4xf32>, vector<4x128xf32>, vector<8x128xf32> -> vector<8x128xf32>
    %75 = vector.broadcast %5 : vector<1x128xf32> to vector<8x128xf32>
    %76 = arith.addf %74, %75 : vector<8x128xf32>
    %cst_50 = arith.constant -5.000000e+00 : f32
    %cst_51 = arith.constant 5.000000e+00 : f32
    %77 = vector.broadcast %cst_50 : f32 to vector<8x128xf32>
    %78 = arith.maximumf %77, %76 : vector<8x128xf32>
    %79 = vector.broadcast %cst_51 : f32 to vector<8x128xf32>
    %80 = arith.minimumf %79, %78 : vector<8x128xf32>
    %cst_52 = arith.constant dense<0.000000e+00> : vector<8x128xf32>
    %81 = tpu.matmul %80, %6, %cst_52 {dimension_numbers = #tpu.dot_dimension_numbers<[1], [0], [0], [1], [0, 0, 1, 1], [], []>} : vector<8x128xf32>, vector<128x128xf32>, vector<8x128xf32> -> vector<8x128xf32>
    %82 = vector.broadcast %7 : vector<1x128xf32> to vector<8x128xf32>
    %83 = arith.addf %81, %82 : vector<8x128xf32>
    %cst_53 = arith.constant -5.000000e+00 : f32
    %cst_54 = arith.constant 5.000000e+00 : f32
    %84 = vector.broadcast %cst_53 : f32 to vector<8x128xf32>
    %85 = arith.maximumf %84, %83 : vector<8x128xf32>
    %86 = vector.broadcast %cst_54 : f32 to vector<8x128xf32>
    %87 = arith.minimumf %86, %85 : vector<8x128xf32>
    %cst_55 = arith.constant dense<0.000000e+00> : vector<8x4xf32>
    %88 = tpu.matmul %87, %8, %cst_55 {dimension_numbers = #tpu.dot_dimension_numbers<[1], [0], [0], [1], [0, 0, 1, 1], [], []>} : vector<8x128xf32>, vector<128x4xf32>, vector<8x4xf32> -> vector<8x4xf32>
    %89 = vector.broadcast %9 : vector<1x4xf32> to vector<8x4xf32>
    %90 = arith.addf %88, %89 : vector<8x4xf32>
    %c1_56 = arith.constant 1 : index
    %c0_57 = arith.constant 0 : index
    %c12_58 = arith.constant 12 : index
    %91 = vector.load %arg8[%c1_56, %c0_57, %c12_58] : memref<2x8x128xf32, #tpu.memory_space<vmem>>, vector<1x8x4xf32>
    %92 = vector.shape_cast %91 : vector<1x8x4xf32> to vector<8x4xf32>
    %93 = vector.shape_cast %90 : vector<8x4xf32> to vector<1x8x4xf32>
    tpu.vector_store %arg8[%c1_56, %c0_57, %c12_58], %93 {strides = array<i32>} : memref<2x8x128xf32, #tpu.memory_space<vmem>>, vector<1x8x4xf32>,
    %c0_59 = arith.constant 0 : index
    %c16 = arith.constant 16 : index
    %94 = vector.load %arg1[%c0_59, %c16] : memref<8x128xf32, #tpu.memory_space<vmem>>, vector<8x4xf32>
    %cst_60 = arith.constant dense<0.000000e+00> : vector<8x128xf32>
    %95 = tpu.matmul %94, %4, %cst_60 {dimension_numbers = #tpu.dot_dimension_numbers<[1], [0], [0], [1], [0, 0, 1, 1], [], []>} : vector<8x4xf32>, vector<4x128xf32>, vector<8x128xf32> -> vector<8x128xf32>
    %96 = vector.broadcast %5 : vector<1x128xf32> to vector<8x128xf32>
    %97 = arith.addf %95, %96 : vector<8x128xf32>
    %cst_61 = arith.constant -5.000000e+00 : f32
    %cst_62 = arith.constant 5.000000e+00 : f32
    %98 = vector.broadcast %cst_61 : f32 to vector<8x128xf32>
    %99 = arith.maximumf %98, %97 : vector<8x128xf32>
    %100 = vector.broadcast %cst_62 : f32 to vector<8x128xf32>
    %101 = arith.minimumf %100, %99 : vector<8x128xf32>
    %cst_63 = arith.constant dense<0.000000e+00> : vector<8x128xf32>
    %102 = tpu.matmul %101, %6, %cst_63 {dimension_numbers = #tpu.dot_dimension_numbers<[1], [0], [0], [1], [0, 0, 1, 1], [], []>} : vector<8x128xf32>, vector<128x128xf32>, vector<8x128xf32> -> vector<8x128xf32>
    %103 = vector.broadcast %7 : vector<1x128xf32> to vector<8x128xf32>
    %104 = arith.addf %102, %103 : vector<8x128xf32>
    %cst_64 = arith.constant -5.000000e+00 : f32
    %cst_65 = arith.constant 5.000000e+00 : f32
    %105 = vector.broadcast %cst_64 : f32 to vector<8x128xf32>
    %106 = arith.maximumf %105, %104 : vector<8x128xf32>
    %107 = vector.broadcast %cst_65 : f32 to vector<8x128xf32>
    %108 = arith.minimumf %107, %106 : vector<8x128xf32>
    %cst_66 = arith.constant dense<0.000000e+00> : vector<8x4xf32>
    %109 = tpu.matmul %108, %8, %cst_66 {dimension_numbers = #tpu.dot_dimension_numbers<[1], [0], [0], [1], [0, 0, 1, 1], [], []>} : vector<8x128xf32>, vector<128x4xf32>, vector<8x4xf32> -> vector<8x4xf32>
    %110 = vector.broadcast %9 : vector<1x4xf32> to vector<8x4xf32>
    %111 = arith.addf %109, %110 : vector<8x4xf32>
    %c1_67 = arith.constant 1 : index
    %c0_68 = arith.constant 0 : index
    %c16_69 = arith.constant 16 : index
    %112 = vector.load %arg8[%c1_67, %c0_68, %c16_69] : memref<2x8x128xf32, #tpu.memory_space<vmem>>, vector<1x8x4xf32>
    %113 = vector.shape_cast %112 : vector<1x8x4xf32> to vector<8x4xf32>
    %114 = vector.shape_cast %111 : vector<8x4xf32> to vector<1x8x4xf32>
    tpu.vector_store %arg8[%c1_67, %c0_68, %c16_69], %114 {strides = array<i32>} : memref<2x8x128xf32, #tpu.memory_space<vmem>>, vector<1x8x4xf32>,
    %c0_70 = arith.constant 0 : index
    %c20 = arith.constant 20 : index
    %115 = vector.load %arg1[%c0_70, %c20] : memref<8x128xf32, #tpu.memory_space<vmem>>, vector<8x4xf32>
    %cst_71 = arith.constant dense<0.000000e+00> : vector<8x128xf32>
    %116 = tpu.matmul %115, %4, %cst_71 {dimension_numbers = #tpu.dot_dimension_numbers<[1], [0], [0], [1], [0, 0, 1, 1], [], []>} : vector<8x4xf32>, vector<4x128xf32>, vector<8x128xf32> -> vector<8x128xf32>
    %117 = vector.broadcast %5 : vector<1x128xf32> to vector<8x128xf32>
    %118 = arith.addf %116, %117 : vector<8x128xf32>
    %cst_72 = arith.constant -5.000000e+00 : f32
    %cst_73 = arith.constant 5.000000e+00 : f32
    %119 = vector.broadcast %cst_72 : f32 to vector<8x128xf32>
    %120 = arith.maximumf %119, %118 : vector<8x128xf32>
    %121 = vector.broadcast %cst_73 : f32 to vector<8x128xf32>
    %122 = arith.minimumf %121, %120 : vector<8x128xf32>
    %cst_74 = arith.constant dense<0.000000e+00> : vector<8x128xf32>
    %123 = tpu.matmul %122, %6, %cst_74 {dimension_numbers = #tpu.dot_dimension_numbers<[1], [0], [0], [1], [0, 0, 1, 1], [], []>} : vector<8x128xf32>, vector<128x128xf32>, vector<8x128xf32> -> vector<8x128xf32>
    %124 = vector.broadcast %7 : vector<1x128xf32> to vector<8x128xf32>
    %125 = arith.addf %123, %124 : vector<8x128xf32>
    %cst_75 = arith.constant -5.000000e+00 : f32
    %cst_76 = arith.constant 5.000000e+00 : f32
    %126 = vector.broadcast %cst_75 : f32 to vector<8x128xf32>
    %127 = arith.maximumf %126, %125 : vector<8x128xf32>
    %128 = vector.broadcast %cst_76 : f32 to vector<8x128xf32>
    %129 = arith.minimumf %128, %127 : vector<8x128xf32>
    %cst_77 = arith.constant dense<0.000000e+00> : vector<8x4xf32>
    %130 = tpu.matmul %129, %8, %cst_77 {dimension_numbers = #tpu.dot_dimension_numbers<[1], [0], [0], [1], [0, 0, 1, 1], [], []>} : vector<8x128xf32>, vector<128x4xf32>, vector<8x4xf32> -> vector<8x4xf32>
    %131 = vector.broadcast %9 : vector<1x4xf32> to vector<8x4xf32>
    %132 = arith.addf %130, %131 : vector<8x4xf32>
    %c1_78 = arith.constant 1 : index
    %c0_79 = arith.constant 0 : index
    %c20_80 = arith.constant 20 : index
    %133 = vector.load %arg8[%c1_78, %c0_79, %c20_80] : memref<2x8x128xf32, #tpu.memory_space<vmem>>, vector<1x8x4xf32>
    %134 = vector.shape_cast %133 : vector<1x8x4xf32> to vector<8x4xf32>
    %135 = vector.shape_cast %132 : vector<8x4xf32> to vector<1x8x4xf32>
    tpu.vector_store %arg8[%c1_78, %c0_79, %c20_80], %135 {strides = array<i32>} : memref<2x8x128xf32, #tpu.memory_space<vmem>>, vector<1x8x4xf32>,
    %c0_81 = arith.constant 0 : index
    %c24 = arith.constant 24 : index
    %136 = vector.load %arg1[%c0_81, %c24] : memref<8x128xf32, #tpu.memory_space<vmem>>, vector<8x4xf32>
    %cst_82 = arith.constant dense<0.000000e+00> : vector<8x128xf32>
    %137 = tpu.matmul %136, %4, %cst_82 {dimension_numbers = #tpu.dot_dimension_numbers<[1], [0], [0], [1], [0, 0, 1, 1], [], []>} : vector<8x4xf32>, vector<4x128xf32>, vector<8x128xf32> -> vector<8x128xf32>
    %138 = vector.broadcast %5 : vector<1x128xf32> to vector<8x128xf32>
    %139 = arith.addf %137, %138 : vector<8x128xf32>
    %cst_83 = arith.constant -5.000000e+00 : f32
    %cst_84 = arith.constant 5.000000e+00 : f32
    %140 = vector.broadcast %cst_83 : f32 to vector<8x128xf32>
    %141 = arith.maximumf %140, %139 : vector<8x128xf32>
    %142 = vector.broadcast %cst_84 : f32 to vector<8x128xf32>
    %143 = arith.minimumf %142, %141 : vector<8x128xf32>
    %cst_85 = arith.constant dense<0.000000e+00> : vector<8x128xf32>
    %144 = tpu.matmul %143, %6, %cst_85 {dimension_numbers = #tpu.dot_dimension_numbers<[1], [0], [0], [1], [0, 0, 1, 1], [], []>} : vector<8x128xf32>, vector<128x128xf32>, vector<8x128xf32> -> vector<8x128xf32>
    %145 = vector.broadcast %7 : vector<1x128xf32> to vector<8x128xf32>
    %146 = arith.addf %144, %145 : vector<8x128xf32>
    %cst_86 = arith.constant -5.000000e+00 : f32
    %cst_87 = arith.constant 5.000000e+00 : f32
    %147 = vector.broadcast %cst_86 : f32 to vector<8x128xf32>
    %148 = arith.maximumf %147, %146 : vector<8x128xf32>
    %149 = vector.broadcast %cst_87 : f32 to vector<8x128xf32>
    %150 = arith.minimumf %149, %148 : vector<8x128xf32>
    %cst_88 = arith.constant dense<0.000000e+00> : vector<8x4xf32>
    %151 = tpu.matmul %150, %8, %cst_88 {dimension_numbers = #tpu.dot_dimension_numbers<[1], [0], [0], [1], [0, 0, 1, 1], [], []>} : vector<8x128xf32>, vector<128x4xf32>, vector<8x4xf32> -> vector<8x4xf32>
    %152 = vector.broadcast %9 : vector<1x4xf32> to vector<8x4xf32>
    %153 = arith.addf %151, %152 : vector<8x4xf32>
    %c1_89 = arith.constant 1 : index
    %c0_90 = arith.constant 0 : index
    %c24_91 = arith.constant 24 : index
    %154 = vector.load %arg8[%c1_89, %c0_90, %c24_91] : memref<2x8x128xf32, #tpu.memory_space<vmem>>, vector<1x8x4xf32>
    %155 = vector.shape_cast %154 : vector<1x8x4xf32> to vector<8x4xf32>
    %156 = vector.shape_cast %153 : vector<8x4xf32> to vector<1x8x4xf32>
    tpu.vector_store %arg8[%c1_89, %c0_90, %c24_91], %156 {strides = array<i32>} : memref<2x8x128xf32, #tpu.memory_space<vmem>>, vector<1x8x4xf32>,
    %c0_92 = arith.constant 0 : index
    %c28 = arith.constant 28 : index
    %157 = vector.load %arg1[%c0_92, %c28] : memref<8x128xf32, #tpu.memory_space<vmem>>, vector<8x4xf32>
    %cst_93 = arith.constant dense<0.000000e+00> : vector<8x128xf32>
    %158 = tpu.matmul %157, %4, %cst_93 {dimension_numbers = #tpu.dot_dimension_numbers<[1], [0], [0], [1], [0, 0, 1, 1], [], []>} : vector<8x4xf32>, vector<4x128xf32>, vector<8x128xf32> -> vector<8x128xf32>
    %159 = vector.broadcast %5 : vector<1x128xf32> to vector<8x128xf32>
    %160 = arith.addf %158, %159 : vector<8x128xf32>
    %cst_94 = arith.constant -5.000000e+00 : f32
    %cst_95 = arith.constant 5.000000e+00 : f32
    %161 = vector.broadcast %cst_94 : f32 to vector<8x128xf32>
    %162 = arith.maximumf %161, %160 : vector<8x128xf32>
    %163 = vector.broadcast %cst_95 : f32 to vector<8x128xf32>
    %164 = arith.minimumf %163, %162 : vector<8x128xf32>
    %cst_96 = arith.constant dense<0.000000e+00> : vector<8x128xf32>
    %165 = tpu.matmul %164, %6, %cst_96 {dimension_numbers = #tpu.dot_dimension_numbers<[1], [0], [0], [1], [0, 0, 1, 1], [], []>} : vector<8x128xf32>, vector<128x128xf32>, vector<8x128xf32> -> vector<8x128xf32>
    %166 = vector.broadcast %7 : vector<1x128xf32> to vector<8x128xf32>
    %167 = arith.addf %165, %166 : vector<8x128xf32>
    %cst_97 = arith.constant -5.000000e+00 : f32
    %cst_98 = arith.constant 5.000000e+00 : f32
    %168 = vector.broadcast %cst_97 : f32 to vector<8x128xf32>
    %169 = arith.maximumf %168, %167 : vector<8x128xf32>
    %170 = vector.broadcast %cst_98 : f32 to vector<8x128xf32>
    %171 = arith.minimumf %170, %169 : vector<8x128xf32>
    %cst_99 = arith.constant dense<0.000000e+00> : vector<8x4xf32>
    %172 = tpu.matmul %171, %8, %cst_99 {dimension_numbers = #tpu.dot_dimension_numbers<[1], [0], [0], [1], [0, 0, 1, 1], [], []>} : vector<8x128xf32>, vector<128x4xf32>, vector<8x4xf32> -> vector<8x4xf32>
    %173 = vector.broadcast %9 : vector<1x4xf32> to vector<8x4xf32>
    %174 = arith.addf %172, %173 : vector<8x4xf32>
    %c1_100 = arith.constant 1 : index
    %c0_101 = arith.constant 0 : index
    %c28_102 = arith.constant 28 : index
    %175 = vector.load %arg8[%c1_100, %c0_101, %c28_102] : memref<2x8x128xf32, #tpu.memory_space<vmem>>, vector<1x8x4xf32>
    %176 = vector.shape_cast %175 : vector<1x8x4xf32> to vector<8x4xf32>
    %177 = vector.shape_cast %174 : vector<8x4xf32> to vector<1x8x4xf32>
    tpu.vector_store %arg8[%c1_100, %c0_101, %c28_102], %177 {strides = array<i32>} : memref<2x8x128xf32, #tpu.memory_space<vmem>>, vector<1x8x4xf32>,
    %c0_103 = arith.constant 0 : index
    %c32 = arith.constant 32 : index
    %178 = vector.load %arg1[%c0_103, %c32] : memref<8x128xf32, #tpu.memory_space<vmem>>, vector<8x4xf32>
    %cst_104 = arith.constant dense<0.000000e+00> : vector<8x128xf32>
    %179 = tpu.matmul %178, %4, %cst_104 {dimension_numbers = #tpu.dot_dimension_numbers<[1], [0], [0], [1], [0, 0, 1, 1], [], []>} : vector<8x4xf32>, vector<4x128xf32>, vector<8x128xf32> -> vector<8x128xf32>
    %180 = vector.broadcast %5 : vector<1x128xf32> to vector<8x128xf32>
    %181 = arith.addf %179, %180 : vector<8x128xf32>
    %cst_105 = arith.constant -5.000000e+00 : f32
    %cst_106 = arith.constant 5.000000e+00 : f32
    %182 = vector.broadcast %cst_105 : f32 to vector<8x128xf32>
    %183 = arith.maximumf %182, %181 : vector<8x128xf32>
    %184 = vector.broadcast %cst_106 : f32 to vector<8x128xf32>
    %185 = arith.minimumf %184, %183 : vector<8x128xf32>
    %cst_107 = arith.constant dense<0.000000e+00> : vector<8x128xf32>
    %186 = tpu.matmul %185, %6, %cst_107 {dimension_numbers = #tpu.dot_dimension_numbers<[1], [0], [0], [1], [0, 0, 1, 1], [], []>} : vector<8x128xf32>, vector<128x128xf32>, vector<8x128xf32> -> vector<8x128xf32>
    %187 = vector.broadcast %7 : vector<1x128xf32> to vector<8x128xf32>
    %188 = arith.addf %186, %187 : vector<8x128xf32>
    %cst_108 = arith.constant -5.000000e+00 : f32
    %cst_109 = arith.constant 5.000000e+00 : f32
    %189 = vector.broadcast %cst_108 : f32 to vector<8x128xf32>
    %190 = arith.maximumf %189, %188 : vector<8x128xf32>
    %191 = vector.broadcast %cst_109 : f32 to vector<8x128xf32>
    %192 = arith.minimumf %191, %190 : vector<8x128xf32>
    %cst_110 = arith.constant dense<0.000000e+00> : vector<8x4xf32>
    %193 = tpu.matmul %192, %8, %cst_110 {dimension_numbers = #tpu.dot_dimension_numbers<[1], [0], [0], [1], [0, 0, 1, 1], [], []>} : vector<8x128xf32>, vector<128x4xf32>, vector<8x4xf32> -> vector<8x4xf32>
    %194 = vector.broadcast %9 : vector<1x4xf32> to vector<8x4xf32>
    %195 = arith.addf %193, %194 : vector<8x4xf32>
    %c1_111 = arith.constant 1 : index
    %c0_112 = arith.constant 0 : index
    %c32_113 = arith.constant 32 : index
    %196 = vector.load %arg8[%c1_111, %c0_112, %c32_113] : memref<2x8x128xf32, #tpu.memory_space<vmem>>, vector<1x8x4xf32>
    %197 = vector.shape_cast %196 : vector<1x8x4xf32> to vector<8x4xf32>
    %198 = vector.shape_cast %195 : vector<8x4xf32> to vector<1x8x4xf32>
    tpu.vector_store %arg8[%c1_111, %c0_112, %c32_113], %198 {strides = array<i32>} : memref<2x8x128xf32, #tpu.memory_space<vmem>>, vector<1x8x4xf32>,
    %c0_114 = arith.constant 0 : index
    %c36 = arith.constant 36 : index
    %199 = vector.load %arg1[%c0_114, %c36] : memref<8x128xf32, #tpu.memory_space<vmem>>, vector<8x4xf32>
    %cst_115 = arith.constant dense<0.000000e+00> : vector<8x128xf32>
    %200 = tpu.matmul %199, %4, %cst_115 {dimension_numbers = #tpu.dot_dimension_numbers<[1], [0], [0], [1], [0, 0, 1, 1], [], []>} : vector<8x4xf32>, vector<4x128xf32>, vector<8x128xf32> -> vector<8x128xf32>
    %201 = vector.broadcast %5 : vector<1x128xf32> to vector<8x128xf32>
    %202 = arith.addf %200, %201 : vector<8x128xf32>
    %cst_116 = arith.constant -5.000000e+00 : f32
    %cst_117 = arith.constant 5.000000e+00 : f32
    %203 = vector.broadcast %cst_116 : f32 to vector<8x128xf32>
    %204 = arith.maximumf %203, %202 : vector<8x128xf32>
    %205 = vector.broadcast %cst_117 : f32 to vector<8x128xf32>
    %206 = arith.minimumf %205, %204 : vector<8x128xf32>
    %cst_118 = arith.constant dense<0.000000e+00> : vector<8x128xf32>
    %207 = tpu.matmul %206, %6, %cst_118 {dimension_numbers = #tpu.dot_dimension_numbers<[1], [0], [0], [1], [0, 0, 1, 1], [], []>} : vector<8x128xf32>, vector<128x128xf32>, vector<8x128xf32> -> vector<8x128xf32>
    %208 = vector.broadcast %7 : vector<1x128xf32> to vector<8x128xf32>
    %209 = arith.addf %207, %208 : vector<8x128xf32>
    %cst_119 = arith.constant -5.000000e+00 : f32
    %cst_120 = arith.constant 5.000000e+00 : f32
    %210 = vector.broadcast %cst_119 : f32 to vector<8x128xf32>
    %211 = arith.maximumf %210, %209 : vector<8x128xf32>
    %212 = vector.broadcast %cst_120 : f32 to vector<8x128xf32>
    %213 = arith.minimumf %212, %211 : vector<8x128xf32>
    %cst_121 = arith.constant dense<0.000000e+00> : vector<8x4xf32>
    %214 = tpu.matmul %213, %8, %cst_121 {dimension_numbers = #tpu.dot_dimension_numbers<[1], [0], [0], [1], [0, 0, 1, 1], [], []>} : vector<8x128xf32>, vector<128x4xf32>, vector<8x4xf32> -> vector<8x4xf32>
    %215 = vector.broadcast %9 : vector<1x4xf32> to vector<8x4xf32>
    %216 = arith.addf %214, %215 : vector<8x4xf32>
    %c1_122 = arith.constant 1 : index
    %c0_123 = arith.constant 0 : index
    %c36_124 = arith.constant 36 : index
    %217 = vector.load %arg8[%c1_122, %c0_123, %c36_124] : memref<2x8x128xf32, #tpu.memory_space<vmem>>, vector<1x8x4xf32>
    %218 = vector.shape_cast %217 : vector<1x8x4xf32> to vector<8x4xf32>
    %219 = vector.shape_cast %216 : vector<8x4xf32> to vector<1x8x4xf32>
    tpu.vector_store %arg8[%c1_122, %c0_123, %c36_124], %219 {strides = array<i32>} : memref<2x8x128xf32, #tpu.memory_space<vmem>>, vector<1x8x4xf32>,
    %c0_125 = arith.constant 0 : index
    %c40 = arith.constant 40 : index
    %220 = vector.load %arg1[%c0_125, %c40] : memref<8x128xf32, #tpu.memory_space<vmem>>, vector<8x4xf32>
    %cst_126 = arith.constant dense<0.000000e+00> : vector<8x128xf32>
    %221 = tpu.matmul %220, %4, %cst_126 {dimension_numbers = #tpu.dot_dimension_numbers<[1], [0], [0], [1], [0, 0, 1, 1], [], []>} : vector<8x4xf32>, vector<4x128xf32>, vector<8x128xf32> -> vector<8x128xf32>
    %222 = vector.broadcast %5 : vector<1x128xf32> to vector<8x128xf32>
    %223 = arith.addf %221, %222 : vector<8x128xf32>
    %cst_127 = arith.constant -5.000000e+00 : f32
    %cst_128 = arith.constant 5.000000e+00 : f32
    %224 = vector.broadcast %cst_127 : f32 to vector<8x128xf32>
    %225 = arith.maximumf %224, %223 : vector<8x128xf32>
    %226 = vector.broadcast %cst_128 : f32 to vector<8x128xf32>
    %227 = arith.minimumf %226, %225 : vector<8x128xf32>
    %cst_129 = arith.constant dense<0.000000e+00> : vector<8x128xf32>
    %228 = tpu.matmul %227, %6, %cst_129 {dimension_numbers = #tpu.dot_dimension_numbers<[1], [0], [0], [1], [0, 0, 1, 1], [], []>} : vector<8x128xf32>, vector<128x128xf32>, vector<8x128xf32> -> vector<8x128xf32>
    %229 = vector.broadcast %7 : vector<1x128xf32> to vector<8x128xf32>
    %230 = arith.addf %228, %229 : vector<8x128xf32>
    %cst_130 = arith.constant -5.000000e+00 : f32
    %cst_131 = arith.constant 5.000000e+00 : f32
    %231 = vector.broadcast %cst_130 : f32 to vector<8x128xf32>
    %232 = arith.maximumf %231, %230 : vector<8x128xf32>
    %233 = vector.broadcast %cst_131 : f32 to vector<8x128xf32>
    %234 = arith.minimumf %233, %232 : vector<8x128xf32>
    %cst_132 = arith.constant dense<0.000000e+00> : vector<8x4xf32>
    %235 = tpu.matmul %234, %8, %cst_132 {dimension_numbers = #tpu.dot_dimension_numbers<[1], [0], [0], [1], [0, 0, 1, 1], [], []>} : vector<8x128xf32>, vector<128x4xf32>, vector<8x4xf32> -> vector<8x4xf32>
    %236 = vector.broadcast %9 : vector<1x4xf32> to vector<8x4xf32>
    %237 = arith.addf %235, %236 : vector<8x4xf32>
    %c1_133 = arith.constant 1 : index
    %c0_134 = arith.constant 0 : index
    %c40_135 = arith.constant 40 : index
    %238 = vector.load %arg8[%c1_133, %c0_134, %c40_135] : memref<2x8x128xf32, #tpu.memory_space<vmem>>, vector<1x8x4xf32>
    %239 = vector.shape_cast %238 : vector<1x8x4xf32> to vector<8x4xf32>
    %240 = vector.shape_cast %237 : vector<8x4xf32> to vector<1x8x4xf32>
    tpu.vector_store %arg8[%c1_133, %c0_134, %c40_135], %240 {strides = array<i32>} : memref<2x8x128xf32, #tpu.memory_space<vmem>>, vector<1x8x4xf32>,
    %c0_136 = arith.constant 0 : index
    %c44 = arith.constant 44 : index
    %241 = vector.load %arg1[%c0_136, %c44] : memref<8x128xf32, #tpu.memory_space<vmem>>, vector<8x4xf32>
    %cst_137 = arith.constant dense<0.000000e+00> : vector<8x128xf32>
    %242 = tpu.matmul %241, %4, %cst_137 {dimension_numbers = #tpu.dot_dimension_numbers<[1], [0], [0], [1], [0, 0, 1, 1], [], []>} : vector<8x4xf32>, vector<4x128xf32>, vector<8x128xf32> -> vector<8x128xf32>
    %243 = vector.broadcast %5 : vector<1x128xf32> to vector<8x128xf32>
    %244 = arith.addf %242, %243 : vector<8x128xf32>
    %cst_138 = arith.constant -5.000000e+00 : f32
    %cst_139 = arith.constant 5.000000e+00 : f32
    %245 = vector.broadcast %cst_138 : f32 to vector<8x128xf32>
    %246 = arith.maximumf %245, %244 : vector<8x128xf32>
    %247 = vector.broadcast %cst_139 : f32 to vector<8x128xf32>
    %248 = arith.minimumf %247, %246 : vector<8x128xf32>
    %cst_140 = arith.constant dense<0.000000e+00> : vector<8x128xf32>
    %249 = tpu.matmul %248, %6, %cst_140 {dimension_numbers = #tpu.dot_dimension_numbers<[1], [0], [0], [1], [0, 0, 1, 1], [], []>} : vector<8x128xf32>, vector<128x128xf32>, vector<8x128xf32> -> vector<8x128xf32>
    %250 = vector.broadcast %7 : vector<1x128xf32> to vector<8x128xf32>
    %251 = arith.addf %249, %250 : vector<8x128xf32>
    %cst_141 = arith.constant -5.000000e+00 : f32
    %cst_142 = arith.constant 5.000000e+00 : f32
    %252 = vector.broadcast %cst_141 : f32 to vector<8x128xf32>
    %253 = arith.maximumf %252, %251 : vector<8x128xf32>
    %254 = vector.broadcast %cst_142 : f32 to vector<8x128xf32>
    %255 = arith.minimumf %254, %253 : vector<8x128xf32>
    %cst_143 = arith.constant dense<0.000000e+00> : vector<8x4xf32>
    %256 = tpu.matmul %255, %8, %cst_143 {dimension_numbers = #tpu.dot_dimension_numbers<[1], [0], [0], [1], [0, 0, 1, 1], [], []>} : vector<8x128xf32>, vector<128x4xf32>, vector<8x4xf32> -> vector<8x4xf32>
    %257 = vector.broadcast %9 : vector<1x4xf32> to vector<8x4xf32>
    %258 = arith.addf %256, %257 : vector<8x4xf32>
    %c1_144 = arith.constant 1 : index
    %c0_145 = arith.constant 0 : index
    %c44_146 = arith.constant 44 : index
    %259 = vector.load %arg8[%c1_144, %c0_145, %c44_146] : memref<2x8x128xf32, #tpu.memory_space<vmem>>, vector<1x8x4xf32>
    %260 = vector.shape_cast %259 : vector<1x8x4xf32> to vector<8x4xf32>
    %261 = vector.shape_cast %258 : vector<8x4xf32> to vector<1x8x4xf32>
    tpu.vector_store %arg8[%c1_144, %c0_145, %c44_146], %261 {strides = array<i32>} : memref<2x8x128xf32, #tpu.memory_space<vmem>>, vector<1x8x4xf32>,
    %c0_147 = arith.constant 0 : index
    %c48 = arith.constant 48 : index
    %262 = vector.load %arg1[%c0_147, %c48] : memref<8x128xf32, #tpu.memory_space<vmem>>, vector<8x4xf32>
    %cst_148 = arith.constant dense<0.000000e+00> : vector<8x128xf32>
    %263 = tpu.matmul %262, %4, %cst_148 {dimension_numbers = #tpu.dot_dimension_numbers<[1], [0], [0], [1], [0, 0, 1, 1], [], []>} : vector<8x4xf32>, vector<4x128xf32>, vector<8x128xf32> -> vector<8x128xf32>
    %264 = vector.broadcast %5 : vector<1x128xf32> to vector<8x128xf32>
    %265 = arith.addf %263, %264 : vector<8x128xf32>
    %cst_149 = arith.constant -5.000000e+00 : f32
    %cst_150 = arith.constant 5.000000e+00 : f32
    %266 = vector.broadcast %cst_149 : f32 to vector<8x128xf32>
    %267 = arith.maximumf %266, %265 : vector<8x128xf32>
    %268 = vector.broadcast %cst_150 : f32 to vector<8x128xf32>
    %269 = arith.minimumf %268, %267 : vector<8x128xf32>
    %cst_151 = arith.constant dense<0.000000e+00> : vector<8x128xf32>
    %270 = tpu.matmul %269, %6, %cst_151 {dimension_numbers = #tpu.dot_dimension_numbers<[1], [0], [0], [1], [0, 0, 1, 1], [], []>} : vector<8x128xf32>, vector<128x128xf32>, vector<8x128xf32> -> vector<8x128xf32>
    %271 = vector.broadcast %7 : vector<1x128xf32> to vector<8x128xf32>
    %272 = arith.addf %270, %271 : vector<8x128xf32>
    %cst_152 = arith.constant -5.000000e+00 : f32
    %cst_153 = arith.constant 5.000000e+00 : f32
    %273 = vector.broadcast %cst_152 : f32 to vector<8x128xf32>
    %274 = arith.maximumf %273, %272 : vector<8x128xf32>
    %275 = vector.broadcast %cst_153 : f32 to vector<8x128xf32>
    %276 = arith.minimumf %275, %274 : vector<8x128xf32>
    %cst_154 = arith.constant dense<0.000000e+00> : vector<8x4xf32>
    %277 = tpu.matmul %276, %8, %cst_154 {dimension_numbers = #tpu.dot_dimension_numbers<[1], [0], [0], [1], [0, 0, 1, 1], [], []>} : vector<8x128xf32>, vector<128x4xf32>, vector<8x4xf32> -> vector<8x4xf32>
    %278 = vector.broadcast %9 : vector<1x4xf32> to vector<8x4xf32>
    %279 = arith.addf %277, %278 : vector<8x4xf32>
    %c1_155 = arith.constant 1 : index
    %c0_156 = arith.constant 0 : index
    %c48_157 = arith.constant 48 : index
    %280 = vector.load %arg8[%c1_155, %c0_156, %c48_157] : memref<2x8x128xf32, #tpu.memory_space<vmem>>, vector<1x8x4xf32>
    %281 = vector.shape_cast %280 : vector<1x8x4xf32> to vector<8x4xf32>
    %282 = vector.shape_cast %279 : vector<8x4xf32> to vector<1x8x4xf32>
    tpu.vector_store %arg8[%c1_155, %c0_156, %c48_157], %282 {strides = array<i32>} : memref<2x8x128xf32, #tpu.memory_space<vmem>>, vector<1x8x4xf32>,
    %c0_158 = arith.constant 0 : index
    %c52 = arith.constant 52 : index
    %283 = vector.load %arg1[%c0_158, %c52] : memref<8x128xf32, #tpu.memory_space<vmem>>, vector<8x4xf32>
    %cst_159 = arith.constant dense<0.000000e+00> : vector<8x128xf32>
    %284 = tpu.matmul %283, %4, %cst_159 {dimension_numbers = #tpu.dot_dimension_numbers<[1], [0], [0], [1], [0, 0, 1, 1], [], []>} : vector<8x4xf32>, vector<4x128xf32>, vector<8x128xf32> -> vector<8x128xf32>
    %285 = vector.broadcast %5 : vector<1x128xf32> to vector<8x128xf32>
    %286 = arith.addf %284, %285 : vector<8x128xf32>
    %cst_160 = arith.constant -5.000000e+00 : f32
    %cst_161 = arith.constant 5.000000e+00 : f32
    %287 = vector.broadcast %cst_160 : f32 to vector<8x128xf32>
    %288 = arith.maximumf %287, %286 : vector<8x128xf32>
    %289 = vector.broadcast %cst_161 : f32 to vector<8x128xf32>
    %290 = arith.minimumf %289, %288 : vector<8x128xf32>
    %cst_162 = arith.constant dense<0.000000e+00> : vector<8x128xf32>
    %291 = tpu.matmul %290, %6, %cst_162 {dimension_numbers = #tpu.dot_dimension_numbers<[1], [0], [0], [1], [0, 0, 1, 1], [], []>} : vector<8x128xf32>, vector<128x128xf32>, vector<8x128xf32> -> vector<8x128xf32>
    %292 = vector.broadcast %7 : vector<1x128xf32> to vector<8x128xf32>
    %293 = arith.addf %291, %292 : vector<8x128xf32>
    %cst_163 = arith.constant -5.000000e+00 : f32
    %cst_164 = arith.constant 5.000000e+00 : f32
    %294 = vector.broadcast %cst_163 : f32 to vector<8x128xf32>
    %295 = arith.maximumf %294, %293 : vector<8x128xf32>
    %296 = vector.broadcast %cst_164 : f32 to vector<8x128xf32>
    %297 = arith.minimumf %296, %295 : vector<8x128xf32>
    %cst_165 = arith.constant dense<0.000000e+00> : vector<8x4xf32>
    %298 = tpu.matmul %297, %8, %cst_165 {dimension_numbers = #tpu.dot_dimension_numbers<[1], [0], [0], [1], [0, 0, 1, 1], [], []>} : vector<8x128xf32>, vector<128x4xf32>, vector<8x4xf32> -> vector<8x4xf32>
    %299 = vector.broadcast %9 : vector<1x4xf32> to vector<8x4xf32>
    %300 = arith.addf %298, %299 : vector<8x4xf32>
    %c1_166 = arith.constant 1 : index
    %c0_167 = arith.constant 0 : index
    %c52_168 = arith.constant 52 : index
    %301 = vector.load %arg8[%c1_166, %c0_167, %c52_168] : memref<2x8x128xf32, #tpu.memory_space<vmem>>, vector<1x8x4xf32>
    %302 = vector.shape_cast %301 : vector<1x8x4xf32> to vector<8x4xf32>
    %303 = vector.shape_cast %300 : vector<8x4xf32> to vector<1x8x4xf32>
    tpu.vector_store %arg8[%c1_166, %c0_167, %c52_168], %303 {strides = array<i32>} : memref<2x8x128xf32, #tpu.memory_space<vmem>>, vector<1x8x4xf32>,
    %c0_169 = arith.constant 0 : index
    %c56 = arith.constant 56 : index
    %304 = vector.load %arg1[%c0_169, %c56] : memref<8x128xf32, #tpu.memory_space<vmem>>, vector<8x4xf32>
    %cst_170 = arith.constant dense<0.000000e+00> : vector<8x128xf32>
    %305 = tpu.matmul %304, %4, %cst_170 {dimension_numbers = #tpu.dot_dimension_numbers<[1], [0], [0], [1], [0, 0, 1, 1], [], []>} : vector<8x4xf32>, vector<4x128xf32>, vector<8x128xf32> -> vector<8x128xf32>
    %306 = vector.broadcast %5 : vector<1x128xf32> to vector<8x128xf32>
    %307 = arith.addf %305, %306 : vector<8x128xf32>
    %cst_171 = arith.constant -5.000000e+00 : f32
    %cst_172 = arith.constant 5.000000e+00 : f32
    %308 = vector.broadcast %cst_171 : f32 to vector<8x128xf32>
    %309 = arith.maximumf %308, %307 : vector<8x128xf32>
    %310 = vector.broadcast %cst_172 : f32 to vector<8x128xf32>
    %311 = arith.minimumf %310, %309 : vector<8x128xf32>
    %cst_173 = arith.constant dense<0.000000e+00> : vector<8x128xf32>
    %312 = tpu.matmul %311, %6, %cst_173 {dimension_numbers = #tpu.dot_dimension_numbers<[1], [0], [0], [1], [0, 0, 1, 1], [], []>} : vector<8x128xf32>, vector<128x128xf32>, vector<8x128xf32> -> vector<8x128xf32>
    %313 = vector.broadcast %7 : vector<1x128xf32> to vector<8x128xf32>
    %314 = arith.addf %312, %313 : vector<8x128xf32>
    %cst_174 = arith.constant -5.000000e+00 : f32
    %cst_175 = arith.constant 5.000000e+00 : f32
    %315 = vector.broadcast %cst_174 : f32 to vector<8x128xf32>
    %316 = arith.maximumf %315, %314 : vector<8x128xf32>
    %317 = vector.broadcast %cst_175 : f32 to vector<8x128xf32>
    %318 = arith.minimumf %317, %316 : vector<8x128xf32>
    %cst_176 = arith.constant dense<0.000000e+00> : vector<8x4xf32>
    %319 = tpu.matmul %318, %8, %cst_176 {dimension_numbers = #tpu.dot_dimension_numbers<[1], [0], [0], [1], [0, 0, 1, 1], [], []>} : vector<8x128xf32>, vector<128x4xf32>, vector<8x4xf32> -> vector<8x4xf32>
    %320 = vector.broadcast %9 : vector<1x4xf32> to vector<8x4xf32>
    %321 = arith.addf %319, %320 : vector<8x4xf32>
    %c1_177 = arith.constant 1 : index
    %c0_178 = arith.constant 0 : index
    %c56_179 = arith.constant 56 : index
    %322 = vector.load %arg8[%c1_177, %c0_178, %c56_179] : memref<2x8x128xf32, #tpu.memory_space<vmem>>, vector<1x8x4xf32>
    %323 = vector.shape_cast %322 : vector<1x8x4xf32> to vector<8x4xf32>
    %324 = vector.shape_cast %321 : vector<8x4xf32> to vector<1x8x4xf32>
    tpu.vector_store %arg8[%c1_177, %c0_178, %c56_179], %324 {strides = array<i32>} : memref<2x8x128xf32, #tpu.memory_space<vmem>>, vector<1x8x4xf32>,
    %c0_180 = arith.constant 0 : index
    %c60 = arith.constant 60 : index
    %325 = vector.load %arg1[%c0_180, %c60] : memref<8x128xf32, #tpu.memory_space<vmem>>, vector<8x4xf32>
    %cst_181 = arith.constant dense<0.000000e+00> : vector<8x128xf32>
    %326 = tpu.matmul %325, %4, %cst_181 {dimension_numbers = #tpu.dot_dimension_numbers<[1], [0], [0], [1], [0, 0, 1, 1], [], []>} : vector<8x4xf32>, vector<4x128xf32>, vector<8x128xf32> -> vector<8x128xf32>
    %327 = vector.broadcast %5 : vector<1x128xf32> to vector<8x128xf32>
    %328 = arith.addf %326, %327 : vector<8x128xf32>
    %cst_182 = arith.constant -5.000000e+00 : f32
    %cst_183 = arith.constant 5.000000e+00 : f32
    %329 = vector.broadcast %cst_182 : f32 to vector<8x128xf32>
    %330 = arith.maximumf %329, %328 : vector<8x128xf32>
    %331 = vector.broadcast %cst_183 : f32 to vector<8x128xf32>
    %332 = arith.minimumf %331, %330 : vector<8x128xf32>
    %cst_184 = arith.constant dense<0.000000e+00> : vector<8x128xf32>
    %333 = tpu.matmul %332, %6, %cst_184 {dimension_numbers = #tpu.dot_dimension_numbers<[1], [0], [0], [1], [0, 0, 1, 1], [], []>} : vector<8x128xf32>, vector<128x128xf32>, vector<8x128xf32> -> vector<8x128xf32>
    %334 = vector.broadcast %7 : vector<1x128xf32> to vector<8x128xf32>
    %335 = arith.addf %333, %334 : vector<8x128xf32>
    %cst_185 = arith.constant -5.000000e+00 : f32
    %cst_186 = arith.constant 5.000000e+00 : f32
    %336 = vector.broadcast %cst_185 : f32 to vector<8x128xf32>
    %337 = arith.maximumf %336, %335 : vector<8x128xf32>
    %338 = vector.broadcast %cst_186 : f32 to vector<8x128xf32>
    %339 = arith.minimumf %338, %337 : vector<8x128xf32>
    %cst_187 = arith.constant dense<0.000000e+00> : vector<8x4xf32>
    %340 = tpu.matmul %339, %8, %cst_187 {dimension_numbers = #tpu.dot_dimension_numbers<[1], [0], [0], [1], [0, 0, 1, 1], [], []>} : vector<8x128xf32>, vector<128x4xf32>, vector<8x4xf32> -> vector<8x4xf32>
    %341 = vector.broadcast %9 : vector<1x4xf32> to vector<8x4xf32>
    %342 = arith.addf %340, %341 : vector<8x4xf32>
    %c1_188 = arith.constant 1 : index
    %c0_189 = arith.constant 0 : index
    %c60_190 = arith.constant 60 : index
    %343 = vector.load %arg8[%c1_188, %c0_189, %c60_190] : memref<2x8x128xf32, #tpu.memory_space<vmem>>, vector<1x8x4xf32>
    %344 = vector.shape_cast %343 : vector<1x8x4xf32> to vector<8x4xf32>
    %345 = vector.shape_cast %342 : vector<8x4xf32> to vector<1x8x4xf32>
    tpu.vector_store %arg8[%c1_188, %c0_189, %c60_190], %345 {strides = array<i32>} : memref<2x8x128xf32, #tpu.memory_space<vmem>>, vector<1x8x4xf32>,
    %c0_191 = arith.constant 0 : index
    %c64 = arith.constant 64 : index
    %346 = vector.load %arg1[%c0_191, %c64] : memref<8x128xf32, #tpu.memory_space<vmem>>, vector<8x4xf32>
    %cst_192 = arith.constant dense<0.000000e+00> : vector<8x128xf32>
    %347 = tpu.matmul %346, %4, %cst_192 {dimension_numbers = #tpu.dot_dimension_numbers<[1], [0], [0], [1], [0, 0, 1, 1], [], []>} : vector<8x4xf32>, vector<4x128xf32>, vector<8x128xf32> -> vector<8x128xf32>
    %348 = vector.broadcast %5 : vector<1x128xf32> to vector<8x128xf32>
    %349 = arith.addf %347, %348 : vector<8x128xf32>
    %cst_193 = arith.constant -5.000000e+00 : f32
    %cst_194 = arith.constant 5.000000e+00 : f32
    %350 = vector.broadcast %cst_193 : f32 to vector<8x128xf32>
    %351 = arith.maximumf %350, %349 : vector<8x128xf32>
    %352 = vector.broadcast %cst_194 : f32 to vector<8x128xf32>
    %353 = arith.minimumf %352, %351 : vector<8x128xf32>
    %cst_195 = arith.constant dense<0.000000e+00> : vector<8x128xf32>
    %354 = tpu.matmul %353, %6, %cst_195 {dimension_numbers = #tpu.dot_dimension_numbers<[1], [0], [0], [1], [0, 0, 1, 1], [], []>} : vector<8x128xf32>, vector<128x128xf32>, vector<8x128xf32> -> vector<8x128xf32>
    %355 = vector.broadcast %7 : vector<1x128xf32> to vector<8x128xf32>
    %356 = arith.addf %354, %355 : vector<8x128xf32>
    %cst_196 = arith.constant -5.000000e+00 : f32
    %cst_197 = arith.constant 5.000000e+00 : f32
    %357 = vector.broadcast %cst_196 : f32 to vector<8x128xf32>
    %358 = arith.maximumf %357, %356 : vector<8x128xf32>
    %359 = vector.broadcast %cst_197 : f32 to vector<8x128xf32>
    %360 = arith.minimumf %359, %358 : vector<8x128xf32>
    %cst_198 = arith.constant dense<0.000000e+00> : vector<8x4xf32>
    %361 = tpu.matmul %360, %8, %cst_198 {dimension_numbers = #tpu.dot_dimension_numbers<[1], [0], [0], [1], [0, 0, 1, 1], [], []>} : vector<8x128xf32>, vector<128x4xf32>, vector<8x4xf32> -> vector<8x4xf32>
    %362 = vector.broadcast %9 : vector<1x4xf32> to vector<8x4xf32>
    %363 = arith.addf %361, %362 : vector<8x4xf32>
    %c1_199 = arith.constant 1 : index
    %c0_200 = arith.constant 0 : index
    %c64_201 = arith.constant 64 : index
    %364 = vector.load %arg8[%c1_199, %c0_200, %c64_201] : memref<2x8x128xf32, #tpu.memory_space<vmem>>, vector<1x8x4xf32>
    %365 = vector.shape_cast %364 : vector<1x8x4xf32> to vector<8x4xf32>
    %366 = vector.shape_cast %363 : vector<8x4xf32> to vector<1x8x4xf32>
    tpu.vector_store %arg8[%c1_199, %c0_200, %c64_201], %366 {strides = array<i32>} : memref<2x8x128xf32, #tpu.memory_space<vmem>>, vector<1x8x4xf32>,
    %c0_202 = arith.constant 0 : index
    %c68 = arith.constant 68 : index
    %367 = vector.load %arg1[%c0_202, %c68] : memref<8x128xf32, #tpu.memory_space<vmem>>, vector<8x4xf32>
    %cst_203 = arith.constant dense<0.000000e+00> : vector<8x128xf32>
    %368 = tpu.matmul %367, %4, %cst_203 {dimension_numbers = #tpu.dot_dimension_numbers<[1], [0], [0], [1], [0, 0, 1, 1], [], []>} : vector<8x4xf32>, vector<4x128xf32>, vector<8x128xf32> -> vector<8x128xf32>
    %369 = vector.broadcast %5 : vector<1x128xf32> to vector<8x128xf32>
    %370 = arith.addf %368, %369 : vector<8x128xf32>
    %cst_204 = arith.constant -5.000000e+00 : f32
    %cst_205 = arith.constant 5.000000e+00 : f32
    %371 = vector.broadcast %cst_204 : f32 to vector<8x128xf32>
    %372 = arith.maximumf %371, %370 : vector<8x128xf32>
    %373 = vector.broadcast %cst_205 : f32 to vector<8x128xf32>
    %374 = arith.minimumf %373, %372 : vector<8x128xf32>
    %cst_206 = arith.constant dense<0.000000e+00> : vector<8x128xf32>
    %375 = tpu.matmul %374, %6, %cst_206 {dimension_numbers = #tpu.dot_dimension_numbers<[1], [0], [0], [1], [0, 0, 1, 1], [], []>} : vector<8x128xf32>, vector<128x128xf32>, vector<8x128xf32> -> vector<8x128xf32>
    %376 = vector.broadcast %7 : vector<1x128xf32> to vector<8x128xf32>
    %377 = arith.addf %375, %376 : vector<8x128xf32>
    %cst_207 = arith.constant -5.000000e+00 : f32
    %cst_208 = arith.constant 5.000000e+00 : f32
    %378 = vector.broadcast %cst_207 : f32 to vector<8x128xf32>
    %379 = arith.maximumf %378, %377 : vector<8x128xf32>
    %380 = vector.broadcast %cst_208 : f32 to vector<8x128xf32>
    %381 = arith.minimumf %380, %379 : vector<8x128xf32>
    %cst_209 = arith.constant dense<0.000000e+00> : vector<8x4xf32>
    %382 = tpu.matmul %381, %8, %cst_209 {dimension_numbers = #tpu.dot_dimension_numbers<[1], [0], [0], [1], [0, 0, 1, 1], [], []>} : vector<8x128xf32>, vector<128x4xf32>, vector<8x4xf32> -> vector<8x4xf32>
    %383 = vector.broadcast %9 : vector<1x4xf32> to vector<8x4xf32>
    %384 = arith.addf %382, %383 : vector<8x4xf32>
    %c1_210 = arith.constant 1 : index
    %c0_211 = arith.constant 0 : index
    %c68_212 = arith.constant 68 : index
    %385 = vector.load %arg8[%c1_210, %c0_211, %c68_212] : memref<2x8x128xf32, #tpu.memory_space<vmem>>, vector<1x8x4xf32>
    %386 = vector.shape_cast %385 : vector<1x8x4xf32> to vector<8x4xf32>
    %387 = vector.shape_cast %384 : vector<8x4xf32> to vector<1x8x4xf32>
    tpu.vector_store %arg8[%c1_210, %c0_211, %c68_212], %387 {strides = array<i32>} : memref<2x8x128xf32, #tpu.memory_space<vmem>>, vector<1x8x4xf32>,
    %c0_213 = arith.constant 0 : index
    %c72 = arith.constant 72 : index
    %388 = vector.load %arg1[%c0_213, %c72] : memref<8x128xf32, #tpu.memory_space<vmem>>, vector<8x4xf32>
    %cst_214 = arith.constant dense<0.000000e+00> : vector<8x128xf32>
    %389 = tpu.matmul %388, %4, %cst_214 {dimension_numbers = #tpu.dot_dimension_numbers<[1], [0], [0], [1], [0, 0, 1, 1], [], []>} : vector<8x4xf32>, vector<4x128xf32>, vector<8x128xf32> -> vector<8x128xf32>
    %390 = vector.broadcast %5 : vector<1x128xf32> to vector<8x128xf32>
    %391 = arith.addf %389, %390 : vector<8x128xf32>
    %cst_215 = arith.constant -5.000000e+00 : f32
    %cst_216 = arith.constant 5.000000e+00 : f32
    %392 = vector.broadcast %cst_215 : f32 to vector<8x128xf32>
    %393 = arith.maximumf %392, %391 : vector<8x128xf32>
    %394 = vector.broadcast %cst_216 : f32 to vector<8x128xf32>
    %395 = arith.minimumf %394, %393 : vector<8x128xf32>
    %cst_217 = arith.constant dense<0.000000e+00> : vector<8x128xf32>
    %396 = tpu.matmul %395, %6, %cst_217 {dimension_numbers = #tpu.dot_dimension_numbers<[1], [0], [0], [1], [0, 0, 1, 1], [], []>} : vector<8x128xf32>, vector<128x128xf32>, vector<8x128xf32> -> vector<8x128xf32>
    %397 = vector.broadcast %7 : vector<1x128xf32> to vector<8x128xf32>
    %398 = arith.addf %396, %397 : vector<8x128xf32>
    %cst_218 = arith.constant -5.000000e+00 : f32
    %cst_219 = arith.constant 5.000000e+00 : f32
    %399 = vector.broadcast %cst_218 : f32 to vector<8x128xf32>
    %400 = arith.maximumf %399, %398 : vector<8x128xf32>
    %401 = vector.broadcast %cst_219 : f32 to vector<8x128xf32>
    %402 = arith.minimumf %401, %400 : vector<8x128xf32>
    %cst_220 = arith.constant dense<0.000000e+00> : vector<8x4xf32>
    %403 = tpu.matmul %402, %8, %cst_220 {dimension_numbers = #tpu.dot_dimension_numbers<[1], [0], [0], [1], [0, 0, 1, 1], [], []>} : vector<8x128xf32>, vector<128x4xf32>, vector<8x4xf32> -> vector<8x4xf32>
    %404 = vector.broadcast %9 : vector<1x4xf32> to vector<8x4xf32>
    %405 = arith.addf %403, %404 : vector<8x4xf32>
    %c1_221 = arith.constant 1 : index
    %c0_222 = arith.constant 0 : index
    %c72_223 = arith.constant 72 : index
    %406 = vector.load %arg8[%c1_221, %c0_222, %c72_223] : memref<2x8x128xf32, #tpu.memory_space<vmem>>, vector<1x8x4xf32>
    %407 = vector.shape_cast %406 : vector<1x8x4xf32> to vector<8x4xf32>
    %408 = vector.shape_cast %405 : vector<8x4xf32> to vector<1x8x4xf32>
    tpu.vector_store %arg8[%c1_221, %c0_222, %c72_223], %408 {strides = array<i32>} : memref<2x8x128xf32, #tpu.memory_space<vmem>>, vector<1x8x4xf32>,
    %c0_224 = arith.constant 0 : index
    %c76 = arith.constant 76 : index
    %409 = vector.load %arg1[%c0_224, %c76] : memref<8x128xf32, #tpu.memory_space<vmem>>, vector<8x4xf32>
    %cst_225 = arith.constant dense<0.000000e+00> : vector<8x128xf32>
    %410 = tpu.matmul %409, %4, %cst_225 {dimension_numbers = #tpu.dot_dimension_numbers<[1], [0], [0], [1], [0, 0, 1, 1], [], []>} : vector<8x4xf32>, vector<4x128xf32>, vector<8x128xf32> -> vector<8x128xf32>
    %411 = vector.broadcast %5 : vector<1x128xf32> to vector<8x128xf32>
    %412 = arith.addf %410, %411 : vector<8x128xf32>
    %cst_226 = arith.constant -5.000000e+00 : f32
    %cst_227 = arith.constant 5.000000e+00 : f32
    %413 = vector.broadcast %cst_226 : f32 to vector<8x128xf32>
    %414 = arith.maximumf %413, %412 : vector<8x128xf32>
    %415 = vector.broadcast %cst_227 : f32 to vector<8x128xf32>
    %416 = arith.minimumf %415, %414 : vector<8x128xf32>
    %cst_228 = arith.constant dense<0.000000e+00> : vector<8x128xf32>
    %417 = tpu.matmul %416, %6, %cst_228 {dimension_numbers = #tpu.dot_dimension_numbers<[1], [0], [0], [1], [0, 0, 1, 1], [], []>} : vector<8x128xf32>, vector<128x128xf32>, vector<8x128xf32> -> vector<8x128xf32>
    %418 = vector.broadcast %7 : vector<1x128xf32> to vector<8x128xf32>
    %419 = arith.addf %417, %418 : vector<8x128xf32>
    %cst_229 = arith.constant -5.000000e+00 : f32
    %cst_230 = arith.constant 5.000000e+00 : f32
    %420 = vector.broadcast %cst_229 : f32 to vector<8x128xf32>
    %421 = arith.maximumf %420, %419 : vector<8x128xf32>
    %422 = vector.broadcast %cst_230 : f32 to vector<8x128xf32>
    %423 = arith.minimumf %422, %421 : vector<8x128xf32>
    %cst_231 = arith.constant dense<0.000000e+00> : vector<8x4xf32>
    %424 = tpu.matmul %423, %8, %cst_231 {dimension_numbers = #tpu.dot_dimension_numbers<[1], [0], [0], [1], [0, 0, 1, 1], [], []>} : vector<8x128xf32>, vector<128x4xf32>, vector<8x4xf32> -> vector<8x4xf32>
    %425 = vector.broadcast %9 : vector<1x4xf32> to vector<8x4xf32>
    %426 = arith.addf %424, %425 : vector<8x4xf32>
    %c1_232 = arith.constant 1 : index
    %c0_233 = arith.constant 0 : index
    %c76_234 = arith.constant 76 : index
    %427 = vector.load %arg8[%c1_232, %c0_233, %c76_234] : memref<2x8x128xf32, #tpu.memory_space<vmem>>, vector<1x8x4xf32>
    %428 = vector.shape_cast %427 : vector<1x8x4xf32> to vector<8x4xf32>
    %429 = vector.shape_cast %426 : vector<8x4xf32> to vector<1x8x4xf32>
    tpu.vector_store %arg8[%c1_232, %c0_233, %c76_234], %429 {strides = array<i32>} : memref<2x8x128xf32, #tpu.memory_space<vmem>>, vector<1x8x4xf32>,
    %c0_235 = arith.constant 0 : index
    %c80 = arith.constant 80 : index
    %430 = vector.load %arg1[%c0_235, %c80] : memref<8x128xf32, #tpu.memory_space<vmem>>, vector<8x4xf32>
    %cst_236 = arith.constant dense<0.000000e+00> : vector<8x128xf32>
    %431 = tpu.matmul %430, %4, %cst_236 {dimension_numbers = #tpu.dot_dimension_numbers<[1], [0], [0], [1], [0, 0, 1, 1], [], []>} : vector<8x4xf32>, vector<4x128xf32>, vector<8x128xf32> -> vector<8x128xf32>
    %432 = vector.broadcast %5 : vector<1x128xf32> to vector<8x128xf32>
    %433 = arith.addf %431, %432 : vector<8x128xf32>
    %cst_237 = arith.constant -5.000000e+00 : f32
    %cst_238 = arith.constant 5.000000e+00 : f32
    %434 = vector.broadcast %cst_237 : f32 to vector<8x128xf32>
    %435 = arith.maximumf %434, %433 : vector<8x128xf32>
    %436 = vector.broadcast %cst_238 : f32 to vector<8x128xf32>
    %437 = arith.minimumf %436, %435 : vector<8x128xf32>
    %cst_239 = arith.constant dense<0.000000e+00> : vector<8x128xf32>
    %438 = tpu.matmul %437, %6, %cst_239 {dimension_numbers = #tpu.dot_dimension_numbers<[1], [0], [0], [1], [0, 0, 1, 1], [], []>} : vector<8x128xf32>, vector<128x128xf32>, vector<8x128xf32> -> vector<8x128xf32>
    %439 = vector.broadcast %7 : vector<1x128xf32> to vector<8x128xf32>
    %440 = arith.addf %438, %439 : vector<8x128xf32>
    %cst_240 = arith.constant -5.000000e+00 : f32
    %cst_241 = arith.constant 5.000000e+00 : f32
    %441 = vector.broadcast %cst_240 : f32 to vector<8x128xf32>
    %442 = arith.maximumf %441, %440 : vector<8x128xf32>
    %443 = vector.broadcast %cst_241 : f32 to vector<8x128xf32>
    %444 = arith.minimumf %443, %442 : vector<8x128xf32>
    %cst_242 = arith.constant dense<0.000000e+00> : vector<8x4xf32>
    %445 = tpu.matmul %444, %8, %cst_242 {dimension_numbers = #tpu.dot_dimension_numbers<[1], [0], [0], [1], [0, 0, 1, 1], [], []>} : vector<8x128xf32>, vector<128x4xf32>, vector<8x4xf32> -> vector<8x4xf32>
    %446 = vector.broadcast %9 : vector<1x4xf32> to vector<8x4xf32>
    %447 = arith.addf %445, %446 : vector<8x4xf32>
    %c1_243 = arith.constant 1 : index
    %c0_244 = arith.constant 0 : index
    %c80_245 = arith.constant 80 : index
    %448 = vector.load %arg8[%c1_243, %c0_244, %c80_245] : memref<2x8x128xf32, #tpu.memory_space<vmem>>, vector<1x8x4xf32>
    %449 = vector.shape_cast %448 : vector<1x8x4xf32> to vector<8x4xf32>
    %450 = vector.shape_cast %447 : vector<8x4xf32> to vector<1x8x4xf32>
    tpu.vector_store %arg8[%c1_243, %c0_244, %c80_245], %450 {strides = array<i32>} : memref<2x8x128xf32, #tpu.memory_space<vmem>>, vector<1x8x4xf32>,
    %c0_246 = arith.constant 0 : index
    %c84 = arith.constant 84 : index
    %451 = vector.load %arg1[%c0_246, %c84] : memref<8x128xf32, #tpu.memory_space<vmem>>, vector<8x4xf32>
    %cst_247 = arith.constant dense<0.000000e+00> : vector<8x128xf32>
    %452 = tpu.matmul %451, %4, %cst_247 {dimension_numbers = #tpu.dot_dimension_numbers<[1], [0], [0], [1], [0, 0, 1, 1], [], []>} : vector<8x4xf32>, vector<4x128xf32>, vector<8x128xf32> -> vector<8x128xf32>
    %453 = vector.broadcast %5 : vector<1x128xf32> to vector<8x128xf32>
    %454 = arith.addf %452, %453 : vector<8x128xf32>
    %cst_248 = arith.constant -5.000000e+00 : f32
    %cst_249 = arith.constant 5.000000e+00 : f32
    %455 = vector.broadcast %cst_248 : f32 to vector<8x128xf32>
    %456 = arith.maximumf %455, %454 : vector<8x128xf32>
    %457 = vector.broadcast %cst_249 : f32 to vector<8x128xf32>
    %458 = arith.minimumf %457, %456 : vector<8x128xf32>
    %cst_250 = arith.constant dense<0.000000e+00> : vector<8x128xf32>
    %459 = tpu.matmul %458, %6, %cst_250 {dimension_numbers = #tpu.dot_dimension_numbers<[1], [0], [0], [1], [0, 0, 1, 1], [], []>} : vector<8x128xf32>, vector<128x128xf32>, vector<8x128xf32> -> vector<8x128xf32>
    %460 = vector.broadcast %7 : vector<1x128xf32> to vector<8x128xf32>
    %461 = arith.addf %459, %460 : vector<8x128xf32>
    %cst_251 = arith.constant -5.000000e+00 : f32
    %cst_252 = arith.constant 5.000000e+00 : f32
    %462 = vector.broadcast %cst_251 : f32 to vector<8x128xf32>
    %463 = arith.maximumf %462, %461 : vector<8x128xf32>
    %464 = vector.broadcast %cst_252 : f32 to vector<8x128xf32>
    %465 = arith.minimumf %464, %463 : vector<8x128xf32>
    %cst_253 = arith.constant dense<0.000000e+00> : vector<8x4xf32>
    %466 = tpu.matmul %465, %8, %cst_253 {dimension_numbers = #tpu.dot_dimension_numbers<[1], [0], [0], [1], [0, 0, 1, 1], [], []>} : vector<8x128xf32>, vector<128x4xf32>, vector<8x4xf32> -> vector<8x4xf32>
    %467 = vector.broadcast %9 : vector<1x4xf32> to vector<8x4xf32>
    %468 = arith.addf %466, %467 : vector<8x4xf32>
    %c1_254 = arith.constant 1 : index
    %c0_255 = arith.constant 0 : index
    %c84_256 = arith.constant 84 : index
    %469 = vector.load %arg8[%c1_254, %c0_255, %c84_256] : memref<2x8x128xf32, #tpu.memory_space<vmem>>, vector<1x8x4xf32>
    %470 = vector.shape_cast %469 : vector<1x8x4xf32> to vector<8x4xf32>
    %471 = vector.shape_cast %468 : vector<8x4xf32> to vector<1x8x4xf32>
    tpu.vector_store %arg8[%c1_254, %c0_255, %c84_256], %471 {strides = array<i32>} : memref<2x8x128xf32, #tpu.memory_space<vmem>>, vector<1x8x4xf32>,
    %c0_257 = arith.constant 0 : index
    %c88 = arith.constant 88 : index
    %472 = vector.load %arg1[%c0_257, %c88] : memref<8x128xf32, #tpu.memory_space<vmem>>, vector<8x4xf32>
    %cst_258 = arith.constant dense<0.000000e+00> : vector<8x128xf32>
    %473 = tpu.matmul %472, %4, %cst_258 {dimension_numbers = #tpu.dot_dimension_numbers<[1], [0], [0], [1], [0, 0, 1, 1], [], []>} : vector<8x4xf32>, vector<4x128xf32>, vector<8x128xf32> -> vector<8x128xf32>
    %474 = vector.broadcast %5 : vector<1x128xf32> to vector<8x128xf32>
    %475 = arith.addf %473, %474 : vector<8x128xf32>
    %cst_259 = arith.constant -5.000000e+00 : f32
    %cst_260 = arith.constant 5.000000e+00 : f32
    %476 = vector.broadcast %cst_259 : f32 to vector<8x128xf32>
    %477 = arith.maximumf %476, %475 : vector<8x128xf32>
    %478 = vector.broadcast %cst_260 : f32 to vector<8x128xf32>
    %479 = arith.minimumf %478, %477 : vector<8x128xf32>
    %cst_261 = arith.constant dense<0.000000e+00> : vector<8x128xf32>
    %480 = tpu.matmul %479, %6, %cst_261 {dimension_numbers = #tpu.dot_dimension_numbers<[1], [0], [0], [1], [0, 0, 1, 1], [], []>} : vector<8x128xf32>, vector<128x128xf32>, vector<8x128xf32> -> vector<8x128xf32>
    %481 = vector.broadcast %7 : vector<1x128xf32> to vector<8x128xf32>
    %482 = arith.addf %480, %481 : vector<8x128xf32>
    %cst_262 = arith.constant -5.000000e+00 : f32
    %cst_263 = arith.constant 5.000000e+00 : f32
    %483 = vector.broadcast %cst_262 : f32 to vector<8x128xf32>
    %484 = arith.maximumf %483, %482 : vector<8x128xf32>
    %485 = vector.broadcast %cst_263 : f32 to vector<8x128xf32>
    %486 = arith.minimumf %485, %484 : vector<8x128xf32>
    %cst_264 = arith.constant dense<0.000000e+00> : vector<8x4xf32>
    %487 = tpu.matmul %486, %8, %cst_264 {dimension_numbers = #tpu.dot_dimension_numbers<[1], [0], [0], [1], [0, 0, 1, 1], [], []>} : vector<8x128xf32>, vector<128x4xf32>, vector<8x4xf32> -> vector<8x4xf32>
    %488 = vector.broadcast %9 : vector<1x4xf32> to vector<8x4xf32>
    %489 = arith.addf %487, %488 : vector<8x4xf32>
    %c1_265 = arith.constant 1 : index
    %c0_266 = arith.constant 0 : index
    %c88_267 = arith.constant 88 : index
    %490 = vector.load %arg8[%c1_265, %c0_266, %c88_267] : memref<2x8x128xf32, #tpu.memory_space<vmem>>, vector<1x8x4xf32>
    %491 = vector.shape_cast %490 : vector<1x8x4xf32> to vector<8x4xf32>
    %492 = vector.shape_cast %489 : vector<8x4xf32> to vector<1x8x4xf32>
    tpu.vector_store %arg8[%c1_265, %c0_266, %c88_267], %492 {strides = array<i32>} : memref<2x8x128xf32, #tpu.memory_space<vmem>>, vector<1x8x4xf32>,
    %c0_268 = arith.constant 0 : index
    %c92 = arith.constant 92 : index
    %493 = vector.load %arg1[%c0_268, %c92] : memref<8x128xf32, #tpu.memory_space<vmem>>, vector<8x4xf32>
    %cst_269 = arith.constant dense<0.000000e+00> : vector<8x128xf32>
    %494 = tpu.matmul %493, %4, %cst_269 {dimension_numbers = #tpu.dot_dimension_numbers<[1], [0], [0], [1], [0, 0, 1, 1], [], []>} : vector<8x4xf32>, vector<4x128xf32>, vector<8x128xf32> -> vector<8x128xf32>
    %495 = vector.broadcast %5 : vector<1x128xf32> to vector<8x128xf32>
    %496 = arith.addf %494, %495 : vector<8x128xf32>
    %cst_270 = arith.constant -5.000000e+00 : f32
    %cst_271 = arith.constant 5.000000e+00 : f32
    %497 = vector.broadcast %cst_270 : f32 to vector<8x128xf32>
    %498 = arith.maximumf %497, %496 : vector<8x128xf32>
    %499 = vector.broadcast %cst_271 : f32 to vector<8x128xf32>
    %500 = arith.minimumf %499, %498 : vector<8x128xf32>
    %cst_272 = arith.constant dense<0.000000e+00> : vector<8x128xf32>
    %501 = tpu.matmul %500, %6, %cst_272 {dimension_numbers = #tpu.dot_dimension_numbers<[1], [0], [0], [1], [0, 0, 1, 1], [], []>} : vector<8x128xf32>, vector<128x128xf32>, vector<8x128xf32> -> vector<8x128xf32>
    %502 = vector.broadcast %7 : vector<1x128xf32> to vector<8x128xf32>
    %503 = arith.addf %501, %502 : vector<8x128xf32>
    %cst_273 = arith.constant -5.000000e+00 : f32
    %cst_274 = arith.constant 5.000000e+00 : f32
    %504 = vector.broadcast %cst_273 : f32 to vector<8x128xf32>
    %505 = arith.maximumf %504, %503 : vector<8x128xf32>
    %506 = vector.broadcast %cst_274 : f32 to vector<8x128xf32>
    %507 = arith.minimumf %506, %505 : vector<8x128xf32>
    %cst_275 = arith.constant dense<0.000000e+00> : vector<8x4xf32>
    %508 = tpu.matmul %507, %8, %cst_275 {dimension_numbers = #tpu.dot_dimension_numbers<[1], [0], [0], [1], [0, 0, 1, 1], [], []>} : vector<8x128xf32>, vector<128x4xf32>, vector<8x4xf32> -> vector<8x4xf32>
    %509 = vector.broadcast %9 : vector<1x4xf32> to vector<8x4xf32>
    %510 = arith.addf %508, %509 : vector<8x4xf32>
    %c1_276 = arith.constant 1 : index
    %c0_277 = arith.constant 0 : index
    %c92_278 = arith.constant 92 : index
    %511 = vector.load %arg8[%c1_276, %c0_277, %c92_278] : memref<2x8x128xf32, #tpu.memory_space<vmem>>, vector<1x8x4xf32>
    %512 = vector.shape_cast %511 : vector<1x8x4xf32> to vector<8x4xf32>
    %513 = vector.shape_cast %510 : vector<8x4xf32> to vector<1x8x4xf32>
    tpu.vector_store %arg8[%c1_276, %c0_277, %c92_278], %513 {strides = array<i32>} : memref<2x8x128xf32, #tpu.memory_space<vmem>>, vector<1x8x4xf32>,
    %c0_279 = arith.constant 0 : index
    %c96 = arith.constant 96 : index
    %514 = vector.load %arg1[%c0_279, %c96] : memref<8x128xf32, #tpu.memory_space<vmem>>, vector<8x4xf32>
    %cst_280 = arith.constant dense<0.000000e+00> : vector<8x128xf32>
    %515 = tpu.matmul %514, %4, %cst_280 {dimension_numbers = #tpu.dot_dimension_numbers<[1], [0], [0], [1], [0, 0, 1, 1], [], []>} : vector<8x4xf32>, vector<4x128xf32>, vector<8x128xf32> -> vector<8x128xf32>
    %516 = vector.broadcast %5 : vector<1x128xf32> to vector<8x128xf32>
    %517 = arith.addf %515, %516 : vector<8x128xf32>
    %cst_281 = arith.constant -5.000000e+00 : f32
    %cst_282 = arith.constant 5.000000e+00 : f32
    %518 = vector.broadcast %cst_281 : f32 to vector<8x128xf32>
    %519 = arith.maximumf %518, %517 : vector<8x128xf32>
    %520 = vector.broadcast %cst_282 : f32 to vector<8x128xf32>
    %521 = arith.minimumf %520, %519 : vector<8x128xf32>
    %cst_283 = arith.constant dense<0.000000e+00> : vector<8x128xf32>
    %522 = tpu.matmul %521, %6, %cst_283 {dimension_numbers = #tpu.dot_dimension_numbers<[1], [0], [0], [1], [0, 0, 1, 1], [], []>} : vector<8x128xf32>, vector<128x128xf32>, vector<8x128xf32> -> vector<8x128xf32>
    %523 = vector.broadcast %7 : vector<1x128xf32> to vector<8x128xf32>
    %524 = arith.addf %522, %523 : vector<8x128xf32>
    %cst_284 = arith.constant -5.000000e+00 : f32
    %cst_285 = arith.constant 5.000000e+00 : f32
    %525 = vector.broadcast %cst_284 : f32 to vector<8x128xf32>
    %526 = arith.maximumf %525, %524 : vector<8x128xf32>
    %527 = vector.broadcast %cst_285 : f32 to vector<8x128xf32>
    %528 = arith.minimumf %527, %526 : vector<8x128xf32>
    %cst_286 = arith.constant dense<0.000000e+00> : vector<8x4xf32>
    %529 = tpu.matmul %528, %8, %cst_286 {dimension_numbers = #tpu.dot_dimension_numbers<[1], [0], [0], [1], [0, 0, 1, 1], [], []>} : vector<8x128xf32>, vector<128x4xf32>, vector<8x4xf32> -> vector<8x4xf32>
    %530 = vector.broadcast %9 : vector<1x4xf32> to vector<8x4xf32>
    %531 = arith.addf %529, %530 : vector<8x4xf32>
    %c1_287 = arith.constant 1 : index
    %c0_288 = arith.constant 0 : index
    %c96_289 = arith.constant 96 : index
    %532 = vector.load %arg8[%c1_287, %c0_288, %c96_289] : memref<2x8x128xf32, #tpu.memory_space<vmem>>, vector<1x8x4xf32>
    %533 = vector.shape_cast %532 : vector<1x8x4xf32> to vector<8x4xf32>
    %534 = vector.shape_cast %531 : vector<8x4xf32> to vector<1x8x4xf32>
    tpu.vector_store %arg8[%c1_287, %c0_288, %c96_289], %534 {strides = array<i32>} : memref<2x8x128xf32, #tpu.memory_space<vmem>>, vector<1x8x4xf32>,
    %c0_290 = arith.constant 0 : index
    %c100 = arith.constant 100 : index
    %535 = vector.load %arg1[%c0_290, %c100] : memref<8x128xf32, #tpu.memory_space<vmem>>, vector<8x4xf32>
    %cst_291 = arith.constant dense<0.000000e+00> : vector<8x128xf32>
    %536 = tpu.matmul %535, %4, %cst_291 {dimension_numbers = #tpu.dot_dimension_numbers<[1], [0], [0], [1], [0, 0, 1, 1], [], []>} : vector<8x4xf32>, vector<4x128xf32>, vector<8x128xf32> -> vector<8x128xf32>
    %537 = vector.broadcast %5 : vector<1x128xf32> to vector<8x128xf32>
    %538 = arith.addf %536, %537 : vector<8x128xf32>
    %cst_292 = arith.constant -5.000000e+00 : f32
    %cst_293 = arith.constant 5.000000e+00 : f32
    %539 = vector.broadcast %cst_292 : f32 to vector<8x128xf32>
    %540 = arith.maximumf %539, %538 : vector<8x128xf32>
    %541 = vector.broadcast %cst_293 : f32 to vector<8x128xf32>
    %542 = arith.minimumf %541, %540 : vector<8x128xf32>
    %cst_294 = arith.constant dense<0.000000e+00> : vector<8x128xf32>
    %543 = tpu.matmul %542, %6, %cst_294 {dimension_numbers = #tpu.dot_dimension_numbers<[1], [0], [0], [1], [0, 0, 1, 1], [], []>} : vector<8x128xf32>, vector<128x128xf32>, vector<8x128xf32> -> vector<8x128xf32>
    %544 = vector.broadcast %7 : vector<1x128xf32> to vector<8x128xf32>
    %545 = arith.addf %543, %544 : vector<8x128xf32>
    %cst_295 = arith.constant -5.000000e+00 : f32
    %cst_296 = arith.constant 5.000000e+00 : f32
    %546 = vector.broadcast %cst_295 : f32 to vector<8x128xf32>
    %547 = arith.maximumf %546, %545 : vector<8x128xf32>
    %548 = vector.broadcast %cst_296 : f32 to vector<8x128xf32>
    %549 = arith.minimumf %548, %547 : vector<8x128xf32>
    %cst_297 = arith.constant dense<0.000000e+00> : vector<8x4xf32>
    %550 = tpu.matmul %549, %8, %cst_297 {dimension_numbers = #tpu.dot_dimension_numbers<[1], [0], [0], [1], [0, 0, 1, 1], [], []>} : vector<8x128xf32>, vector<128x4xf32>, vector<8x4xf32> -> vector<8x4xf32>
    %551 = vector.broadcast %9 : vector<1x4xf32> to vector<8x4xf32>
    %552 = arith.addf %550, %551 : vector<8x4xf32>
    %c1_298 = arith.constant 1 : index
    %c0_299 = arith.constant 0 : index
    %c100_300 = arith.constant 100 : index
    %553 = vector.load %arg8[%c1_298, %c0_299, %c100_300] : memref<2x8x128xf32, #tpu.memory_space<vmem>>, vector<1x8x4xf32>
    %554 = vector.shape_cast %553 : vector<1x8x4xf32> to vector<8x4xf32>
    %555 = vector.shape_cast %552 : vector<8x4xf32> to vector<1x8x4xf32>
    tpu.vector_store %arg8[%c1_298, %c0_299, %c100_300], %555 {strides = array<i32>} : memref<2x8x128xf32, #tpu.memory_space<vmem>>, vector<1x8x4xf32>,
    %c0_301 = arith.constant 0 : index
    %c104 = arith.constant 104 : index
    %556 = vector.load %arg1[%c0_301, %c104] : memref<8x128xf32, #tpu.memory_space<vmem>>, vector<8x4xf32>
    %cst_302 = arith.constant dense<0.000000e+00> : vector<8x128xf32>
    %557 = tpu.matmul %556, %4, %cst_302 {dimension_numbers = #tpu.dot_dimension_numbers<[1], [0], [0], [1], [0, 0, 1, 1], [], []>} : vector<8x4xf32>, vector<4x128xf32>, vector<8x128xf32> -> vector<8x128xf32>
    %558 = vector.broadcast %5 : vector<1x128xf32> to vector<8x128xf32>
    %559 = arith.addf %557, %558 : vector<8x128xf32>
    %cst_303 = arith.constant -5.000000e+00 : f32
    %cst_304 = arith.constant 5.000000e+00 : f32
    %560 = vector.broadcast %cst_303 : f32 to vector<8x128xf32>
    %561 = arith.maximumf %560, %559 : vector<8x128xf32>
    %562 = vector.broadcast %cst_304 : f32 to vector<8x128xf32>
    %563 = arith.minimumf %562, %561 : vector<8x128xf32>
    %cst_305 = arith.constant dense<0.000000e+00> : vector<8x128xf32>
    %564 = tpu.matmul %563, %6, %cst_305 {dimension_numbers = #tpu.dot_dimension_numbers<[1], [0], [0], [1], [0, 0, 1, 1], [], []>} : vector<8x128xf32>, vector<128x128xf32>, vector<8x128xf32> -> vector<8x128xf32>
    %565 = vector.broadcast %7 : vector<1x128xf32> to vector<8x128xf32>
    %566 = arith.addf %564, %565 : vector<8x128xf32>
    %cst_306 = arith.constant -5.000000e+00 : f32
    %cst_307 = arith.constant 5.000000e+00 : f32
    %567 = vector.broadcast %cst_306 : f32 to vector<8x128xf32>
    %568 = arith.maximumf %567, %566 : vector<8x128xf32>
    %569 = vector.broadcast %cst_307 : f32 to vector<8x128xf32>
    %570 = arith.minimumf %569, %568 : vector<8x128xf32>
    %cst_308 = arith.constant dense<0.000000e+00> : vector<8x4xf32>
    %571 = tpu.matmul %570, %8, %cst_308 {dimension_numbers = #tpu.dot_dimension_numbers<[1], [0], [0], [1], [0, 0, 1, 1], [], []>} : vector<8x128xf32>, vector<128x4xf32>, vector<8x4xf32> -> vector<8x4xf32>
    %572 = vector.broadcast %9 : vector<1x4xf32> to vector<8x4xf32>
    %573 = arith.addf %571, %572 : vector<8x4xf32>
    %c1_309 = arith.constant 1 : index
    %c0_310 = arith.constant 0 : index
    %c104_311 = arith.constant 104 : index
    %574 = vector.load %arg8[%c1_309, %c0_310, %c104_311] : memref<2x8x128xf32, #tpu.memory_space<vmem>>, vector<1x8x4xf32>
    %575 = vector.shape_cast %574 : vector<1x8x4xf32> to vector<8x4xf32>
    %576 = vector.shape_cast %573 : vector<8x4xf32> to vector<1x8x4xf32>
    tpu.vector_store %arg8[%c1_309, %c0_310, %c104_311], %576 {strides = array<i32>} : memref<2x8x128xf32, #tpu.memory_space<vmem>>, vector<1x8x4xf32>,
    %c0_312 = arith.constant 0 : index
    %c108 = arith.constant 108 : index
    %577 = vector.load %arg1[%c0_312, %c108] : memref<8x128xf32, #tpu.memory_space<vmem>>, vector<8x4xf32>
    %cst_313 = arith.constant dense<0.000000e+00> : vector<8x128xf32>
    %578 = tpu.matmul %577, %4, %cst_313 {dimension_numbers = #tpu.dot_dimension_numbers<[1], [0], [0], [1], [0, 0, 1, 1], [], []>} : vector<8x4xf32>, vector<4x128xf32>, vector<8x128xf32> -> vector<8x128xf32>
    %579 = vector.broadcast %5 : vector<1x128xf32> to vector<8x128xf32>
    %580 = arith.addf %578, %579 : vector<8x128xf32>
    %cst_314 = arith.constant -5.000000e+00 : f32
    %cst_315 = arith.constant 5.000000e+00 : f32
    %581 = vector.broadcast %cst_314 : f32 to vector<8x128xf32>
    %582 = arith.maximumf %581, %580 : vector<8x128xf32>
    %583 = vector.broadcast %cst_315 : f32 to vector<8x128xf32>
    %584 = arith.minimumf %583, %582 : vector<8x128xf32>
    %cst_316 = arith.constant dense<0.000000e+00> : vector<8x128xf32>
    %585 = tpu.matmul %584, %6, %cst_316 {dimension_numbers = #tpu.dot_dimension_numbers<[1], [0], [0], [1], [0, 0, 1, 1], [], []>} : vector<8x128xf32>, vector<128x128xf32>, vector<8x128xf32> -> vector<8x128xf32>
    %586 = vector.broadcast %7 : vector<1x128xf32> to vector<8x128xf32>
    %587 = arith.addf %585, %586 : vector<8x128xf32>
    %cst_317 = arith.constant -5.000000e+00 : f32
    %cst_318 = arith.constant 5.000000e+00 : f32
    %588 = vector.broadcast %cst_317 : f32 to vector<8x128xf32>
    %589 = arith.maximumf %588, %587 : vector<8x128xf32>
    %590 = vector.broadcast %cst_318 : f32 to vector<8x128xf32>
    %591 = arith.minimumf %590, %589 : vector<8x128xf32>
    %cst_319 = arith.constant dense<0.000000e+00> : vector<8x4xf32>
    %592 = tpu.matmul %591, %8, %cst_319 {dimension_numbers = #tpu.dot_dimension_numbers<[1], [0], [0], [1], [0, 0, 1, 1], [], []>} : vector<8x128xf32>, vector<128x4xf32>, vector<8x4xf32> -> vector<8x4xf32>
    %593 = vector.broadcast %9 : vector<1x4xf32> to vector<8x4xf32>
    %594 = arith.addf %592, %593 : vector<8x4xf32>
    %c1_320 = arith.constant 1 : index
    %c0_321 = arith.constant 0 : index
    %c108_322 = arith.constant 108 : index
    %595 = vector.load %arg8[%c1_320, %c0_321, %c108_322] : memref<2x8x128xf32, #tpu.memory_space<vmem>>, vector<1x8x4xf32>
    %596 = vector.shape_cast %595 : vector<1x8x4xf32> to vector<8x4xf32>
    %597 = vector.shape_cast %594 : vector<8x4xf32> to vector<1x8x4xf32>
    tpu.vector_store %arg8[%c1_320, %c0_321, %c108_322], %597 {strides = array<i32>} : memref<2x8x128xf32, #tpu.memory_space<vmem>>, vector<1x8x4xf32>,
    %c0_323 = arith.constant 0 : index
    %c112 = arith.constant 112 : index
    %598 = vector.load %arg1[%c0_323, %c112] : memref<8x128xf32, #tpu.memory_space<vmem>>, vector<8x4xf32>
    %cst_324 = arith.constant dense<0.000000e+00> : vector<8x128xf32>
    %599 = tpu.matmul %598, %4, %cst_324 {dimension_numbers = #tpu.dot_dimension_numbers<[1], [0], [0], [1], [0, 0, 1, 1], [], []>} : vector<8x4xf32>, vector<4x128xf32>, vector<8x128xf32> -> vector<8x128xf32>
    %600 = vector.broadcast %5 : vector<1x128xf32> to vector<8x128xf32>
    %601 = arith.addf %599, %600 : vector<8x128xf32>
    %cst_325 = arith.constant -5.000000e+00 : f32
    %cst_326 = arith.constant 5.000000e+00 : f32
    %602 = vector.broadcast %cst_325 : f32 to vector<8x128xf32>
    %603 = arith.maximumf %602, %601 : vector<8x128xf32>
    %604 = vector.broadcast %cst_326 : f32 to vector<8x128xf32>
    %605 = arith.minimumf %604, %603 : vector<8x128xf32>
    %cst_327 = arith.constant dense<0.000000e+00> : vector<8x128xf32>
    %606 = tpu.matmul %605, %6, %cst_327 {dimension_numbers = #tpu.dot_dimension_numbers<[1], [0], [0], [1], [0, 0, 1, 1], [], []>} : vector<8x128xf32>, vector<128x128xf32>, vector<8x128xf32> -> vector<8x128xf32>
    %607 = vector.broadcast %7 : vector<1x128xf32> to vector<8x128xf32>
    %608 = arith.addf %606, %607 : vector<8x128xf32>
    %cst_328 = arith.constant -5.000000e+00 : f32
    %cst_329 = arith.constant 5.000000e+00 : f32
    %609 = vector.broadcast %cst_328 : f32 to vector<8x128xf32>
    %610 = arith.maximumf %609, %608 : vector<8x128xf32>
    %611 = vector.broadcast %cst_329 : f32 to vector<8x128xf32>
    %612 = arith.minimumf %611, %610 : vector<8x128xf32>
    %cst_330 = arith.constant dense<0.000000e+00> : vector<8x4xf32>
    %613 = tpu.matmul %612, %8, %cst_330 {dimension_numbers = #tpu.dot_dimension_numbers<[1], [0], [0], [1], [0, 0, 1, 1], [], []>} : vector<8x128xf32>, vector<128x4xf32>, vector<8x4xf32> -> vector<8x4xf32>
    %614 = vector.broadcast %9 : vector<1x4xf32> to vector<8x4xf32>
    %615 = arith.addf %613, %614 : vector<8x4xf32>
    %c1_331 = arith.constant 1 : index
    %c0_332 = arith.constant 0 : index
    %c112_333 = arith.constant 112 : index
    %616 = vector.load %arg8[%c1_331, %c0_332, %c112_333] : memref<2x8x128xf32, #tpu.memory_space<vmem>>, vector<1x8x4xf32>
    %617 = vector.shape_cast %616 : vector<1x8x4xf32> to vector<8x4xf32>
    %618 = vector.shape_cast %615 : vector<8x4xf32> to vector<1x8x4xf32>
    tpu.vector_store %arg8[%c1_331, %c0_332, %c112_333], %618 {strides = array<i32>} : memref<2x8x128xf32, #tpu.memory_space<vmem>>, vector<1x8x4xf32>,
    %c0_334 = arith.constant 0 : index
    %c116 = arith.constant 116 : index
    %619 = vector.load %arg1[%c0_334, %c116] : memref<8x128xf32, #tpu.memory_space<vmem>>, vector<8x4xf32>
    %cst_335 = arith.constant dense<0.000000e+00> : vector<8x128xf32>
    %620 = tpu.matmul %619, %4, %cst_335 {dimension_numbers = #tpu.dot_dimension_numbers<[1], [0], [0], [1], [0, 0, 1, 1], [], []>} : vector<8x4xf32>, vector<4x128xf32>, vector<8x128xf32> -> vector<8x128xf32>
    %621 = vector.broadcast %5 : vector<1x128xf32> to vector<8x128xf32>
    %622 = arith.addf %620, %621 : vector<8x128xf32>
    %cst_336 = arith.constant -5.000000e+00 : f32
    %cst_337 = arith.constant 5.000000e+00 : f32
    %623 = vector.broadcast %cst_336 : f32 to vector<8x128xf32>
    %624 = arith.maximumf %623, %622 : vector<8x128xf32>
    %625 = vector.broadcast %cst_337 : f32 to vector<8x128xf32>
    %626 = arith.minimumf %625, %624 : vector<8x128xf32>
    %cst_338 = arith.constant dense<0.000000e+00> : vector<8x128xf32>
    %627 = tpu.matmul %626, %6, %cst_338 {dimension_numbers = #tpu.dot_dimension_numbers<[1], [0], [0], [1], [0, 0, 1, 1], [], []>} : vector<8x128xf32>, vector<128x128xf32>, vector<8x128xf32> -> vector<8x128xf32>
    %628 = vector.broadcast %7 : vector<1x128xf32> to vector<8x128xf32>
    %629 = arith.addf %627, %628 : vector<8x128xf32>
    %cst_339 = arith.constant -5.000000e+00 : f32
    %cst_340 = arith.constant 5.000000e+00 : f32
    %630 = vector.broadcast %cst_339 : f32 to vector<8x128xf32>
    %631 = arith.maximumf %630, %629 : vector<8x128xf32>
    %632 = vector.broadcast %cst_340 : f32 to vector<8x128xf32>
    %633 = arith.minimumf %632, %631 : vector<8x128xf32>
    %cst_341 = arith.constant dense<0.000000e+00> : vector<8x4xf32>
    %634 = tpu.matmul %633, %8, %cst_341 {dimension_numbers = #tpu.dot_dimension_numbers<[1], [0], [0], [1], [0, 0, 1, 1], [], []>} : vector<8x128xf32>, vector<128x4xf32>, vector<8x4xf32> -> vector<8x4xf32>
    %635 = vector.broadcast %9 : vector<1x4xf32> to vector<8x4xf32>
    %636 = arith.addf %634, %635 : vector<8x4xf32>
    %c1_342 = arith.constant 1 : index
    %c0_343 = arith.constant 0 : index
    %c116_344 = arith.constant 116 : index
    %637 = vector.load %arg8[%c1_342, %c0_343, %c116_344] : memref<2x8x128xf32, #tpu.memory_space<vmem>>, vector<1x8x4xf32>
    %638 = vector.shape_cast %637 : vector<1x8x4xf32> to vector<8x4xf32>
    %639 = vector.shape_cast %636 : vector<8x4xf32> to vector<1x8x4xf32>
    tpu.vector_store %arg8[%c1_342, %c0_343, %c116_344], %639 {strides = array<i32>} : memref<2x8x128xf32, #tpu.memory_space<vmem>>, vector<1x8x4xf32>,
    %c0_345 = arith.constant 0 : index
    %c120 = arith.constant 120 : index
    %640 = vector.load %arg1[%c0_345, %c120] : memref<8x128xf32, #tpu.memory_space<vmem>>, vector<8x4xf32>
    %cst_346 = arith.constant dense<0.000000e+00> : vector<8x128xf32>
    %641 = tpu.matmul %640, %4, %cst_346 {dimension_numbers = #tpu.dot_dimension_numbers<[1], [0], [0], [1], [0, 0, 1, 1], [], []>} : vector<8x4xf32>, vector<4x128xf32>, vector<8x128xf32> -> vector<8x128xf32>
    %642 = vector.broadcast %5 : vector<1x128xf32> to vector<8x128xf32>
    %643 = arith.addf %641, %642 : vector<8x128xf32>
    %cst_347 = arith.constant -5.000000e+00 : f32
    %cst_348 = arith.constant 5.000000e+00 : f32
    %644 = vector.broadcast %cst_347 : f32 to vector<8x128xf32>
    %645 = arith.maximumf %644, %643 : vector<8x128xf32>
    %646 = vector.broadcast %cst_348 : f32 to vector<8x128xf32>
    %647 = arith.minimumf %646, %645 : vector<8x128xf32>
    %cst_349 = arith.constant dense<0.000000e+00> : vector<8x128xf32>
    %648 = tpu.matmul %647, %6, %cst_349 {dimension_numbers = #tpu.dot_dimension_numbers<[1], [0], [0], [1], [0, 0, 1, 1], [], []>} : vector<8x128xf32>, vector<128x128xf32>, vector<8x128xf32> -> vector<8x128xf32>
    %649 = vector.broadcast %7 : vector<1x128xf32> to vector<8x128xf32>
    %650 = arith.addf %648, %649 : vector<8x128xf32>
    %cst_350 = arith.constant -5.000000e+00 : f32
    %cst_351 = arith.constant 5.000000e+00 : f32
    %651 = vector.broadcast %cst_350 : f32 to vector<8x128xf32>
    %652 = arith.maximumf %651, %650 : vector<8x128xf32>
    %653 = vector.broadcast %cst_351 : f32 to vector<8x128xf32>
    %654 = arith.minimumf %653, %652 : vector<8x128xf32>
    %cst_352 = arith.constant dense<0.000000e+00> : vector<8x4xf32>
    %655 = tpu.matmul %654, %8, %cst_352 {dimension_numbers = #tpu.dot_dimension_numbers<[1], [0], [0], [1], [0, 0, 1, 1], [], []>} : vector<8x128xf32>, vector<128x4xf32>, vector<8x4xf32> -> vector<8x4xf32>
    %656 = vector.broadcast %9 : vector<1x4xf32> to vector<8x4xf32>
    %657 = arith.addf %655, %656 : vector<8x4xf32>
    %c1_353 = arith.constant 1 : index
    %c0_354 = arith.constant 0 : index
    %c120_355 = arith.constant 120 : index
    %658 = vector.load %arg8[%c1_353, %c0_354, %c120_355] : memref<2x8x128xf32, #tpu.memory_space<vmem>>, vector<1x8x4xf32>
    %659 = vector.shape_cast %658 : vector<1x8x4xf32> to vector<8x4xf32>
    %660 = vector.shape_cast %657 : vector<8x4xf32> to vector<1x8x4xf32>
    tpu.vector_store %arg8[%c1_353, %c0_354, %c120_355], %660 {strides = array<i32>} : memref<2x8x128xf32, #tpu.memory_space<vmem>>, vector<1x8x4xf32>,
    %c0_356 = arith.constant 0 : index
    %c124 = arith.constant 124 : index
    %661 = vector.load %arg1[%c0_356, %c124] : memref<8x128xf32, #tpu.memory_space<vmem>>, vector<8x4xf32>
    %cst_357 = arith.constant dense<0.000000e+00> : vector<8x128xf32>
    %662 = tpu.matmul %661, %4, %cst_357 {dimension_numbers = #tpu.dot_dimension_numbers<[1], [0], [0], [1], [0, 0, 1, 1], [], []>} : vector<8x4xf32>, vector<4x128xf32>, vector<8x128xf32> -> vector<8x128xf32>
    %663 = vector.broadcast %5 : vector<1x128xf32> to vector<8x128xf32>
    %664 = arith.addf %662, %663 : vector<8x128xf32>
    %cst_358 = arith.constant -5.000000e+00 : f32
    %cst_359 = arith.constant 5.000000e+00 : f32
    %665 = vector.broadcast %cst_358 : f32 to vector<8x128xf32>
    %666 = arith.maximumf %665, %664 : vector<8x128xf32>
    %667 = vector.broadcast %cst_359 : f32 to vector<8x128xf32>
    %668 = arith.minimumf %667, %666 : vector<8x128xf32>
    %cst_360 = arith.constant dense<0.000000e+00> : vector<8x128xf32>
    %669 = tpu.matmul %668, %6, %cst_360 {dimension_numbers = #tpu.dot_dimension_numbers<[1], [0], [0], [1], [0, 0, 1, 1], [], []>} : vector<8x128xf32>, vector<128x128xf32>, vector<8x128xf32> -> vector<8x128xf32>
    %670 = vector.broadcast %7 : vector<1x128xf32> to vector<8x128xf32>
    %671 = arith.addf %669, %670 : vector<8x128xf32>
    %cst_361 = arith.constant -5.000000e+00 : f32
    %cst_362 = arith.constant 5.000000e+00 : f32
    %672 = vector.broadcast %cst_361 : f32 to vector<8x128xf32>
    %673 = arith.maximumf %672, %671 : vector<8x128xf32>
    %674 = vector.broadcast %cst_362 : f32 to vector<8x128xf32>
    %675 = arith.minimumf %674, %673 : vector<8x128xf32>
    %cst_363 = arith.constant dense<0.000000e+00> : vector<8x4xf32>
    %676 = tpu.matmul %675, %8, %cst_363 {dimension_numbers = #tpu.dot_dimension_numbers<[1], [0], [0], [1], [0, 0, 1, 1], [], []>} : vector<8x128xf32>, vector<128x4xf32>, vector<8x4xf32> -> vector<8x4xf32>
    %677 = vector.broadcast %9 : vector<1x4xf32> to vector<8x4xf32>
    %678 = arith.addf %676, %677 : vector<8x4xf32>
    %c1_364 = arith.constant 1 : index
    %c0_365 = arith.constant 0 : index
    %c124_366 = arith.constant 124 : index
    %679 = vector.load %arg8[%c1_364, %c0_365, %c124_366] : memref<2x8x128xf32, #tpu.memory_space<vmem>>, vector<1x8x4xf32>
    %680 = vector.shape_cast %679 : vector<1x8x4xf32> to vector<8x4xf32>
    %681 = vector.shape_cast %678 : vector<8x4xf32> to vector<1x8x4xf32>
    tpu.vector_store %arg8[%c1_364, %c0_365, %c124_366], %681 {strides = array<i32>} : memref<2x8x128xf32, #tpu.memory_space<vmem>>, vector<1x8x4xf32>,
    return
  }
  func.func @transform_0(%arg0: i32) -> (i32, i32) {
    %c0_i32 = arith.constant 0 : i32
    %c0_i32_0 = arith.constant 0 : i32
    return %arg0, %c0_i32 : i32, i32
  }
  func.func @transform_1(%arg0: i32) -> (i32, i32) {
    %c0_i32 = arith.constant 0 : i32
    %c0_i32_0 = arith.constant 0 : i32
    %c0_i32_1 = arith.constant 0 : i32
    return %c0_i32, %c0_i32_0 : i32, i32
  }
  func.func @transform_2(%arg0: i32) -> (i32, i32) {
    %c0_i32 = arith.constant 0 : i32
    %c0_i32_0 = arith.constant 0 : i32
    %c0_i32_1 = arith.constant 0 : i32
    return %c0_i32, %c0_i32_0 : i32, i32
  }
  func.func @transform_3(%arg0: i32) -> (i32, i32) {
    %c0_i32 = arith.constant 0 : i32
    %c0_i32_0 = arith.constant 0 : i32
    %c0_i32_1 = arith.constant 0 : i32
    return %c0_i32, %c0_i32_0 : i32, i32
  }
  func.func @transform_4(%arg0: i32) -> (i32, i32) {
    %c0_i32 = arith.constant 0 : i32
    %c0_i32_0 = arith.constant 0 : i32
    %c0_i32_1 = arith.constant 0 : i32
    return %c0_i32, %c0_i32_0 : i32, i32
  }
  func.func @transform_5(%arg0: i32) -> (i32, i32) {
    %c0_i32 = arith.constant 0 : i32
    %c0_i32_0 = arith.constant 0 : i32
    %c0_i32_1 = arith.constant 0 : i32
    return %c0_i32, %c0_i32_0 : i32, i32
  }
  func.func @transform_6(%arg0: i32) -> (i32, i32) {
    %c0_i32 = arith.constant 0 : i32
    %c0_i32_0 = arith.constant 0 : i32
    %c0_i32_1 = arith.constant 0 : i32
    return %c0_i32, %c0_i32_0 : i32, i32
  }
  func.func @transform_7(%arg0: i32) -> (i32, i32, i32) {
    %c0_i32 = arith.constant 0 : i32
    %c0_i32_0 = arith.constant 0 : i32
    %c0_i32_1 = arith.constant 0 : i32
    return %c0_i32, %arg0, %c0_i32_0 : i32, i32, i32
  }
}

</mosaic_0001>

<bundles_post_ra>
// kernel: initial_velocity_forward.1
= control target key start
LH: loop header
LB: loop body
LE: loop exit
PB: predicated region body
PF: predicated region fallthrough
CT: control target
= control target key end

     0   :  { %vm75_vm0 = vcmask 1043456   ;;  %vm71_vm1 = vcmask 31744   ;;  %v12614_v0 = vmov 0.0   ;;  %vm12615_vm2 = vmmov 0   ;;  %s14617_s30 = smov 124   ;;  %s14618_s14 = smov 120   ;;  %s14609_s1 = inlined_call_operand.vmem [shape: f32[4,128], index: 1, kind: input, shape index: {}]   ;;  %s14610_s0 = inlined_call_operand.vmem [shape: f32[8,128], index: 0, kind: input, shape index: {}]   ;;  %s14611_s3 = inlined_call_operand.vmem [shape: f32[128,128], index: 3, kind: input, shape index: {}]   ;;  %s14612_s5 = inlined_call_operand.vmem [shape: f32[128,4], index: 5, kind: input, shape index: {}]   ;;  %s14613_s2 = inlined_call_operand.vmem [shape: f32[1,128], index: 2, kind: input, shape index: {}]   ;;  %s14614_s7 = inlined_call_operand.vmem [shape: f32[2,8,128], index: 7, kind: output, shape index: {}]   ;;  %s14615_s4 = inlined_call_operand.vmem [shape: f32[1,128], index: 4, kind: input, shape index: {}]   ;;  %s14616_s6 = inlined_call_operand.vmem [shape: f32[1,4], index: 6, kind: input, shape index: {}]  }
   0x1   :  { %8632 = vmatprep.subr.mxu0 %v12614_v0  ;;  %v12692_v1 = vld [vmem:[%s14609_s1] sm:$0xf]  ;;  %8634 = vmatprep.mubr.msk.f32.mxu0 %vm12615_vm2, %v12614_v0  ;;  %v31_v4 = vld [vmem:[%s14611_s3 + $0x8] sm:$0xff]  ;;  %v32_v5 = vld [vmem:[%s14611_s3 + $0x10] sm:$0xff]  ;;  %v12617_v7 = vmov 0.0|0.0   ;;  %s14619_s25 = smov 116  }
   0x2   :  { %v12699_v2 = vld [vmem:[%s14610_s0] sm:$0xff]  ;;  %8633 = vmatpush3.msk.msra.mxu0 %vm75_vm0, %v12692_v1  ;;  %v33_v6 = vld [vmem:[%s14611_s3 + $0x18] sm:$0xff]  ;;  %11032 = vmatprep.subr.bf16.mxu1 %v12617_v7  ;;  %v35_v11 = vld [vmem:[%s14611_s3 + $0x28] sm:$0xff]  ;;  %s14620_s29 = smov 112   ;;  %s14622_s8 = smov 104   ;;  %vm531_vm3 = vcmask 64544  }
   0x3   :  { %v30_v3 = vld [vmem:[%s14611_s3] sm:$0xff]  ;;  %309 = vrot.lane.b32.xlu0 %v12699_v2, %s14617_s30  ;;  %8635 = vmatmul.mubr.msk.f32.vlgmr.msra.gmra.mrb[0].mxu0 %vm71_vm1, %v12699_v2  ;;  %v12726_v9 = vpack.c.bf16 %v33_v6, %v32_v5  ;;  %v36_v13 = vld [vmem:[%s14611_s3 + $0x30] sm:$0xff]  ;;  %v37_v14 = vld [vmem:[%s14611_s3 + $0x38] sm:$0xff]  ;;  %s12622_s9 = smov 96   ;;  %s12623_s10 = smov 88   ;;  %vm757_vm4 = vcmask 97344  }
   0x4   :  { %v12720_v8 = vpack.c.bf16 %v31_v4, %v30_v3  ;;  %8669 = vmatprep.mubr.msk.f32.mxu1 %vm12615_vm2, %v12614_v0  ;;  %11056 = vmatprep.subr.bf16.mxu0 %v12617_v7  ;;  %v34_v10 = vld [vmem:[%s14611_s3 + $0x20] sm:$0xff]  ;;  %v12748_v15 = vpack.c.bf16 %v37_v14, %v36_v13  ;;  %v39_v17 = vld [vmem:[%s14611_s3 + $0x48] sm:$0xff]  ;;  %v40_v19 = vld [vmem:[%s14611_s3 + $0x50] sm:$0xff]  ;;  %27 = vst [vmem:[%s14614_s7] sm:$0xff] %v12699_v2  ;;  %s12624_s11 = smov 80   ;;  %s12625_s0 = smov 72   ;;  %vm983_vm5 = vcmask 130144  }
   0x5   :  { %8704 = vmatprep.mubr.msk.f32.mxu0 %vm12615_vm2, %v12614_v0  ;;  %v12738_v12 = vpack.c.bf16 %v35_v11, %v34_v10  ;;  %v38_v16 = vld [vmem:[%s14611_s3 + $0x40] sm:$0xff]  ;;  %v41_v20 = vld [vmem:[%s14611_s3 + $0x58] sm:$0xff]  ;;  %v43_v23 = vld [vmem:[%s14611_s3 + $0x68] sm:$0xff]  ;;  %761 = vrot.lane.b32.xlu1 %v12699_v2, %s14619_s25  ;;  %s12626_s12 = smov 64   ;;  %s12627_s13 = smov 56   ;;  %vm1209_vm6 = vcmask 162944  }
   0x6   :  { %11034 = vmatpush3.bf16.msra.mxu1 %v12720_v8  ;;  %v12758_v18 = vpack.c.bf16 %v39_v17, %v38_v16  ;;  %v12768_v21 = vpack.c.bf16 %v41_v20, %v40_v19  ;;  %v42_v22 = vld [vmem:[%s14611_s3 + $0x60] sm:$0xff]  ;;  %v44_v25 = vld [vmem:[%s14611_s3 + $0x70] sm:$0xff]  ;;  %v45_v26 = vld [vmem:[%s14611_s3 + $0x78] sm:$0xff]  ;;  %s12628_s15 = smov 48   ;;  %s12629_s16 = smov 40   ;;  %vm1435_vm7 = vcmask 195744  }
   0x7   :  { %11035 = vmatprep.subr.bf16.mxu1 %v12617_v7  ;;  %v12778_v24 = vpack.c.bf16 %v43_v23, %v42_v22  ;;  %v12789_v27 = vpack.c.bf16 %v45_v26, %v44_v25  ;;  %535 = vrot.lane.b32.xlu0 %v12699_v2, %s14618_s14  ;;  %v47_v28 = vld [vmem:[%s14612_s5] sm:$0xff]  ;;  %v48_v29 = vld [vmem:[%s14612_s5 + $0x8] sm:$0xff]  ;;  %v49_v30 = vld [vmem:[%s14612_s5 + $0x10] sm:$0xff]  ;;  %s12630_s17 = smov 32   ;;  %s12631_s18 = smov 24   ;;  %vm1661_vm8 = vcmask 228544  }
   0x8   :  { %v12804_v31 = vpack.c.bf16 %v48_v29, %v47_v28  ;;  %v50_v32 = vld [vmem:[%s14612_s5 + $0x18] sm:$0xff]  ;;  %v51_v34 = vld [vmem:[%s14612_s5 + $0x20] sm:$0xff]  ;;  %v52_v35 = vld [vmem:[%s14612_s5 + $0x28] sm:$0xff]  ;;  %s12632_s19 = smov 16   ;;  %s12633_s21 = smov 8   ;;  %vm1887_vm9 = vcmask 261344  }
   0x9   :  { %v12810_v33 = vpack.c.bf16 %v50_v32, %v49_v30  ;;  %v12820_v36 = vpack.c.bf16 %v52_v35, %v51_v34  ;;  %v53_v37 = vld [vmem:[%s14612_s5 + $0x30] sm:$0xff]  ;;  %v54_v38 = vld [vmem:[%s14612_s5 + $0x38] sm:$0xff]  ;;  %v55_v40 = vld [vmem:[%s14612_s5 + $0x40] sm:$0xff]  ;;  %987 = vrot.lane.b32.xlu1 %v12699_v2, %s14620_s29  ;;  %s14621_s24 = smov 108   ;;  %s12635_s26 = smov 100   ;;  %vm2113_vm10 = vcmask 294144  }
   0xa   :  { %11037 = vmatpush3.bf16.msra.mxu1 %v12726_v9  ;;  %11058 = vmatpush3.bf16.msra.mxu0 %v12804_v31  ;;  %v12830_v39 = vpack.c.bf16 %v54_v38, %v53_v37  ;;  %v56_v41 = vld [vmem:[%s14612_s5 + $0x48] sm:$0xff]  ;;  %v57_v43 = vld [vmem:[%s14612_s5 + $0x50] sm:$0xff]  ;;  %v58_v44 = vld [vmem:[%s14612_s5 + $0x58] sm:$0xff]  ;;  %s12636_s27 = smov 92   ;;  %s12638_s28 = smov 84   ;;  %vm2339_vm11 = vcmask 326944  }
   0xb   :  { %11038 = vmatprep.subr.bf16.mxu1 %v12617_v7  ;;  %11059 = vmatprep.subr.bf16.mxu0 %v12617_v7  ;;  %v12840_v42 = vpack.c.bf16 %v56_v41, %v55_v40  ;;  %v12850_v45 = vpack.c.bf16 %v58_v44, %v57_v43  ;;  %v59_v46 = vld [vmem:[%s14612_s5 + $0x60] sm:$0xff]  ;;  %v60_v47 = vld [vmem:[%s14612_s5 + $0x68] sm:$0xff]  ;;  %v61_v55 = vld [vmem:[%s14612_s5 + $0x70] sm:$0xff]  ;;  %s12639_s3 = smov 76   ;;  %s12640_s20 = smov 68   ;;  %vm2565_vm12 = vcmask 359744  }
   0xc   :  { %v12860_v48 = vpack.c.bf16 %v60_v47, %v59_v46  ;;  %v12868_v49 = vld [vmem:[%s14613_s2] ss:$0 sm:$0xff]  ;;  %v62_v56 = vld [vmem:[%s14612_s5 + $0x78] sm:$0xff]  ;;  %1213 = vrot.lane.b32.xlu0 %v12699_v2, %s14621_s24  ;;  %s12637_s5 = smov 4   ;;  %s12641_s22 = smov 60   ;;  %vm2791_vm13 = vcmask 392544  }
   0xd   :  { %v12899_v57 = vpack.c.bf16 %v62_v56, %v61_v55  ;;  %v12914_v58 = vld [vmem:[%s14615_s4] ss:$0 sm:$0xff]  ;;  %1439 = vrot.lane.b32.xlu1 %v12699_v2, %s14622_s8  ;;  %s12642_s23 = smov 52   ;;  %s12643_s30 = smov 44   ;;  %vm3017_vm14 = vcmask 425344   ;;  %vm3243_vm15 = vcmask 458144  }
   0xe   :  { %11040 = vmatpush3.bf16.msra.mxu1 %v12738_v12  ;;  %11061 = vmatpush3.bf16.msra.mxu0 %v12810_v33  ;;  %v12989_v10 = vld [vmem:[%s14616_s6] ss:$0 sm:$0xff]  ;;  %s12644_s14 = smov 36   ;;  %s12645_s25 = smov 28  }
   0xf   :  { %11041 = vmatprep.subr.bf16.mxu1 %v12617_v7  ;;  %11062 = vmatprep.subr.bf16.mxu0 %v12617_v7  ;;  %s12646_s29 = smov 20   ;;  %s12647_s24 = smov 12  }
  0x10   :  { %1665 = vrot.lane.b32.xlu0 %v12699_v2, %s12635_s26 }
  0x11   :  { %1891 = vrot.lane.b32.xlu1 %v12699_v2, %s12622_s9 }
  0x12   :  { %11043 = vmatpush3.bf16.msra.mxu1 %v12748_v15  ;;  %11064 = vmatpush3.bf16.msra.mxu0 %v12820_v36 }
  0x13   :  { %11044 = vmatprep.subr.bf16.mxu1 %v12617_v7  ;;  %11065 = vmatprep.subr.bf16.mxu0 %v12617_v7 }
  0x14   :  { %2117 = vrot.lane.b32.xlu0 %v12699_v2, %s12636_s27 }
  0x15   :  { %2343 = vrot.lane.b32.xlu1 %v12699_v2, %s12623_s10 }
  0x16   :  { %11046 = vmatpush3.bf16.msra.mxu1 %v12758_v18  ;;  %11067 = vmatpush3.bf16.msra.mxu0 %v12830_v39 }
  0x17   :  { %11047 = vmatprep.subr.bf16.mxu1 %v12617_v7  ;;  %11068 = vmatprep.subr.bf16.mxu0 %v12617_v7 }
  0x18   :  { %2569 = vrot.lane.b32.xlu0 %v12699_v2, %s12638_s28 }
  0x19   :  { %2795 = vrot.lane.b32.xlu1 %v12699_v2, %s12624_s11 }
  0x1a   :  { %11049 = vmatpush3.bf16.msra.mxu1 %v12768_v21  ;;  %11070 = vmatpush3.bf16.msra.mxu0 %v12840_v42 }
  0x1b   :  { %11050 = vmatprep.subr.bf16.mxu1 %v12617_v7  ;;  %11071 = vmatprep.subr.bf16.mxu0 %v12617_v7 }
  0x1c   :  { %3021 = vrot.lane.b32.xlu0 %v12699_v2, %s12639_s3 }
  0x1d   :  { %3247 = vrot.lane.b32.xlu1 %v12699_v2, %s12625_s0 }
  0x1e   :  { %11052 = vmatpush3.bf16.msra.mxu1 %v12778_v24  ;;  %11073 = vmatpush3.bf16.msra.mxu0 %v12850_v45 }
  0x1f   :  { %11053 = vmatprep.subr.bf16.mxu1 %v12617_v7  ;;  %11074 = vmatprep.subr.bf16.mxu0 %v12617_v7 }
  0x20   :  { %3473 = vrot.lane.b32.xlu0 %v12699_v2, %s12640_s20 }
  0x21   :  { %3699 = vrot.lane.b32.xlu1 %v12699_v2, %s12626_s12 }
  0x22   :  { %11055 = vmatpush3.bf16.msra.mxu1 %v12789_v27  ;;  %11076 = vmatpush3.bf16.msra.mxu0 %v12860_v48 }
  0x23   :  { %8707 = vmatprep.subr.mxu1 %v12614_v0  ;;  %11077 = vmatprep.subr.bf16.mxu0 %v12617_v7 }
  0x24   :  { %3925 = vrot.lane.b32.xlu0 %v12699_v2, %s12641_s22 }
  0x25   :  { %4151 = vrot.lane.b32.xlu1 %v12699_v2, %s12627_s13 }
  0x26   :  { %11079 = vmatpush3.bf16.msra.mxu0 %v12899_v57 }
  0x27   :  { %11080 = vmatprep.subr.bf16.mxu0 %v12617_v7 }
  0x28   :  { %4377 = vrot.lane.b32.xlu0 %v12699_v2, %s12642_s23 }
  0x29   :  { %4603 = vrot.lane.b32.xlu1 %v12699_v2, %s12628_s15 }
  0x2c   :  { %4829 = vrot.lane.b32.xlu0 %v12699_v2, %s12643_s30 }
  0x2d   :  { %5055 = vrot.lane.b32.xlu1 %v12699_v2, %s12629_s16 }
  0x30   :  { %5281 = vrot.lane.b32.xlu0 %v12699_v2, %s12644_s14 }
  0x31   :  { %5507 = vrot.lane.b32.xlu1 %v12699_v2, %s12630_s17 }
  0x34   :  { %5733 = vrot.lane.b32.xlu0 %v12699_v2, %s12645_s25 }
  0x35   :  { %5959 = vrot.lane.b32.xlu1 %v12699_v2, %s12631_s18 }
  0x38   :  { %6185 = vrot.lane.b32.xlu0 %v12699_v2, %s12646_s29 }
  0x39   :  { %6411 = vrot.lane.b32.xlu1 %v12699_v2, %s12632_s19 }
  0x3c   :  { %6637 = vrot.lane.b32.xlu0 %v12699_v2, %s12647_s24 }
  0x3d   :  { %6863 = vrot.lane.b32.xlu1 %v12699_v2, %s12633_s21 }
  0x40   :  { %7089 = vrot.lane.b32.xlu0 %v12699_v2, %s12637_s5 }
  0x75   :  { %v310_v54 = vpop.permute.xlu0 %309 }
  0x77   :  { %v762_v28 = vpop.permute.xlu1 %761 }
  0x79   :  { %v536_v6 = vpop.permute.xlu0 %535 }
  0x7b   :  { %v988_v38 = vpop.permute.xlu1 %987 }
  0x7f   :  { %v13073_v44 = vpop.permute.xlu1 %1439 }
  0x83   :  { %v13081_v46 = vpop.permute.xlu1 %1891 }
  0x87   :  { %v13087_v47 = vpop.permute.xlu1 %2343 }
  0xd6   :  { %v145_v50 = vpop.f32.mrb[0].mxu0 }
  0xd7   :  { %v146_v51 = vadd.f32 %v12868_v49, %v145_v50  ;;  %v8636_v52 = vpop.f32.mrb[1].mxu0  ;;  %v13091_v50 = vpop.permute.xlu1 %2795 }
  0xd9   :  { %v7320_v53 = vclamps-f32 %v146_v51, 5.0 }
  0xdb   :  { %8670 = vmatmul.mubr.f32.vlgmr.msra.gmra.mrb[0].mxu1 %v7320_v53  ;;  %v13098_v51 = vpop.permute.xlu1 %3247 }
  0xdc   :  { %8708 = vmatpush3.msk.msra.mxu1 %vm75_vm0, %v12692_v1  ;;  %8709 = vmatprep.mubr.msk.f32.mxu1 %vm12615_vm2, %v12614_v0 }
  0xdd   :  { %11104 = vmatprep.subr.bf16.mxu1 %v12617_v7 }
  0xdf   :  { %8710 = vmatmul.mubr.msk.f32.vlgmr.msra.gmra.mrb[2].mxu1 %vm71_vm1, %v310_v54  ;;  %v13102_v53 = vpop.permute.xlu1 %3699 }
  0xe0   :  { %11106 = vmatpush3.bf16.msra.mxu1 %v12804_v31  ;;  %8779 = vmatprep.mubr.msk.f32.mxu1 %vm12615_vm2, %v12614_v0 }
  0xe1   :  { %11107 = vmatprep.subr.bf16.mxu1 %v12617_v7 }
  0xe3   :  { %v13113_v54 = vpop.permute.xlu1 %4151 }
  0xe4   :  { %11109 = vmatpush3.bf16.msra.mxu1 %v12810_v33 }
  0xe5   :  { %11110 = vmatprep.subr.bf16.mxu1 %v12617_v7 }
  0xe7   :  { %v13118_v55 = vpop.permute.xlu1 %4603 }
  0xe8   :  { %11112 = vmatpush3.bf16.msra.mxu1 %v12820_v36 }
  0xe9   :  { %11113 = vmatprep.subr.bf16.mxu1 %v12617_v7 }
  0xeb   :  { %v13123_v56 = vpop.permute.xlu1 %5055 }
  0xec   :  { %11115 = vmatpush3.bf16.msra.mxu1 %v12830_v39 }
  0xed   :  { %11116 = vmatprep.subr.bf16.mxu1 %v12617_v7 }
  0xf0   :  { %11118 = vmatpush3.bf16.msra.mxu1 %v12840_v42 }
  0xf1   :  { %11119 = vmatprep.subr.bf16.mxu1 %v12617_v7 }
  0xf4   :  { %11121 = vmatpush3.bf16.msra.mxu1 %v12850_v45 }
  0xf5   :  { %11122 = vmatprep.subr.bf16.mxu1 %v12617_v7 }
  0xf8   :  { %11124 = vmatpush3.bf16.msra.mxu1 %v12860_v48 }
  0xf9   :  { %11125 = vmatprep.subr.bf16.mxu1 %v12617_v7 }
  0xfc   :  { %11127 = vmatpush3.bf16.msra.mxu1 %v12899_v57 }
  0xfd   :  { %11128 = vmatprep.subr.bf16.mxu1 %v12617_v7 }
 0x1ae   :  { %v223_v59 = vpop.f32.mrb[0].mxu1 }
 0x1af   :  { %v224_v60 = vadd.f32 %v12914_v58, %v223_v59  ;;  %v8671_v61 = vpop.f32.mrb[1].mxu1  ;;  %v13128_v59 = vpop.permute.xlu1 %5507 }
 0x1b1   :  { %v7322_v62 = vclamps-f32 %v224_v60, 5.0 }
 0x1b2   :  { %v379_v63 = vpop.f32.mrb[2].mxu1 }
 0x1b3   :  { %8705 = vmatmul.mubr.f32.vlgmr.msra.gmra.mrb[2].mxu0 %v7322_v62  ;;  %v8711_v3 = vpop.f32.mrb[3].mxu1  ;;  %v380_v4 = vadd.f32 %v12868_v49, %v379_v63  ;;  %v13133_v60 = vpop.permute.xlu1 %5959 }
 0x1b4   :  { %11082 = vmatpush3.bf16.msra.mxu0 %v12720_v8  ;;  %8744 = vmatprep.mubr.msk.f32.mxu0 %vm12615_vm2, %v12614_v0 }
 0x1b5   :  { %11083 = vmatprep.subr.bf16.mxu0 %v12617_v7  ;;  %v7327_v5 = vclamps-f32 %v380_v4, 5.0 }
 0x1b7   :  { %v13138_v61 = vpop.permute.xlu1 %6411 }
 0x1b8   :  { %11085 = vmatpush3.bf16.msra.mxu0 %v12726_v9 }
 0x1b9   :  { %11086 = vmatprep.subr.bf16.mxu0 %v12617_v7 }
 0x1bb   :  { %v13140_v62 = vpop.permute.xlu1 %6863 }
 0x1bc   :  { %11088 = vmatpush3.bf16.msra.mxu0 %v12738_v12 }
 0x1bd   :  { %11089 = vmatprep.subr.bf16.mxu0 %v12617_v7 }
 0x1c0   :  { %11091 = vmatpush3.bf16.msra.mxu0 %v12748_v15 }
 0x1c1   :  { %11092 = vmatprep.subr.bf16.mxu0 %v12617_v7 }
 0x1c4   :  { %11094 = vmatpush3.bf16.msra.mxu0 %v12758_v18 }
 0x1c5   :  { %11095 = vmatprep.subr.bf16.mxu0 %v12617_v7 }
 0x1c8   :  { %11097 = vmatpush3.bf16.msra.mxu0 %v12768_v21 }
 0x1c9   :  { %11098 = vmatprep.subr.bf16.mxu0 %v12617_v7 }
 0x1cc   :  { %11100 = vmatpush3.bf16.msra.mxu0 %v12778_v24 }
 0x1cd   :  { %11101 = vmatprep.subr.bf16.mxu0 %v12617_v7 }
 0x1d0   :  { %11103 = vmatpush3.bf16.msra.mxu0 %v12789_v27 }
 0x1d1   :  { %8782 = vmatprep.subr.mxu0 %v12614_v0 }
 0x1d3   :  { %8745 = vmatmul.mubr.f32.vlgmr.msra.gmra.mrb[4].mxu0 %v7327_v5 }
 0x1d4   :  { %8783 = vmatpush3.msk.msra.mxu0 %vm75_vm0, %v12692_v1  ;;  %8784 = vmatprep.mubr.msk.f32.mxu0 %vm12615_vm2, %v12614_v0 }
 0x1d5   :  { %11152 = vmatprep.subr.bf16.mxu0 %v12617_v7 }
 0x1d7   :  { %8785 = vmatmul.mubr.msk.f32.vlgmr.msra.gmra.mrb[6].mxu0 %vm71_vm1, %v536_v6 }
 0x1d8   :  { %11154 = vmatpush3.bf16.msra.mxu0 %v12804_v31  ;;  %8854 = vmatprep.mubr.msk.f32.mxu0 %vm12615_vm2, %v12614_v0 }
 0x1d9   :  { %11155 = vmatprep.subr.bf16.mxu0 %v12617_v7 }
 0x1dc   :  { %11157 = vmatpush3.bf16.msra.mxu0 %v12810_v33 }
 0x1dd   :  { %11158 = vmatprep.subr.bf16.mxu0 %v12617_v7 }
 0x1e0   :  { %11160 = vmatpush3.bf16.msra.mxu0 %v12820_v36 }
 0x1e1   :  { %11161 = vmatprep.subr.bf16.mxu0 %v12617_v7 }
 0x1e4   :  { %11163 = vmatpush3.bf16.msra.mxu0 %v12830_v39 }
 0x1e5   :  { %11164 = vmatprep.subr.bf16.mxu0 %v12617_v7 }
 0x1e8   :  { %11166 = vmatpush3.bf16.msra.mxu0 %v12840_v42 }
 0x1e9   :  { %11167 = vmatprep.subr.bf16.mxu0 %v12617_v7 }
 0x1ec   :  { %11169 = vmatpush3.bf16.msra.mxu0 %v12850_v45 }
 0x1ed   :  { %11170 = vmatprep.subr.bf16.mxu0 %v12617_v7 }
 0x1f0   :  { %11172 = vmatpush3.bf16.msra.mxu0 %v12860_v48 }
 0x1f1   :  { %11173 = vmatprep.subr.bf16.mxu0 %v12617_v7 }
 0x1f4   :  { %11175 = vmatpush3.bf16.msra.mxu0 %v12899_v57 }
 0x1f5   :  { %11176 = vmatprep.subr.bf16.mxu0 %v12617_v7 }
 0x286   :  { %v301_v11 = vpop.f32.mrb[2].mxu0 }
 0x287   :  { %v302_v13 = vadd.f32 %v12989_v10, %v301_v11  ;;  %v8706_v14 = vpop.f32.mrb[3].mxu0 }
 0x288   :  { %v1214_v14 = vpop.permute.xlu0 %1213 }
 0x289   :  { %7324 = vst.msk [vmem:[%s14614_s7 + $0x8] sm:$0xff] %vm71_vm1, %v302_v13 }
 0x2a6   :  { %v451_v16 = vpop.f32.mrb[4].mxu0 }
 0x2a7   :  { %v452_v17 = vadd.f32 %v12914_v58, %v451_v16  ;;  %v8746_v19 = vpop.f32.mrb[5].mxu0 }
 0x2a9   :  { %v7328_v20 = vclamps-f32 %v452_v17, 5.0 }
 0x2aa   :  { %v605_v22 = vpop.f32.mrb[6].mxu0 }
 0x2ab   :  { %8780 = vmatmul.mubr.f32.vlgmr.msra.gmra.mrb[4].mxu1 %v7328_v20  ;;  %v8786_v23 = vpop.f32.mrb[7].mxu0  ;;  %v606_v25 = vadd.f32 %v12868_v49, %v605_v22  ;;  %v13152_v20 = vpop.permute.xlu0 %1665 }
 0x2ac   :  { %11130 = vmatpush3.bf16.msra.mxu1 %v12720_v8  ;;  %8819 = vmatprep.mubr.msk.f32.mxu1 %vm12615_vm2, %v12614_v0 }
 0x2ad   :  { %11131 = vmatprep.subr.bf16.mxu1 %v12617_v7  ;;  %v7332_v26 = vclamps-f32 %v606_v25, 5.0 }
 0x2af   :  { %v13156_v22 = vpop.permute.xlu0 %2117 }
 0x2b0   :  { %11133 = vmatpush3.bf16.msra.mxu1 %v12726_v9 }
 0x2b1   :  { %11134 = vmatprep.subr.bf16.mxu1 %v12617_v7 }
 0x2b3   :  { %v13162_v23 = vpop.permute.xlu0 %2569 }
 0x2b4   :  { %11136 = vmatpush3.bf16.msra.mxu1 %v12738_v12 }
 0x2b5   :  { %11137 = vmatprep.subr.bf16.mxu1 %v12617_v7 }
 0x2b7   :  { %v13166_v25 = vpop.permute.xlu0 %3021 }
 0x2b8   :  { %11139 = vmatpush3.bf16.msra.mxu1 %v12748_v15 }
 0x2b9   :  { %11140 = vmatprep.subr.bf16.mxu1 %v12617_v7 }
 0x2bc   :  { %11142 = vmatpush3.bf16.msra.mxu1 %v12758_v18 }
 0x2bd   :  { %11143 = vmatprep.subr.bf16.mxu1 %v12617_v7 }
 0x2c0   :  { %11145 = vmatpush3.bf16.msra.mxu1 %v12768_v21 }
 0x2c1   :  { %11146 = vmatprep.subr.bf16.mxu1 %v12617_v7 }
 0x2c4   :  { %11148 = vmatpush3.bf16.msra.mxu1 %v12778_v24 }
 0x2c5   :  { %11149 = vmatprep.subr.bf16.mxu1 %v12617_v7 }
 0x2c8   :  { %11151 = vmatpush3.bf16.msra.mxu1 %v12789_v27 }
 0x2c9   :  { %8857 = vmatprep.subr.mxu1 %v12614_v0 }
 0x2cb   :  { %8820 = vmatmul.mubr.f32.vlgmr.msra.gmra.mrb[6].mxu1 %v7332_v26 }
 0x2cc   :  { %8858 = vmatpush3.msk.msra.mxu1 %vm75_vm0, %v12692_v1  ;;  %8859 = vmatprep.mubr.msk.f32.mxu1 %vm12615_vm2, %v12614_v0 }
 0x2cd   :  { %11200 = vmatprep.subr.bf16.mxu1 %v12617_v7 }
 0x2cf   :  { %8860 = vmatmul.mubr.msk.f32.vlgmr.msra.gmra.mrb[8].mxu1 %vm71_vm1, %v762_v28  ;;  %v13173_v28 = vpop.permute.xlu0 %3473 }
 0x2d0   :  { %11202 = vmatpush3.bf16.msra.mxu1 %v12804_v31  ;;  %8929 = vmatprep.mubr.msk.f32.mxu1 %vm12615_vm2, %v12614_v0 }
 0x2d1   :  { %11203 = vmatprep.subr.bf16.mxu1 %v12617_v7 }
 0x2d4   :  { %11205 = vmatpush3.bf16.msra.mxu1 %v12810_v33 }
 0x2d5   :  { %11206 = vmatprep.subr.bf16.mxu1 %v12617_v7 }
 0x2d8   :  { %11208 = vmatpush3.bf16.msra.mxu1 %v12820_v36 }
 0x2d9   :  { %11209 = vmatprep.subr.bf16.mxu1 %v12617_v7 }
 0x2dc   :  { %11211 = vmatpush3.bf16.msra.mxu1 %v12830_v39 }
 0x2dd   :  { %11212 = vmatprep.subr.bf16.mxu1 %v12617_v7 }
 0x2e0   :  { %11214 = vmatpush3.bf16.msra.mxu1 %v12840_v42 }
 0x2e1   :  { %11215 = vmatprep.subr.bf16.mxu1 %v12617_v7 }
 0x2e4   :  { %11217 = vmatpush3.bf16.msra.mxu1 %v12850_v45 }
 0x2e5   :  { %11218 = vmatprep.subr.bf16.mxu1 %v12617_v7 }
 0x2e8   :  { %11220 = vmatpush3.bf16.msra.mxu1 %v12860_v48 }
 0x2e9   :  { %11221 = vmatprep.subr.bf16.mxu1 %v12617_v7 }
 0x2ec   :  { %11223 = vmatpush3.bf16.msra.mxu1 %v12899_v57 }
 0x2ed   :  { %11224 = vmatprep.subr.bf16.mxu1 %v12617_v7 }
 0x37e   :  { %v523_v29 = vpop.f32.mrb[4].mxu1 }
 0x37f   :  { %v524_v30 = vadd.f32 %v12989_v10, %v523_v29  ;;  %v8781_v32 = vpop.f32.mrb[5].mxu1 }
 0x381   :  { %528 = vrot.lane.b32.xlu1 %v524_v30, %s12637_s5  ;;  %v13177_v30 = vpop.permute.xlu0 %3925 }
 0x385   :  { %v13188_v32 = vpop.permute.xlu0 %4377 }
 0x39e   :  { %v677_v34 = vpop.f32.mrb[6].mxu1 }
 0x39f   :  { %v678_v35 = vadd.f32 %v12914_v58, %v677_v34  ;;  %v8821_v37 = vpop.f32.mrb[7].mxu1  ;;  %v13193_v34 = vpop.permute.xlu0 %4829 }
 0x3a1   :  { %v7333_v40 = vclamps-f32 %v678_v35, 5.0 }
 0x3a2   :  { %v831_v41 = vpop.f32.mrb[8].mxu1 }
 0x3a3   :  { %8855 = vmatmul.mubr.f32.vlgmr.msra.gmra.mrb[8].mxu0 %v7333_v40  ;;  %v8861_v43 = vpop.f32.mrb[9].mxu1  ;;  %v832_v2 = vadd.f32 %v12868_v49, %v831_v41  ;;  %v13198_v35 = vpop.permute.xlu0 %5281 }
 0x3a4   :  { %11178 = vmatpush3.bf16.msra.mxu0 %v12720_v8  ;;  %8894 = vmatprep.mubr.msk.f32.mxu0 %vm12615_vm2, %v12614_v0 }
 0x3a5   :  { %11179 = vmatprep.subr.bf16.mxu0 %v12617_v7  ;;  %v7337_v52 = vclamps-f32 %v832_v2, 5.0 }
 0x3a7   :  { %v13203_v37 = vpop.permute.xlu0 %5733 }
 0x3a8   :  { %11181 = vmatpush3.bf16.msra.mxu0 %v12726_v9 }
 0x3a9   :  { %11182 = vmatprep.subr.bf16.mxu0 %v12617_v7 }
 0x3ac   :  { %11184 = vmatpush3.bf16.msra.mxu0 %v12738_v12 }
 0x3ad   :  { %11185 = vmatprep.subr.bf16.mxu0 %v12617_v7 }
 0x3b0   :  { %11187 = vmatpush3.bf16.msra.mxu0 %v12748_v15 }
 0x3b1   :  { %11188 = vmatprep.subr.bf16.mxu0 %v12617_v7 }
 0x3b4   :  { %11190 = vmatpush3.bf16.msra.mxu0 %v12758_v18 }
 0x3b5   :  { %11191 = vmatprep.subr.bf16.mxu0 %v12617_v7 }
 0x3b8   :  { %11193 = vmatpush3.bf16.msra.mxu0 %v12768_v21 }
 0x3b9   :  { %11194 = vmatprep.subr.bf16.mxu0 %v12617_v7 }
 0x3bc   :  { %11196 = vmatpush3.bf16.msra.mxu0 %v12778_v24 }
 0x3bd   :  { %11197 = vmatprep.subr.bf16.mxu0 %v12617_v7 }
 0x3c0   :  { %11199 = vmatpush3.bf16.msra.mxu0 %v12789_v27 }
 0x3c1   :  { %8932 = vmatprep.subr.mxu0 %v12614_v0 }
 0x3c3   :  { %8895 = vmatmul.mubr.f32.vlgmr.msra.gmra.mrb[10].mxu0 %v7337_v52 }
 0x3c4   :  { %8933 = vmatpush3.msk.msra.mxu0 %vm75_vm0, %v12692_v1  ;;  %8934 = vmatprep.mubr.msk.f32.mxu0 %vm12615_vm2, %v12614_v0 }
 0x3c5   :  { %11248 = vmatprep.subr.bf16.mxu0 %v12617_v7 }
 0x3c7   :  { %8935 = vmatmul.mubr.msk.f32.vlgmr.msra.gmra.mrb[12].mxu0 %vm71_vm1, %v988_v38  ;;  %v13208_v38 = vpop.permute.xlu0 %6185 }
 0x3c8   :  { %11250 = vmatpush3.bf16.msra.mxu0 %v12804_v31  ;;  %9004 = vmatprep.mubr.msk.f32.mxu0 %vm12615_vm2, %v12614_v0 }
 0x3c9   :  { %11251 = vmatprep.subr.bf16.mxu0 %v12617_v7 }
 0x3cb   :  { %v13213_v40 = vpop.permute.xlu0 %6637 }
 0x3cc   :  { %11253 = vmatpush3.bf16.msra.mxu0 %v12810_v33 }
 0x3cd   :  { %11254 = vmatprep.subr.bf16.mxu0 %v12617_v7 }
 0x3cf   :  { %v13215_v41 = vpop.permute.xlu0 %7089 }
 0x3d0   :  { %11256 = vmatpush3.bf16.msra.mxu0 %v12820_v36 }
 0x3d1   :  { %11257 = vmatprep.subr.bf16.mxu0 %v12617_v7 }
 0x3d4   :  { %11259 = vmatpush3.bf16.msra.mxu0 %v12830_v39 }
 0x3d5   :  { %11260 = vmatprep.subr.bf16.mxu0 %v12617_v7 }
 0x3d8   :  { %11262 = vmatpush3.bf16.msra.mxu0 %v12840_v42 }
 0x3d9   :  { %11263 = vmatprep.subr.bf16.mxu0 %v12617_v7 }
 0x3dc   :  { %11265 = vmatpush3.bf16.msra.mxu0 %v12850_v45 }
 0x3dd   :  { %11266 = vmatprep.subr.bf16.mxu0 %v12617_v7 }
 0x3e0   :  { %11268 = vmatpush3.bf16.msra.mxu0 %v12860_v48 }
 0x3e1   :  { %11269 = vmatprep.subr.bf16.mxu0 %v12617_v7 }
 0x3e4   :  { %11271 = vmatpush3.bf16.msra.mxu0 %v12899_v57 }
 0x3e5   :  { %11272 = vmatprep.subr.bf16.mxu0 %v12617_v7 }
 0x3f3   :  { %v529_v63 = vpop.permute.xlu1 %528 }
 0x3f4   :  { %7329 = vst.msk [vmem:[%s14614_s7 + $0x8] sm:$0xff] %vm531_vm3, %v529_v63  ;;  %vm3469_vm3 = vcmask 490944  }
 0x476   :  { %v749_v3 = vpop.f32.mrb[8].mxu0 }
 0x477   :  { %v750_v4 = vadd.f32 %v12989_v10, %v749_v3  ;;  %v8856_v5 = vpop.f32.mrb[9].mxu0 }
 0x479   :  { %754 = vrot.lane.b32.xlu0 %v750_v4, %s12633_s21 }
 0x496   :  { %v903_v6 = vpop.f32.mrb[10].mxu0 }
 0x497   :  { %v904_v11 = vadd.f32 %v12914_v58, %v903_v6  ;;  %v8896_v13 = vpop.f32.mrb[11].mxu0 }
 0x499   :  { %v7338_v16 = vclamps-f32 %v904_v11, 5.0 }
 0x49a   :  { %v1057_v17 = vpop.f32.mrb[12].mxu0 }
 0x49b   :  { %8930 = vmatmul.mubr.f32.vlgmr.msra.gmra.mrb[10].mxu1 %v7338_v16  ;;  %v8936_v19 = vpop.f32.mrb[13].mxu0  ;;  %v1058_v26 = vadd.f32 %v12868_v49, %v1057_v17 }
 0x49c   :  { %11226 = vmatpush3.bf16.msra.mxu1 %v12720_v8  ;;  %8969 = vmatprep.mubr.msk.f32.mxu1 %vm12615_vm2, %v12614_v0 }
 0x49d   :  { %11227 = vmatprep.subr.bf16.mxu1 %v12617_v7  ;;  %v7342_v29 = vclamps-f32 %v1058_v26, 5.0 }
 0x4a0   :  { %11229 = vmatpush3.bf16.msra.mxu1 %v12726_v9 }
 0x4a1   :  { %11230 = vmatprep.subr.bf16.mxu1 %v12617_v7 }
 0x4a4   :  { %11232 = vmatpush3.bf16.msra.mxu1 %v12738_v12 }
 0x4a5   :  { %11233 = vmatprep.subr.bf16.mxu1 %v12617_v7 }
 0x4a8   :  { %11235 = vmatpush3.bf16.msra.mxu1 %v12748_v15 }
 0x4a9   :  { %11236 = vmatprep.subr.bf16.mxu1 %v12617_v7 }
 0x4ac   :  { %11238 = vmatpush3.bf16.msra.mxu1 %v12758_v18 }
 0x4ad   :  { %11239 = vmatprep.subr.bf16.mxu1 %v12617_v7 }
 0x4b0   :  { %11241 = vmatpush3.bf16.msra.mxu1 %v12768_v21 }
 0x4b1   :  { %11242 = vmatprep.subr.bf16.mxu1 %v12617_v7 }
 0x4b4   :  { %11244 = vmatpush3.bf16.msra.mxu1 %v12778_v24 }
 0x4b5   :  { %11245 = vmatprep.subr.bf16.mxu1 %v12617_v7 }
 0x4b8   :  { %11247 = vmatpush3.bf16.msra.mxu1 %v12789_v27 }
 0x4b9   :  { %9007 = vmatprep.subr.mxu1 %v12614_v0 }
 0x4bb   :  { %8970 = vmatmul.mubr.f32.vlgmr.msra.gmra.mrb[12].mxu1 %v7342_v29 }
 0x4bc   :  { %9008 = vmatpush3.msk.msra.mxu1 %vm75_vm0, %v12692_v1  ;;  %9009 = vmatprep.mubr.msk.f32.mxu1 %vm12615_vm2, %v12614_v0 }
 0x4bd   :  { %11296 = vmatprep.subr.bf16.mxu1 %v12617_v7 }
 0x4bf   :  { %9010 = vmatmul.mubr.msk.f32.vlgmr.msra.gmra.mrb[14].mxu1 %vm71_vm1, %v1214_v14 }
 0x4c0   :  { %11298 = vmatpush3.bf16.msra.mxu1 %v12804_v31  ;;  %9079 = vmatprep.mubr.msk.f32.mxu1 %vm12615_vm2, %v12614_v0 }
 0x4c1   :  { %11299 = vmatprep.subr.bf16.mxu1 %v12617_v7 }
 0x4c4   :  { %11301 = vmatpush3.bf16.msra.mxu1 %v12810_v33 }
 0x4c5   :  { %11302 = vmatprep.subr.bf16.mxu1 %v12617_v7 }
 0x4c8   :  { %11304 = vmatpush3.bf16.msra.mxu1 %v12820_v36 }
 0x4c9   :  { %11305 = vmatprep.subr.bf16.mxu1 %v12617_v7 }
 0x4cc   :  { %11307 = vmatpush3.bf16.msra.mxu1 %v12830_v39 }
 0x4cd   :  { %11308 = vmatprep.subr.bf16.mxu1 %v12617_v7 }
 0x4d0   :  { %11310 = vmatpush3.bf16.msra.mxu1 %v12840_v42 }
 0x4d1   :  { %11311 = vmatprep.subr.bf16.mxu1 %v12617_v7 }
 0x4d4   :  { %11313 = vmatpush3.bf16.msra.mxu1 %v12850_v45 }
 0x4d5   :  { %11314 = vmatprep.subr.bf16.mxu1 %v12617_v7 }
 0x4d8   :  { %11316 = vmatpush3.bf16.msra.mxu1 %v12860_v48 }
 0x4d9   :  { %11317 = vmatprep.subr.bf16.mxu1 %v12617_v7 }
 0x4dc   :  { %11319 = vmatpush3.bf16.msra.mxu1 %v12899_v57 }
 0x4dd   :  { %11320 = vmatprep.subr.bf16.mxu1 %v12617_v7 }
 0x4eb   :  { %v755_v43 = vpop.permute.xlu0 %754 }
 0x4ec   :  { %7334 = vst.msk [vmem:[%s14614_s7 + $0x8] sm:$0xff] %vm757_vm4, %v755_v43  ;;  %vm3695_vm4 = vcmask 523744  }
 0x56e   :  { %v975_v2 = vpop.f32.mrb[10].mxu1 }
 0x56f   :  { %v976_v52 = vadd.f32 %v12989_v10, %v975_v2  ;;  %v8931_v63 = vpop.f32.mrb[11].mxu1 }
 0x571   :  { %980 = vrot.lane.b32.xlu1 %v976_v52, %s12647_s24 }
 0x58e   :  { %v1129_v3 = vpop.f32.mrb[12].mxu1 }
 0x58f   :  { %v1130_v4 = vadd.f32 %v12914_v58, %v1129_v3  ;;  %v8971_v5 = vpop.f32.mrb[13].mxu1 }
 0x590   :  { %v13295_v5 = vld [vmem:[%s14609_s1] sm:$0xf] }
 0x591   :  { %v7343_v6 = vclamps-f32 %v1130_v4, 5.0 }
 0x592   :  { %v1283_v11 = vpop.f32.mrb[14].mxu1 }
 0x593   :  { %9005 = vmatmul.mubr.f32.vlgmr.msra.gmra.mrb[14].mxu0 %v7343_v6  ;;  %v9011_v13 = vpop.f32.mrb[15].mxu1  ;;  %v1284_v14 = vadd.f32 %v12868_v49, %v1283_v11 }
 0x594   :  { %11274 = vmatpush3.bf16.msra.mxu0 %v12720_v8  ;;  %9044 = vmatprep.mubr.msk.f32.mxu0 %vm12615_vm2, %v12614_v0 }
 0x595   :  { %11275 = vmatprep.subr.bf16.mxu0 %v12617_v7  ;;  %v7347_v16 = vclamps-f32 %v1284_v14, 5.0 }
 0x598   :  { %11277 = vmatpush3.bf16.msra.mxu0 %v12726_v9 }
 0x599   :  { %11278 = vmatprep.subr.bf16.mxu0 %v12617_v7 }
 0x59c   :  { %11280 = vmatpush3.bf16.msra.mxu0 %v12738_v12 }
 0x59d   :  { %11281 = vmatprep.subr.bf16.mxu0 %v12617_v7 }
 0x5a0   :  { %11283 = vmatpush3.bf16.msra.mxu0 %v12748_v15 }
 0x5a1   :  { %11284 = vmatprep.subr.bf16.mxu0 %v12617_v7 }
 0x5a4   :  { %11286 = vmatpush3.bf16.msra.mxu0 %v12758_v18 }
 0x5a5   :  { %11287 = vmatprep.subr.bf16.mxu0 %v12617_v7 }
 0x5a8   :  { %11289 = vmatpush3.bf16.msra.mxu0 %v12768_v21 }
 0x5a9   :  { %11290 = vmatprep.subr.bf16.mxu0 %v12617_v7 }
 0x5ac   :  { %11292 = vmatpush3.bf16.msra.mxu0 %v12778_v24 }
 0x5ad   :  { %11293 = vmatprep.subr.bf16.mxu0 %v12617_v7 }
 0x5b0   :  { %11295 = vmatpush3.bf16.msra.mxu0 %v12789_v27 }
 0x5b1   :  { %9082 = vmatprep.subr.mxu0 %v12614_v0 }
 0x5b3   :  { %9045 = vmatmul.mubr.f32.vlgmr.msra.gmra.mrb[16].mxu0 %v7347_v16 }
 0x5b4   :  { %9083 = vmatpush3.msk.msra.mxu0 %vm75_vm0, %v12692_v1  ;;  %9084 = vmatprep.mubr.msk.f32.mxu0 %vm12615_vm2, %v12614_v0 }
 0x5b5   :  { %11344 = vmatprep.subr.bf16.mxu0 %v12617_v7 }
 0x5b7   :  { %9085 = vmatmul.mubr.msk.f32.vlgmr.msra.gmra.mrb[18].mxu0 %vm71_vm1, %v13073_v44 }
 0x5b8   :  { %11346 = vmatpush3.bf16.msra.mxu0 %v12804_v31  ;;  %9154 = vmatprep.mubr.msk.f32.mxu0 %vm12615_vm2, %v12614_v0 }
 0x5b9   :  { %11347 = vmatprep.subr.bf16.mxu0 %v12617_v7 }
 0x5bc   :  { %11349 = vmatpush3.bf16.msra.mxu0 %v12810_v33 }
 0x5bd   :  { %11350 = vmatprep.subr.bf16.mxu0 %v12617_v7 }
 0x5c0   :  { %11352 = vmatpush3.bf16.msra.mxu0 %v12820_v36 }
 0x5c1   :  { %11353 = vmatprep.subr.bf16.mxu0 %v12617_v7 }
 0x5c4   :  { %11355 = vmatpush3.bf16.msra.mxu0 %v12830_v39 }
 0x5c5   :  { %11356 = vmatprep.subr.bf16.mxu0 %v12617_v7 }
 0x5c8   :  { %11358 = vmatpush3.bf16.msra.mxu0 %v12840_v42 }
 0x5c9   :  { %11359 = vmatprep.subr.bf16.mxu0 %v12617_v7 }
 0x5cc   :  { %11361 = vmatpush3.bf16.msra.mxu0 %v12850_v45 }
 0x5cd   :  { %11362 = vmatprep.subr.bf16.mxu0 %v12617_v7 }
 0x5d0   :  { %11364 = vmatpush3.bf16.msra.mxu0 %v12860_v48 }
 0x5d1   :  { %11365 = vmatprep.subr.bf16.mxu0 %v12617_v7 }
 0x5d4   :  { %11367 = vmatpush3.bf16.msra.mxu0 %v12899_v57 }
 0x5d5   :  { %11368 = vmatprep.subr.bf16.mxu0 %v12617_v7 }
 0x5e3   :  { %v981_v1 = vpop.permute.xlu1 %980 }
 0x5e4   :  { %7339 = vst.msk [vmem:[%s14614_s7 + $0x8] sm:$0xff] %vm983_vm5, %v981_v1  ;;  %vm3921_vm5 = vcmask 556544  }
 0x666   :  { %v1201_v44 = vpop.f32.mrb[14].mxu0 }
 0x667   :  { %v1202_v17 = vadd.f32 %v12989_v10, %v1201_v44  ;;  %v9006_v19 = vpop.f32.mrb[15].mxu0 }
 0x669   :  { %1206 = vrot.lane.b32.xlu0 %v1202_v17, %s12632_s19 }
 0x686   :  { %v1355_v26 = vpop.f32.mrb[16].mxu0 }
 0x687   :  { %v1356_v29 = vadd.f32 %v12914_v58, %v1355_v26  ;;  %v9046_v43 = vpop.f32.mrb[17].mxu0 }
 0x689   :  { %v7348_v2 = vclamps-f32 %v1356_v29, 5.0 }
 0x68a   :  { %v1509_v52 = vpop.f32.mrb[18].mxu0 }
 0x68b   :  { %9080 = vmatmul.mubr.f32.vlgmr.msra.gmra.mrb[16].mxu1 %v7348_v2  ;;  %v9086_v63 = vpop.f32.mrb[19].mxu0  ;;  %v1510_v3 = vadd.f32 %v12868_v49, %v1509_v52 }
 0x68c   :  { %11322 = vmatpush3.bf16.msra.mxu1 %v12720_v8  ;;  %9119 = vmatprep.mubr.msk.f32.mxu1 %vm12615_vm2, %v12614_v0 }
 0x68d   :  { %11323 = vmatprep.subr.bf16.mxu1 %v12617_v7  ;;  %v7352_v4 = vclamps-f32 %v1510_v3, 5.0 }
 0x690   :  { %11325 = vmatpush3.bf16.msra.mxu1 %v12726_v9 }
 0x691   :  { %11326 = vmatprep.subr.bf16.mxu1 %v12617_v7 }
 0x694   :  { %11328 = vmatpush3.bf16.msra.mxu1 %v12738_v12 }
 0x695   :  { %11329 = vmatprep.subr.bf16.mxu1 %v12617_v7 }
 0x698   :  { %11331 = vmatpush3.bf16.msra.mxu1 %v12748_v15 }
 0x699   :  { %11332 = vmatprep.subr.bf16.mxu1 %v12617_v7 }
 0x69c   :  { %11334 = vmatpush3.bf16.msra.mxu1 %v12758_v18 }
 0x69d   :  { %11335 = vmatprep.subr.bf16.mxu1 %v12617_v7 }
 0x6a0   :  { %11337 = vmatpush3.bf16.msra.mxu1 %v12768_v21 }
 0x6a1   :  { %11338 = vmatprep.subr.bf16.mxu1 %v12617_v7 }
 0x6a4   :  { %11340 = vmatpush3.bf16.msra.mxu1 %v12778_v24 }
 0x6a5   :  { %11341 = vmatprep.subr.bf16.mxu1 %v12617_v7 }
 0x6a8   :  { %11343 = vmatpush3.bf16.msra.mxu1 %v12789_v27 }
 0x6a9   :  { %9157 = vmatprep.subr.mxu1 %v12614_v0 }
 0x6ab   :  { %9120 = vmatmul.mubr.f32.vlgmr.msra.gmra.mrb[18].mxu1 %v7352_v4 }
 0x6ac   :  { %9158 = vmatpush3.msk.msra.mxu1 %vm75_vm0, %v13295_v5  ;;  %9159 = vmatprep.mubr.msk.f32.mxu1 %vm12615_vm2, %v12614_v0 }
 0x6ad   :  { %11392 = vmatprep.subr.bf16.mxu1 %v12617_v7 }
 0x6af   :  { %9160 = vmatmul.mubr.msk.f32.vlgmr.msra.gmra.mrb[20].mxu1 %vm71_vm1, %v13152_v20 }
 0x6b0   :  { %11394 = vmatpush3.bf16.msra.mxu1 %v12804_v31  ;;  %9229 = vmatprep.mubr.msk.f32.mxu1 %vm12615_vm2, %v12614_v0 }
 0x6b1   :  { %11395 = vmatprep.subr.bf16.mxu1 %v12617_v7 }
 0x6b4   :  { %11397 = vmatpush3.bf16.msra.mxu1 %v12810_v33 }
 0x6b5   :  { %11398 = vmatprep.subr.bf16.mxu1 %v12617_v7 }
 0x6b8   :  { %11400 = vmatpush3.bf16.msra.mxu1 %v12820_v36 }
 0x6b9   :  { %11401 = vmatprep.subr.bf16.mxu1 %v12617_v7 }
 0x6bc   :  { %11403 = vmatpush3.bf16.msra.mxu1 %v12830_v39 }
 0x6bd   :  { %11404 = vmatprep.subr.bf16.mxu1 %v12617_v7 }
 0x6c0   :  { %11406 = vmatpush3.bf16.msra.mxu1 %v12840_v42 }
 0x6c1   :  { %11407 = vmatprep.subr.bf16.mxu1 %v12617_v7 }
 0x6c4   :  { %11409 = vmatpush3.bf16.msra.mxu1 %v12850_v45 }
 0x6c5   :  { %11410 = vmatprep.subr.bf16.mxu1 %v12617_v7 }
 0x6c8   :  { %11412 = vmatpush3.bf16.msra.mxu1 %v12860_v48 }
 0x6c9   :  { %11413 = vmatprep.subr.bf16.mxu1 %v12617_v7 }
 0x6cc   :  { %11415 = vmatpush3.bf16.msra.mxu1 %v12899_v57 }
 0x6cd   :  { %11416 = vmatprep.subr.bf16.mxu1 %v12617_v7 }
 0x6db   :  { %v1207_v20 = vpop.permute.xlu0 %1206 }
 0x6dc   :  { %7344 = vst.msk [vmem:[%s14614_s7 + $0x8] sm:$0xff] %vm1209_vm6, %v1207_v20  ;;  %vm4147_vm6 = vcmask 589344  }
 0x75e   :  { %v1427_v6 = vpop.f32.mrb[16].mxu1 }
 0x75f   :  { %v1428_v11 = vadd.f32 %v12989_v10, %v1427_v6  ;;  %v9081_v13 = vpop.f32.mrb[17].mxu1 }
 0x761   :  { %1432 = vrot.lane.b32.xlu1 %v1428_v11, %s12646_s29 }
 0x77e   :  { %v1581_v14 = vpop.f32.mrb[18].mxu1 }
 0x77f   :  { %v1582_v16 = vadd.f32 %v12914_v58, %v1581_v14  ;;  %v9121_v1 = vpop.f32.mrb[19].mxu1 }
 0x781   :  { %v7353_v44 = vclamps-f32 %v1582_v16, 5.0 }
 0x782   :  { %v1735_v17 = vpop.f32.mrb[20].mxu1 }
 0x783   :  { %9155 = vmatmul.mubr.f32.vlgmr.msra.gmra.mrb[20].mxu0 %v7353_v44  ;;  %v9161_v19 = vpop.f32.mrb[21].mxu1  ;;  %v1736_v26 = vadd.f32 %v12868_v49, %v1735_v17  ;;  %v13435_v17 = vld [vmem:[%s14615_s4] ss:$0 sm:$0xff] }
 0x784   :  { %11370 = vmatpush3.bf16.msra.mxu0 %v12720_v8  ;;  %9194 = vmatprep.mubr.msk.f32.mxu0 %vm12615_vm2, %v12614_v0 }
 0x785   :  { %11371 = vmatprep.subr.bf16.mxu0 %v12617_v7  ;;  %v7357_v29 = vclamps-f32 %v1736_v26, 5.0 }
 0x788   :  { %11373 = vmatpush3.bf16.msra.mxu0 %v12726_v9 }
 0x789   :  { %11374 = vmatprep.subr.bf16.mxu0 %v12617_v7 }
 0x78c   :  { %11376 = vmatpush3.bf16.msra.mxu0 %v12738_v12 }
 0x78d   :  { %11377 = vmatprep.subr.bf16.mxu0 %v12617_v7 }
 0x790   :  { %11379 = vmatpush3.bf16.msra.mxu0 %v12748_v15 }
 0x791   :  { %11380 = vmatprep.subr.bf16.mxu0 %v12617_v7 }
 0x794   :  { %11382 = vmatpush3.bf16.msra.mxu0 %v12758_v18 }
 0x795   :  { %11383 = vmatprep.subr.bf16.mxu0 %v12617_v7 }
 0x798   :  { %11385 = vmatpush3.bf16.msra.mxu0 %v12768_v21 }
 0x799   :  { %11386 = vmatprep.subr.bf16.mxu0 %v12617_v7 }
 0x79c   :  { %11388 = vmatpush3.bf16.msra.mxu0 %v12778_v24 }
 0x79d   :  { %11389 = vmatprep.subr.bf16.mxu0 %v12617_v7 }
 0x7a0   :  { %11391 = vmatpush3.bf16.msra.mxu0 %v12789_v27 }
 0x7a1   :  { %9232 = vmatprep.subr.mxu0 %v12614_v0 }
 0x7a3   :  { %9195 = vmatmul.mubr.f32.vlgmr.msra.gmra.mrb[22].mxu0 %v7357_v29 }
 0x7a4   :  { %9233 = vmatpush3.msk.msra.mxu0 %vm75_vm0, %v13295_v5  ;;  %9234 = vmatprep.mubr.msk.f32.mxu0 %vm12615_vm2, %v12614_v0 }
 0x7a5   :  { %11440 = vmatprep.subr.bf16.mxu0 %v12617_v7 }
 0x7a7   :  { %9235 = vmatmul.mubr.msk.f32.vlgmr.msra.gmra.mrb[24].mxu0 %vm71_vm1, %v13081_v46 }
 0x7a8   :  { %11442 = vmatpush3.bf16.msra.mxu0 %v12804_v31  ;;  %9304 = vmatprep.mubr.msk.f32.mxu0 %vm12615_vm2, %v12614_v0 }
 0x7a9   :  { %11443 = vmatprep.subr.bf16.mxu0 %v12617_v7 }
 0x7ac   :  { %11445 = vmatpush3.bf16.msra.mxu0 %v12810_v33 }
 0x7ad   :  { %11446 = vmatprep.subr.bf16.mxu0 %v12617_v7 }
 0x7b0   :  { %11448 = vmatpush3.bf16.msra.mxu0 %v12820_v36 }
 0x7b1   :  { %11449 = vmatprep.subr.bf16.mxu0 %v12617_v7 }
 0x7b4   :  { %11451 = vmatpush3.bf16.msra.mxu0 %v12830_v39 }
 0x7b5   :  { %11452 = vmatprep.subr.bf16.mxu0 %v12617_v7 }
 0x7b8   :  { %11454 = vmatpush3.bf16.msra.mxu0 %v12840_v42 }
 0x7b9   :  { %11455 = vmatprep.subr.bf16.mxu0 %v12617_v7 }
 0x7bc   :  { %11457 = vmatpush3.bf16.msra.mxu0 %v12850_v45 }
 0x7bd   :  { %11458 = vmatprep.subr.bf16.mxu0 %v12617_v7 }
 0x7c0   :  { %11460 = vmatpush3.bf16.msra.mxu0 %v12860_v48 }
 0x7c1   :  { %11461 = vmatprep.subr.bf16.mxu0 %v12617_v7 }
 0x7c4   :  { %11463 = vmatpush3.bf16.msra.mxu0 %v12899_v57 }
 0x7c5   :  { %11464 = vmatprep.subr.bf16.mxu0 %v12617_v7 }
 0x7d3   :  { %v1433_v49 = vpop.permute.xlu1 %1432 }
 0x7d4   :  { %7349 = vst.msk [vmem:[%s14614_s7 + $0x8] sm:$0xff] %vm1435_vm7, %v1433_v49  ;;  %vm4373_vm7 = vcmask 622144  }
 0x856   :  { %v1653_v46 = vpop.f32.mrb[20].mxu0 }
 0x857   :  { %v1654_v43 = vadd.f32 %v12989_v10, %v1653_v46  ;;  %v9156_v2 = vpop.f32.mrb[21].mxu0 }
 0x859   :  { %1658 = vrot.lane.b32.xlu0 %v1654_v43, %s12631_s18  ;;  %s14628_s18 = smov 124  }
 0x876   :  { %v1807_v52 = vpop.f32.mrb[22].mxu0 }
 0x877   :  { %v1808_v63 = vadd.f32 %v12914_v58, %v1807_v52  ;;  %v9196_v3 = vpop.f32.mrb[23].mxu0  ;;  %v13395_v58 = vld [vmem:[%s14613_s2] ss:$0 sm:$0xff] }
 0x879   :  { %v7358_v4 = vclamps-f32 %v1808_v63, 5.0 }
 0x87a   :  { %v1961_v20 = vpop.f32.mrb[24].mxu0 }
 0x87b   :  { %9230 = vmatmul.mubr.f32.vlgmr.msra.gmra.mrb[22].mxu1 %v7358_v4  ;;  %v9236_v6 = vpop.f32.mrb[25].mxu0  ;;  %v1962_v11 = vadd.f32 %v13395_v58, %v1961_v20 }
 0x87c   :  { %11418 = vmatpush3.bf16.msra.mxu1 %v12720_v8  ;;  %9269 = vmatprep.mubr.msk.f32.mxu1 %vm12615_vm2, %v12614_v0 }
 0x87d   :  { %11419 = vmatprep.subr.bf16.mxu1 %v12617_v7  ;;  %v7362_v13 = vclamps-f32 %v1962_v11, 5.0 }
 0x880   :  { %11421 = vmatpush3.bf16.msra.mxu1 %v12726_v9 }
 0x881   :  { %11422 = vmatprep.subr.bf16.mxu1 %v12617_v7 }
 0x884   :  { %11424 = vmatpush3.bf16.msra.mxu1 %v12738_v12 }
 0x885   :  { %11425 = vmatprep.subr.bf16.mxu1 %v12617_v7 }
 0x888   :  { %11427 = vmatpush3.bf16.msra.mxu1 %v12748_v15 }
 0x889   :  { %11428 = vmatprep.subr.bf16.mxu1 %v12617_v7 }
 0x88c   :  { %11430 = vmatpush3.bf16.msra.mxu1 %v12758_v18 }
 0x88d   :  { %11431 = vmatprep.subr.bf16.mxu1 %v12617_v7 }
 0x890   :  { %11433 = vmatpush3.bf16.msra.mxu1 %v12768_v21 }
 0x891   :  { %11434 = vmatprep.subr.bf16.mxu1 %v12617_v7 }
 0x894   :  { %11436 = vmatpush3.bf16.msra.mxu1 %v12778_v24 }
 0x895   :  { %11437 = vmatprep.subr.bf16.mxu1 %v12617_v7 }
 0x898   :  { %11439 = vmatpush3.bf16.msra.mxu1 %v12789_v27 }
 0x899   :  { %9307 = vmatprep.subr.mxu1 %v12614_v0 }
 0x89b   :  { %9270 = vmatmul.mubr.f32.vlgmr.msra.gmra.mrb[24].mxu1 %v7362_v13 }
 0x89c   :  { %9308 = vmatpush3.msk.msra.mxu1 %vm75_vm0, %v13295_v5  ;;  %9309 = vmatprep.mubr.msk.f32.mxu1 %vm12615_vm2, %v12614_v0 }
 0x89d   :  { %11488 = vmatprep.subr.bf16.mxu1 %v12617_v7 }
 0x89f   :  { %9310 = vmatmul.mubr.msk.f32.vlgmr.msra.gmra.mrb[26].mxu1 %vm71_vm1, %v13156_v22 }
 0x8a0   :  { %11490 = vmatpush3.bf16.msra.mxu1 %v12804_v31  ;;  %9379 = vmatprep.mubr.msk.f32.mxu1 %vm12615_vm2, %v12614_v0 }
 0x8a1   :  { %11491 = vmatprep.subr.bf16.mxu1 %v12617_v7 }
 0x8a4   :  { %11493 = vmatpush3.bf16.msra.mxu1 %v12810_v33 }
 0x8a5   :  { %11494 = vmatprep.subr.bf16.mxu1 %v12617_v7 }
 0x8a8   :  { %11496 = vmatpush3.bf16.msra.mxu1 %v12820_v36 }
 0x8a9   :  { %11497 = vmatprep.subr.bf16.mxu1 %v12617_v7 }
 0x8ac   :  { %11499 = vmatpush3.bf16.msra.mxu1 %v12830_v39 }
 0x8ad   :  { %11500 = vmatprep.subr.bf16.mxu1 %v12617_v7 }
 0x8b0   :  { %11502 = vmatpush3.bf16.msra.mxu1 %v12840_v42 }
 0x8b1   :  { %11503 = vmatprep.subr.bf16.mxu1 %v12617_v7 }
 0x8b4   :  { %11505 = vmatpush3.bf16.msra.mxu1 %v12850_v45 }
 0x8b5   :  { %11506 = vmatprep.subr.bf16.mxu1 %v12617_v7 }
 0x8b8   :  { %11508 = vmatpush3.bf16.msra.mxu1 %v12860_v48 }
 0x8b9   :  { %11509 = vmatprep.subr.bf16.mxu1 %v12617_v7 }
 0x8bc   :  { %11511 = vmatpush3.bf16.msra.mxu1 %v12899_v57 }
 0x8bd   :  { %11512 = vmatprep.subr.bf16.mxu1 %v12617_v7 }
 0x8cb   :  { %v1659_v22 = vpop.permute.xlu0 %1658 }
 0x8cc   :  { %7354 = vst.msk [vmem:[%s14614_s7 + $0x8] sm:$0xff] %vm1661_vm8, %v1659_v22  ;;  %vm4599_vm8 = vcmask 654944  }
 0x94e   :  { %v1879_v14 = vpop.f32.mrb[22].mxu1 }
 0x94f   :  { %v1880_v16 = vadd.f32 %v12989_v10, %v1879_v14  ;;  %v9231_v1 = vpop.f32.mrb[23].mxu1 }
 0x950   :  { %v13538_v1 = vld [vmem:[%s14616_s6] ss:$0 sm:$0xff] }
 0x951   :  { %1884 = vrot.lane.b32.xlu1 %v1880_v16, %s12645_s25 }
 0x96e   :  { %v2033_v44 = vpop.f32.mrb[24].mxu1 }
 0x96f   :  { %v2034_v19 = vadd.f32 %v13435_v17, %v2033_v44  ;;  %v9271_v26 = vpop.f32.mrb[25].mxu1 }
 0x971   :  { %v7363_v29 = vclamps-f32 %v2034_v19, 5.0 }
 0x972   :  { %v2187_v49 = vpop.f32.mrb[26].mxu1 }
 0x973   :  { %9305 = vmatmul.mubr.f32.vlgmr.msra.gmra.mrb[26].mxu0 %v7363_v29  ;;  %v9311_v46 = vpop.f32.mrb[27].mxu1  ;;  %v2188_v43 = vadd.f32 %v13395_v58, %v2187_v49 }
 0x974   :  { %11466 = vmatpush3.bf16.msra.mxu0 %v12720_v8  ;;  %9344 = vmatprep.mubr.msk.f32.mxu0 %vm12615_vm2, %v12614_v0 }
 0x975   :  { %11467 = vmatprep.subr.bf16.mxu0 %v12617_v7  ;;  %v7367_v2 = vclamps-f32 %v2188_v43, 5.0 }
 0x978   :  { %11469 = vmatpush3.bf16.msra.mxu0 %v12726_v9 }
 0x979   :  { %11470 = vmatprep.subr.bf16.mxu0 %v12617_v7 }
 0x97c   :  { %11472 = vmatpush3.bf16.msra.mxu0 %v12738_v12 }
 0x97d   :  { %11473 = vmatprep.subr.bf16.mxu0 %v12617_v7 }
 0x980   :  { %11475 = vmatpush3.bf16.msra.mxu0 %v12748_v15 }
 0x981   :  { %11476 = vmatprep.subr.bf16.mxu0 %v12617_v7 }
 0x984   :  { %11478 = vmatpush3.bf16.msra.mxu0 %v12758_v18 }
 0x985   :  { %11479 = vmatprep.subr.bf16.mxu0 %v12617_v7 }
 0x988   :  { %11481 = vmatpush3.bf16.msra.mxu0 %v12768_v21 }
 0x989   :  { %11482 = vmatprep.subr.bf16.mxu0 %v12617_v7 }
 0x98c   :  { %11484 = vmatpush3.bf16.msra.mxu0 %v12778_v24 }
 0x98d   :  { %11485 = vmatprep.subr.bf16.mxu0 %v12617_v7 }
 0x990   :  { %11487 = vmatpush3.bf16.msra.mxu0 %v12789_v27 }
 0x991   :  { %9382 = vmatprep.subr.mxu0 %v12614_v0 }
 0x993   :  { %9345 = vmatmul.mubr.f32.vlgmr.msra.gmra.mrb[28].mxu0 %v7367_v2 }
 0x994   :  { %9383 = vmatpush3.msk.msra.mxu0 %vm75_vm0, %v13295_v5  ;;  %9384 = vmatprep.mubr.msk.f32.mxu0 %vm12615_vm2, %v12614_v0 }
 0x995   :  { %11536 = vmatprep.subr.bf16.mxu0 %v12617_v7 }
 0x997   :  { %9385 = vmatmul.mubr.msk.f32.vlgmr.msra.gmra.mrb[30].mxu0 %vm71_vm1, %v13087_v47 }
 0x998   :  { %11538 = vmatpush3.bf16.msra.mxu0 %v12804_v31  ;;  %9454 = vmatprep.mubr.msk.f32.mxu0 %vm12615_vm2, %v12614_v0 }
 0x999   :  { %11539 = vmatprep.subr.bf16.mxu0 %v12617_v7 }
 0x99c   :  { %11541 = vmatpush3.bf16.msra.mxu0 %v12810_v33 }
 0x99d   :  { %11542 = vmatprep.subr.bf16.mxu0 %v12617_v7 }
 0x9a0   :  { %11544 = vmatpush3.bf16.msra.mxu0 %v12820_v36 }
 0x9a1   :  { %11545 = vmatprep.subr.bf16.mxu0 %v12617_v7 }
 0x9a4   :  { %11547 = vmatpush3.bf16.msra.mxu0 %v12830_v39 }
 0x9a5   :  { %11548 = vmatprep.subr.bf16.mxu0 %v12617_v7 }
 0x9a8   :  { %11550 = vmatpush3.bf16.msra.mxu0 %v12840_v42 }
 0x9a9   :  { %11551 = vmatprep.subr.bf16.mxu0 %v12617_v7 }
 0x9ac   :  { %11553 = vmatpush3.bf16.msra.mxu0 %v12850_v45 }
 0x9ad   :  { %11554 = vmatprep.subr.bf16.mxu0 %v12617_v7 }
 0x9b0   :  { %11556 = vmatpush3.bf16.msra.mxu0 %v12860_v48 }
 0x9b1   :  { %11557 = vmatprep.subr.bf16.mxu0 %v12617_v7 }
 0x9b4   :  { %11559 = vmatpush3.bf16.msra.mxu0 %v12899_v57 }
 0x9b5   :  { %11560 = vmatprep.subr.bf16.mxu0 %v12617_v7 }
 0x9c3   :  { %v1885_v47 = vpop.permute.xlu1 %1884 }
 0x9c4   :  { %7359 = vst.msk [vmem:[%s14614_s7 + $0x8] sm:$0xff] %vm1887_vm9, %v1885_v47  ;;  %vm4825_vm9 = vcmask 687744  }
 0xa46   :  { %v2105_v52 = vpop.f32.mrb[26].mxu0 }
 0xa47   :  { %v2106_v63 = vadd.f32 %v12989_v10, %v2105_v52  ;;  %v9306_v3 = vpop.f32.mrb[27].mxu0 }
 0xa49   :  { %2110 = vrot.lane.b32.xlu0 %v2106_v63, %s12630_s17 }
 0xa66   :  { %v2259_v4 = vpop.f32.mrb[28].mxu0 }
 0xa67   :  { %v2260_v20 = vadd.f32 %v13435_v17, %v2259_v4  ;;  %v9346_v6 = vpop.f32.mrb[29].mxu0 }
 0xa69   :  { %v7368_v11 = vclamps-f32 %v2260_v20, 5.0 }
 0xa6a   :  { %v2413_v13 = vpop.f32.mrb[30].mxu0 }
 0xa6b   :  { %9380 = vmatmul.mubr.f32.vlgmr.msra.gmra.mrb[28].mxu1 %v7368_v11  ;;  %v9386_v22 = vpop.f32.mrb[31].mxu0  ;;  %v2414_v10 = vadd.f32 %v13395_v58, %v2413_v13 }
 0xa6c   :  { %11514 = vmatpush3.bf16.msra.mxu1 %v12720_v8  ;;  %9419 = vmatprep.mubr.msk.f32.mxu1 %vm12615_vm2, %v12614_v0 }
 0xa6d   :  { %11515 = vmatprep.subr.bf16.mxu1 %v12617_v7  ;;  %v7372_v14 = vclamps-f32 %v2414_v10, 5.0 }
 0xa70   :  { %11517 = vmatpush3.bf16.msra.mxu1 %v12726_v9 }
 0xa71   :  { %11518 = vmatprep.subr.bf16.mxu1 %v12617_v7 }
 0xa74   :  { %11520 = vmatpush3.bf16.msra.mxu1 %v12738_v12 }
 0xa75   :  { %11521 = vmatprep.subr.bf16.mxu1 %v12617_v7 }
 0xa78   :  { %11523 = vmatpush3.bf16.msra.mxu1 %v12748_v15 }
 0xa79   :  { %11524 = vmatprep.subr.bf16.mxu1 %v12617_v7 }
 0xa7c   :  { %11526 = vmatpush3.bf16.msra.mxu1 %v12758_v18 }
 0xa7d   :  { %11527 = vmatprep.subr.bf16.mxu1 %v12617_v7 }
 0xa80   :  { %11529 = vmatpush3.bf16.msra.mxu1 %v12768_v21 }
 0xa81   :  { %11530 = vmatprep.subr.bf16.mxu1 %v12617_v7 }
 0xa84   :  { %11532 = vmatpush3.bf16.msra.mxu1 %v12778_v24 }
 0xa85   :  { %11533 = vmatprep.subr.bf16.mxu1 %v12617_v7 }
 0xa88   :  { %11535 = vmatpush3.bf16.msra.mxu1 %v12789_v27 }
 0xa89   :  { %9457 = vmatprep.subr.mxu1 %v12614_v0 }
 0xa8b   :  { %9420 = vmatmul.mubr.f32.vlgmr.msra.gmra.mrb[30].mxu1 %v7372_v14 }
 0xa8c   :  { %9458 = vmatpush3.msk.msra.mxu1 %vm75_vm0, %v13295_v5  ;;  %9459 = vmatprep.mubr.msk.f32.mxu1 %vm12615_vm2, %v12614_v0 }
 0xa8d   :  { %11584 = vmatprep.subr.bf16.mxu1 %v12617_v7 }
 0xa8f   :  { %9460 = vmatmul.mubr.msk.f32.vlgmr.msra.gmra.mrb[32].mxu1 %vm71_vm1, %v13162_v23 }
 0xa90   :  { %11586 = vmatpush3.bf16.msra.mxu1 %v12804_v31  ;;  %9529 = vmatprep.mubr.msk.f32.mxu1 %vm12615_vm2, %v12614_v0 }
 0xa91   :  { %11587 = vmatprep.subr.bf16.mxu1 %v12617_v7 }
 0xa94   :  { %11589 = vmatpush3.bf16.msra.mxu1 %v12810_v33 }
 0xa95   :  { %11590 = vmatprep.subr.bf16.mxu1 %v12617_v7 }
 0xa98   :  { %11592 = vmatpush3.bf16.msra.mxu1 %v12820_v36 }
 0xa99   :  { %11593 = vmatprep.subr.bf16.mxu1 %v12617_v7 }
 0xa9c   :  { %11595 = vmatpush3.bf16.msra.mxu1 %v12830_v39 }
 0xa9d   :  { %11596 = vmatprep.subr.bf16.mxu1 %v12617_v7 }
 0xaa0   :  { %11598 = vmatpush3.bf16.msra.mxu1 %v12840_v42 }
 0xaa1   :  { %11599 = vmatprep.subr.bf16.mxu1 %v12617_v7 }
 0xaa4   :  { %11601 = vmatpush3.bf16.msra.mxu1 %v12850_v45 }
 0xaa5   :  { %11602 = vmatprep.subr.bf16.mxu1 %v12617_v7 }
 0xaa8   :  { %11604 = vmatpush3.bf16.msra.mxu1 %v12860_v48 }
 0xaa9   :  { %11605 = vmatprep.subr.bf16.mxu1 %v12617_v7 }
 0xaac   :  { %11607 = vmatpush3.bf16.msra.mxu1 %v12899_v57 }
 0xaad   :  { %11608 = vmatprep.subr.bf16.mxu1 %v12617_v7 }
 0xabb   :  { %v2111_v23 = vpop.permute.xlu0 %2110 }
 0xabc   :  { %7364 = vst.msk [vmem:[%s14614_s7 + $0x8] sm:$0xff] %vm2113_vm10, %v2111_v23  ;;  %vm5051_vm10 = vcmask 720544  }
 0xb3e   :  { %v2331_v16 = vpop.f32.mrb[28].mxu1 }
 0xb3f   :  { %v2332_v44 = vadd.f32 %v13538_v1, %v2331_v16  ;;  %v9381_v19 = vpop.f32.mrb[29].mxu1 }
 0xb41   :  { %2336 = vrot.lane.b32.xlu1 %v2332_v44, %s12644_s14  ;;  %s14623_s14 = smov 104  }
 0xb5e   :  { %v2485_v26 = vpop.f32.mrb[30].mxu1 }
 0xb5f   :  { %v2486_v29 = vadd.f32 %v13435_v17, %v2485_v26  ;;  %v9421_v49 = vpop.f32.mrb[31].mxu1 }
 0xb61   :  { %v7373_v46 = vclamps-f32 %v2486_v29, 5.0 }
 0xb62   :  { %v2639_v43 = vpop.f32.mrb[32].mxu1 }
 0xb63   :  { %9455 = vmatmul.mubr.f32.vlgmr.msra.gmra.mrb[32].mxu0 %v7373_v46  ;;  %v9461_v2 = vpop.f32.mrb[33].mxu1  ;;  %v2640_v47 = vadd.f32 %v13395_v58, %v2639_v43 }
 0xb64   :  { %11562 = vmatpush3.bf16.msra.mxu0 %v12720_v8  ;;  %9494 = vmatprep.mubr.msk.f32.mxu0 %vm12615_vm2, %v12614_v0 }
 0xb65   :  { %11563 = vmatprep.subr.bf16.mxu0 %v12617_v7  ;;  %v7377_v52 = vclamps-f32 %v2640_v47, 5.0 }
 0xb68   :  { %11565 = vmatpush3.bf16.msra.mxu0 %v12726_v9 }
 0xb69   :  { %11566 = vmatprep.subr.bf16.mxu0 %v12617_v7 }
 0xb6c   :  { %11568 = vmatpush3.bf16.msra.mxu0 %v12738_v12 }
 0xb6d   :  { %11569 = vmatprep.subr.bf16.mxu0 %v12617_v7 }
 0xb70   :  { %11571 = vmatpush3.bf16.msra.mxu0 %v12748_v15 }
 0xb71   :  { %11572 = vmatprep.subr.bf16.mxu0 %v12617_v7 }
 0xb74   :  { %11574 = vmatpush3.bf16.msra.mxu0 %v12758_v18 }
 0xb75   :  { %11575 = vmatprep.subr.bf16.mxu0 %v12617_v7 }
 0xb78   :  { %11577 = vmatpush3.bf16.msra.mxu0 %v12768_v21 }
 0xb79   :  { %11578 = vmatprep.subr.bf16.mxu0 %v12617_v7 }
 0xb7c   :  { %11580 = vmatpush3.bf16.msra.mxu0 %v12778_v24 }
 0xb7d   :  { %11581 = vmatprep.subr.bf16.mxu0 %v12617_v7 }
 0xb80   :  { %11583 = vmatpush3.bf16.msra.mxu0 %v12789_v27 }
 0xb81   :  { %9532 = vmatprep.subr.mxu0 %v12614_v0 }
 0xb83   :  { %9495 = vmatmul.mubr.f32.vlgmr.msra.gmra.mrb[34].mxu0 %v7377_v52 }
 0xb84   :  { %9533 = vmatpush3.msk.msra.mxu0 %vm75_vm0, %v13295_v5  ;;  %9534 = vmatprep.mubr.msk.f32.mxu0 %vm12615_vm2, %v12614_v0 }
 0xb85   :  { %11632 = vmatprep.subr.bf16.mxu0 %v12617_v7 }
 0xb87   :  { %9535 = vmatmul.mubr.msk.f32.vlgmr.msra.gmra.mrb[36].mxu0 %vm71_vm1, %v13091_v50 }
 0xb88   :  { %11634 = vmatpush3.bf16.msra.mxu0 %v12804_v31  ;;  %9604 = vmatprep.mubr.msk.f32.mxu0 %vm12615_vm2, %v12614_v0 }
 0xb89   :  { %11635 = vmatprep.subr.bf16.mxu0 %v12617_v7 }
 0xb8c   :  { %11637 = vmatpush3.bf16.msra.mxu0 %v12810_v33 }
 0xb8d   :  { %11638 = vmatprep.subr.bf16.mxu0 %v12617_v7 }
 0xb90   :  { %11640 = vmatpush3.bf16.msra.mxu0 %v12820_v36 }
 0xb91   :  { %11641 = vmatprep.subr.bf16.mxu0 %v12617_v7 }
 0xb94   :  { %11643 = vmatpush3.bf16.msra.mxu0 %v12830_v39 }
 0xb95   :  { %11644 = vmatprep.subr.bf16.mxu0 %v12617_v7 }
 0xb98   :  { %11646 = vmatpush3.bf16.msra.mxu0 %v12840_v42 }
 0xb99   :  { %11647 = vmatprep.subr.bf16.mxu0 %v12617_v7 }
 0xb9c   :  { %11649 = vmatpush3.bf16.msra.mxu0 %v12850_v45 }
 0xb9d   :  { %11650 = vmatprep.subr.bf16.mxu0 %v12617_v7 }
 0xba0   :  { %11652 = vmatpush3.bf16.msra.mxu0 %v12860_v48 }
 0xba1   :  { %11653 = vmatprep.subr.bf16.mxu0 %v12617_v7 }
 0xba4   :  { %11655 = vmatpush3.bf16.msra.mxu0 %v12899_v57 }
 0xba5   :  { %11656 = vmatprep.subr.bf16.mxu0 %v12617_v7 }
 0xbb3   :  { %v2337_v50 = vpop.permute.xlu1 %2336 }
 0xbb4   :  { %7369 = vst.msk [vmem:[%s14614_s7 + $0x8] sm:$0xff] %vm2339_vm11, %v2337_v50  ;;  %vm5277_vm11 = vcmask 753344  }
 0xc36   :  { %v2557_v63 = vpop.f32.mrb[32].mxu0 }
 0xc37   :  { %v2558_v3 = vadd.f32 %v13538_v1, %v2557_v63  ;;  %v9456_v4 = vpop.f32.mrb[33].mxu0 }
 0xc39   :  { %2562 = vrot.lane.b32.xlu0 %v2558_v3, %s12629_s16 }
 0xc56   :  { %v2711_v20 = vpop.f32.mrb[34].mxu0 }
 0xc57   :  { %v2712_v6 = vadd.f32 %v13435_v17, %v2711_v20  ;;  %v9496_v11 = vpop.f32.mrb[35].mxu0 }
 0xc59   :  { %v7378_v13 = vclamps-f32 %v2712_v6, 5.0 }
 0xc5a   :  { %v2865_v22 = vpop.f32.mrb[36].mxu0 }
 0xc5b   :  { %9530 = vmatmul.mubr.f32.vlgmr.msra.gmra.mrb[34].mxu1 %v7378_v13  ;;  %v9536_v10 = vpop.f32.mrb[37].mxu0  ;;  %v2866_v14 = vadd.f32 %v13395_v58, %v2865_v22 }
 0xc5c   :  { %11610 = vmatpush3.bf16.msra.mxu1 %v12720_v8  ;;  %9569 = vmatprep.mubr.msk.f32.mxu1 %vm12615_vm2, %v12614_v0 }
 0xc5d   :  { %11611 = vmatprep.subr.bf16.mxu1 %v12617_v7  ;;  %v7382_v23 = vclamps-f32 %v2866_v14, 5.0 }
 0xc60   :  { %11613 = vmatpush3.bf16.msra.mxu1 %v12726_v9 }
 0xc61   :  { %11614 = vmatprep.subr.bf16.mxu1 %v12617_v7 }
 0xc64   :  { %11616 = vmatpush3.bf16.msra.mxu1 %v12738_v12 }
 0xc65   :  { %11617 = vmatprep.subr.bf16.mxu1 %v12617_v7 }
 0xc68   :  { %11619 = vmatpush3.bf16.msra.mxu1 %v12748_v15 }
 0xc69   :  { %11620 = vmatprep.subr.bf16.mxu1 %v12617_v7 }
 0xc6c   :  { %11622 = vmatpush3.bf16.msra.mxu1 %v12758_v18 }
 0xc6d   :  { %11623 = vmatprep.subr.bf16.mxu1 %v12617_v7 }
 0xc70   :  { %11625 = vmatpush3.bf16.msra.mxu1 %v12768_v21 }
 0xc71   :  { %11626 = vmatprep.subr.bf16.mxu1 %v12617_v7 }
 0xc74   :  { %11628 = vmatpush3.bf16.msra.mxu1 %v12778_v24 }
 0xc75   :  { %11629 = vmatprep.subr.bf16.mxu1 %v12617_v7 }
 0xc78   :  { %11631 = vmatpush3.bf16.msra.mxu1 %v12789_v27 }
 0xc79   :  { %9607 = vmatprep.subr.mxu1 %v12614_v0 }
 0xc7b   :  { %9570 = vmatmul.mubr.f32.vlgmr.msra.gmra.mrb[36].mxu1 %v7382_v23 }
 0xc7c   :  { %9608 = vmatpush3.msk.msra.mxu1 %vm75_vm0, %v13295_v5  ;;  %9609 = vmatprep.mubr.msk.f32.mxu1 %vm12615_vm2, %v12614_v0 }
 0xc7d   :  { %11680 = vmatprep.subr.bf16.mxu1 %v12617_v7 }
 0xc7f   :  { %9610 = vmatmul.mubr.msk.f32.vlgmr.msra.gmra.mrb[38].mxu1 %vm71_vm1, %v13166_v25 }
 0xc80   :  { %11682 = vmatpush3.bf16.msra.mxu1 %v12804_v31  ;;  %9679 = vmatprep.mubr.msk.f32.mxu1 %vm12615_vm2, %v12614_v0 }
 0xc81   :  { %11683 = vmatprep.subr.bf16.mxu1 %v12617_v7 }
 0xc84   :  { %11685 = vmatpush3.bf16.msra.mxu1 %v12810_v33 }
 0xc85   :  { %11686 = vmatprep.subr.bf16.mxu1 %v12617_v7 }
 0xc88   :  { %11688 = vmatpush3.bf16.msra.mxu1 %v12820_v36 }
 0xc89   :  { %11689 = vmatprep.subr.bf16.mxu1 %v12617_v7 }
 0xc8c   :  { %11691 = vmatpush3.bf16.msra.mxu1 %v12830_v39 }
 0xc8d   :  { %11692 = vmatprep.subr.bf16.mxu1 %v12617_v7 }
 0xc90   :  { %11694 = vmatpush3.bf16.msra.mxu1 %v12840_v42 }
 0xc91   :  { %11695 = vmatprep.subr.bf16.mxu1 %v12617_v7 }
 0xc94   :  { %11697 = vmatpush3.bf16.msra.mxu1 %v12850_v45 }
 0xc95   :  { %11698 = vmatprep.subr.bf16.mxu1 %v12617_v7 }
 0xc98   :  { %11700 = vmatpush3.bf16.msra.mxu1 %v12860_v48 }
 0xc99   :  { %11701 = vmatprep.subr.bf16.mxu1 %v12617_v7 }
 0xc9c   :  { %11703 = vmatpush3.bf16.msra.mxu1 %v12899_v57 }
 0xc9d   :  { %11704 = vmatprep.subr.bf16.mxu1 %v12617_v7 }
 0xcab   :  { %v2563_v25 = vpop.permute.xlu0 %2562 }
 0xcac   :  { %7374 = vst.msk [vmem:[%s14614_s7 + $0x8] sm:$0xff] %vm2565_vm12, %v2563_v25  ;;  %vm5503_vm12 = vcmask 786144  }
 0xd2e   :  { %v2783_v16 = vpop.f32.mrb[34].mxu1 }
 0xd2f   :  { %v2784_v44 = vadd.f32 %v13538_v1, %v2783_v16  ;;  %v9531_v19 = vpop.f32.mrb[35].mxu1 }
 0xd31   :  { %2788 = vrot.lane.b32.xlu1 %v2784_v44, %s12643_s30  ;;  %s14624_s30 = smov 108  }
 0xd4e   :  { %v2937_v26 = vpop.f32.mrb[36].mxu1 }
 0xd4f   :  { %v2938_v29 = vadd.f32 %v13435_v17, %v2937_v26  ;;  %v9571_v49 = vpop.f32.mrb[37].mxu1 }
 0xd51   :  { %v7383_v46 = vclamps-f32 %v2938_v29, 5.0 }
 0xd52   :  { %v3091_v43 = vpop.f32.mrb[38].mxu1 }
 0xd53   :  { %9605 = vmatmul.mubr.f32.vlgmr.msra.gmra.mrb[38].mxu0 %v7383_v46  ;;  %v9611_v2 = vpop.f32.mrb[39].mxu1  ;;  %v3092_v47 = vadd.f32 %v13395_v58, %v3091_v43 }
 0xd54   :  { %11658 = vmatpush3.bf16.msra.mxu0 %v12720_v8  ;;  %9644 = vmatprep.mubr.msk.f32.mxu0 %vm12615_vm2, %v12614_v0 }
 0xd55   :  { %11659 = vmatprep.subr.bf16.mxu0 %v12617_v7  ;;  %v7387_v52 = vclamps-f32 %v3092_v47, 5.0 }
 0xd58   :  { %11661 = vmatpush3.bf16.msra.mxu0 %v12726_v9 }
 0xd59   :  { %11662 = vmatprep.subr.bf16.mxu0 %v12617_v7 }
 0xd5c   :  { %11664 = vmatpush3.bf16.msra.mxu0 %v12738_v12 }
 0xd5d   :  { %11665 = vmatprep.subr.bf16.mxu0 %v12617_v7 }
 0xd60   :  { %11667 = vmatpush3.bf16.msra.mxu0 %v12748_v15 }
 0xd61   :  { %11668 = vmatprep.subr.bf16.mxu0 %v12617_v7 }
 0xd64   :  { %11670 = vmatpush3.bf16.msra.mxu0 %v12758_v18 }
 0xd65   :  { %11671 = vmatprep.subr.bf16.mxu0 %v12617_v7 }
 0xd68   :  { %11673 = vmatpush3.bf16.msra.mxu0 %v12768_v21 }
 0xd69   :  { %11674 = vmatprep.subr.bf16.mxu0 %v12617_v7 }
 0xd6c   :  { %11676 = vmatpush3.bf16.msra.mxu0 %v12778_v24 }
 0xd6d   :  { %11677 = vmatprep.subr.bf16.mxu0 %v12617_v7 }
 0xd70   :  { %11679 = vmatpush3.bf16.msra.mxu0 %v12789_v27 }
 0xd71   :  { %9682 = vmatprep.subr.mxu0 %v12614_v0 }
 0xd73   :  { %9645 = vmatmul.mubr.f32.vlgmr.msra.gmra.mrb[40].mxu0 %v7387_v52 }
 0xd74   :  { %9683 = vmatpush3.msk.msra.mxu0 %vm75_vm0, %v13295_v5  ;;  %9684 = vmatprep.mubr.msk.f32.mxu0 %vm12615_vm2, %v12614_v0 }
 0xd75   :  { %11728 = vmatprep.subr.bf16.mxu0 %v12617_v7 }
 0xd77   :  { %9685 = vmatmul.mubr.msk.f32.vlgmr.msra.gmra.mrb[42].mxu0 %vm71_vm1, %v13098_v51 }
 0xd78   :  { %11730 = vmatpush3.bf16.msra.mxu0 %v12804_v31  ;;  %9754 = vmatprep.mubr.msk.f32.mxu0 %vm12615_vm2, %v12614_v0 }
 0xd79   :  { %11731 = vmatprep.subr.bf16.mxu0 %v12617_v7 }
 0xd7c   :  { %11733 = vmatpush3.bf16.msra.mxu0 %v12810_v33 }
 0xd7d   :  { %11734 = vmatprep.subr.bf16.mxu0 %v12617_v7 }
 0xd80   :  { %11736 = vmatpush3.bf16.msra.mxu0 %v12820_v36 }
 0xd81   :  { %11737 = vmatprep.subr.bf16.mxu0 %v12617_v7 }
 0xd84   :  { %11739 = vmatpush3.bf16.msra.mxu0 %v12830_v39 }
 0xd85   :  { %11740 = vmatprep.subr.bf16.mxu0 %v12617_v7 }
 0xd88   :  { %11742 = vmatpush3.bf16.msra.mxu0 %v12840_v42 }
 0xd89   :  { %11743 = vmatprep.subr.bf16.mxu0 %v12617_v7 }
 0xd8c   :  { %11745 = vmatpush3.bf16.msra.mxu0 %v12850_v45 }
 0xd8d   :  { %11746 = vmatprep.subr.bf16.mxu0 %v12617_v7 }
 0xd90   :  { %11748 = vmatpush3.bf16.msra.mxu0 %v12860_v48 }
 0xd91   :  { %11749 = vmatprep.subr.bf16.mxu0 %v12617_v7 }
 0xd94   :  { %11751 = vmatpush3.bf16.msra.mxu0 %v12899_v57 }
 0xd95   :  { %11752 = vmatprep.subr.bf16.mxu0 %v12617_v7 }
 0xda3   :  { %v2789_v51 = vpop.permute.xlu1 %2788 }
 0xda4   :  { %7379 = vst.msk [vmem:[%s14614_s7 + $0x8] sm:$0xff] %vm2791_vm13, %v2789_v51  ;;  %vm5729_vm13 = vcmask 818944  }
 0xe26   :  { %v3009_v50 = vpop.f32.mrb[38].mxu0 }
 0xe27   :  { %v3010_v63 = vadd.f32 %v13538_v1, %v3009_v50  ;;  %v9606_v3 = vpop.f32.mrb[39].mxu0 }
 0xe29   :  { %3014 = vrot.lane.b32.xlu0 %v3010_v63, %s12628_s15  ;;  %s14625_s15 = smov 112  }
 0xe46   :  { %v3163_v4 = vpop.f32.mrb[40].mxu0 }
 0xe47   :  { %v3164_v20 = vadd.f32 %v13435_v17, %v3163_v4  ;;  %v9646_v6 = vpop.f32.mrb[41].mxu0 }
 0xe49   :  { %v7388_v11 = vclamps-f32 %v3164_v20, 5.0 }
 0xe4a   :  { %v3317_v13 = vpop.f32.mrb[42].mxu0 }
 0xe4b   :  { %9680 = vmatmul.mubr.f32.vlgmr.msra.gmra.mrb[40].mxu1 %v7388_v11  ;;  %v9686_v22 = vpop.f32.mrb[43].mxu0  ;;  %v3318_v10 = vadd.f32 %v13395_v58, %v3317_v13  ;;  %v13815_v13 = vld [vmem:[%s14609_s1] sm:$0xf] }
 0xe4c   :  { %11706 = vmatpush3.bf16.msra.mxu1 %v12720_v8  ;;  %9719 = vmatprep.mubr.msk.f32.mxu1 %vm12615_vm2, %v12614_v0 }
 0xe4d   :  { %11707 = vmatprep.subr.bf16.mxu1 %v12617_v7  ;;  %v7392_v14 = vclamps-f32 %v3318_v10, 5.0 }
 0xe50   :  { %11709 = vmatpush3.bf16.msra.mxu1 %v12726_v9 }
 0xe51   :  { %11710 = vmatprep.subr.bf16.mxu1 %v12617_v7 }
 0xe54   :  { %11712 = vmatpush3.bf16.msra.mxu1 %v12738_v12 }
 0xe55   :  { %11713 = vmatprep.subr.bf16.mxu1 %v12617_v7 }
 0xe58   :  { %11715 = vmatpush3.bf16.msra.mxu1 %v12748_v15 }
 0xe59   :  { %11716 = vmatprep.subr.bf16.mxu1 %v12617_v7 }
 0xe5c   :  { %11718 = vmatpush3.bf16.msra.mxu1 %v12758_v18 }
 0xe5d   :  { %11719 = vmatprep.subr.bf16.mxu1 %v12617_v7 }
 0xe60   :  { %11721 = vmatpush3.bf16.msra.mxu1 %v12768_v21 }
 0xe61   :  { %11722 = vmatprep.subr.bf16.mxu1 %v12617_v7 }
 0xe64   :  { %11724 = vmatpush3.bf16.msra.mxu1 %v12778_v24 }
 0xe65   :  { %11725 = vmatprep.subr.bf16.mxu1 %v12617_v7 }
 0xe68   :  { %11727 = vmatpush3.bf16.msra.mxu1 %v12789_v27 }
 0xe69   :  { %9757 = vmatprep.subr.mxu1 %v12614_v0 }
 0xe6b   :  { %9720 = vmatmul.mubr.f32.vlgmr.msra.gmra.mrb[42].mxu1 %v7392_v14 }
 0xe6c   :  { %9758 = vmatpush3.msk.msra.mxu1 %vm75_vm0, %v13295_v5  ;;  %9759 = vmatprep.mubr.msk.f32.mxu1 %vm12615_vm2, %v12614_v0 }
 0xe6d   :  { %11776 = vmatprep.subr.bf16.mxu1 %v12617_v7 }
 0xe6f   :  { %9760 = vmatmul.mubr.msk.f32.vlgmr.msra.gmra.mrb[44].mxu1 %vm71_vm1, %v13173_v28 }
 0xe70   :  { %11778 = vmatpush3.bf16.msra.mxu1 %v12804_v31  ;;  %9829 = vmatprep.mubr.msk.f32.mxu1 %vm12615_vm2, %v12614_v0 }
 0xe71   :  { %11779 = vmatprep.subr.bf16.mxu1 %v12617_v7 }
 0xe74   :  { %11781 = vmatpush3.bf16.msra.mxu1 %v12810_v33 }
 0xe75   :  { %11782 = vmatprep.subr.bf16.mxu1 %v12617_v7 }
 0xe78   :  { %11784 = vmatpush3.bf16.msra.mxu1 %v12820_v36 }
 0xe79   :  { %11785 = vmatprep.subr.bf16.mxu1 %v12617_v7 }
 0xe7c   :  { %11787 = vmatpush3.bf16.msra.mxu1 %v12830_v39 }
 0xe7d   :  { %11788 = vmatprep.subr.bf16.mxu1 %v12617_v7 }
 0xe80   :  { %11790 = vmatpush3.bf16.msra.mxu1 %v12840_v42 }
 0xe81   :  { %11791 = vmatprep.subr.bf16.mxu1 %v12617_v7 }
 0xe84   :  { %11793 = vmatpush3.bf16.msra.mxu1 %v12850_v45 }
 0xe85   :  { %11794 = vmatprep.subr.bf16.mxu1 %v12617_v7 }
 0xe88   :  { %11796 = vmatpush3.bf16.msra.mxu1 %v12860_v48 }
 0xe89   :  { %11797 = vmatprep.subr.bf16.mxu1 %v12617_v7 }
 0xe8c   :  { %11799 = vmatpush3.bf16.msra.mxu1 %v12899_v57 }
 0xe8d   :  { %11800 = vmatprep.subr.bf16.mxu1 %v12617_v7 }
 0xe9b   :  { %v3015_v28 = vpop.permute.xlu0 %3014 }
 0xe9c   :  { %7384 = vst.msk [vmem:[%s14614_s7 + $0x8] sm:$0xff] %vm3017_vm14, %v3015_v28  ;;  %vm5955_vm14 = vcmask 851744  }
 0xf1e   :  { %v3235_v23 = vpop.f32.mrb[40].mxu1 }
 0xf1f   :  { %v3236_v25 = vadd.f32 %v13538_v1, %v3235_v23  ;;  %v9681_v16 = vpop.f32.mrb[41].mxu1 }
 0xf21   :  { %3240 = vrot.lane.b32.xlu1 %v3236_v25, %s12642_s23 }
 0xf3e   :  { %v3389_v44 = vpop.f32.mrb[42].mxu1 }
 0xf3f   :  { %v3390_v19 = vadd.f32 %v13435_v17, %v3389_v44  ;;  %v9721_v26 = vpop.f32.mrb[43].mxu1 }
 0xf41   :  { %v7393_v29 = vclamps-f32 %v3390_v19, 5.0 }
 0xf42   :  { %v3543_v49 = vpop.f32.mrb[44].mxu1 }
 0xf43   :  { %9755 = vmatmul.mubr.f32.vlgmr.msra.gmra.mrb[44].mxu0 %v7393_v29  ;;  %v9761_v46 = vpop.f32.mrb[45].mxu1  ;;  %v3544_v43 = vadd.f32 %v13395_v58, %v3543_v49 }
 0xf44   :  { %11754 = vmatpush3.bf16.msra.mxu0 %v12720_v8  ;;  %9794 = vmatprep.mubr.msk.f32.mxu0 %vm12615_vm2, %v12614_v0 }
 0xf45   :  { %11755 = vmatprep.subr.bf16.mxu0 %v12617_v7  ;;  %v7397_v2 = vclamps-f32 %v3544_v43, 5.0 }
 0xf48   :  { %11757 = vmatpush3.bf16.msra.mxu0 %v12726_v9 }
 0xf49   :  { %11758 = vmatprep.subr.bf16.mxu0 %v12617_v7 }
 0xf4c   :  { %11760 = vmatpush3.bf16.msra.mxu0 %v12738_v12 }
 0xf4d   :  { %11761 = vmatprep.subr.bf16.mxu0 %v12617_v7 }
 0xf50   :  { %11763 = vmatpush3.bf16.msra.mxu0 %v12748_v15 }
 0xf51   :  { %11764 = vmatprep.subr.bf16.mxu0 %v12617_v7 }
 0xf54   :  { %11766 = vmatpush3.bf16.msra.mxu0 %v12758_v18 }
 0xf55   :  { %11767 = vmatprep.subr.bf16.mxu0 %v12617_v7 }
 0xf58   :  { %11769 = vmatpush3.bf16.msra.mxu0 %v12768_v21 }
 0xf59   :  { %11770 = vmatprep.subr.bf16.mxu0 %v12617_v7 }
 0xf5c   :  { %11772 = vmatpush3.bf16.msra.mxu0 %v12778_v24 }
 0xf5d   :  { %11773 = vmatprep.subr.bf16.mxu0 %v12617_v7 }
 0xf60   :  { %11775 = vmatpush3.bf16.msra.mxu0 %v12789_v27 }
 0xf61   :  { %9832 = vmatprep.subr.mxu0 %v12614_v0 }
 0xf63   :  { %9795 = vmatmul.mubr.f32.vlgmr.msra.gmra.mrb[46].mxu0 %v7397_v2 }
 0xf64   :  { %9833 = vmatpush3.msk.msra.mxu0 %vm75_vm0, %v13295_v5  ;;  %9834 = vmatprep.mubr.msk.f32.mxu0 %vm12615_vm2, %v12614_v0 }
 0xf65   :  { %11824 = vmatprep.subr.bf16.mxu0 %v12617_v7 }
 0xf67   :  { %9835 = vmatmul.mubr.msk.f32.vlgmr.msra.gmra.mrb[48].mxu0 %vm71_vm1, %v13102_v53 }
 0xf68   :  { %11826 = vmatpush3.bf16.msra.mxu0 %v12804_v31  ;;  %9904 = vmatprep.mubr.msk.f32.mxu0 %vm12615_vm2, %v12614_v0 }
 0xf69   :  { %11827 = vmatprep.subr.bf16.mxu0 %v12617_v7 }
 0xf6c   :  { %11829 = vmatpush3.bf16.msra.mxu0 %v12810_v33 }
 0xf6d   :  { %11830 = vmatprep.subr.bf16.mxu0 %v12617_v7 }
 0xf70   :  { %11832 = vmatpush3.bf16.msra.mxu0 %v12820_v36 }
 0xf71   :  { %11833 = vmatprep.subr.bf16.mxu0 %v12617_v7 }
 0xf74   :  { %11835 = vmatpush3.bf16.msra.mxu0 %v12830_v39 }
 0xf75   :  { %11836 = vmatprep.subr.bf16.mxu0 %v12617_v7 }
 0xf78   :  { %11838 = vmatpush3.bf16.msra.mxu0 %v12840_v42 }
 0xf79   :  { %11839 = vmatprep.subr.bf16.mxu0 %v12617_v7 }
 0xf7c   :  { %11841 = vmatpush3.bf16.msra.mxu0 %v12850_v45 }
 0xf7d   :  { %11842 = vmatprep.subr.bf16.mxu0 %v12617_v7 }
 0xf80   :  { %11844 = vmatpush3.bf16.msra.mxu0 %v12860_v48 }
 0xf81   :  { %11845 = vmatprep.subr.bf16.mxu0 %v12617_v7 }
 0xf84   :  { %11847 = vmatpush3.bf16.msra.mxu0 %v12899_v57 }
 0xf85   :  { %11848 = vmatprep.subr.bf16.mxu0 %v12617_v7 }
 0xf93   :  { %v3241_v53 = vpop.permute.xlu1 %3240 }
 0xf94   :  { %7389 = vst.msk [vmem:[%s14614_s7 + $0x8] sm:$0xff] %vm3243_vm15, %v3241_v53  ;;  %vm6181_vm15 = vcmask 884544  }
0x1016   :  { %v3461_v5 = vpop.f32.mrb[44].mxu0 }
0x1017   :  { %v3462_v47 = vadd.f32 %v13538_v1, %v3461_v5  ;;  %v9756_v52 = vpop.f32.mrb[45].mxu0 }
0x1019   :  { %3466 = vrot.lane.b32.xlu0 %v3462_v47, %s12627_s13 }
0x1036   :  { %v3615_v51 = vpop.f32.mrb[46].mxu0 }
0x1037   :  { %v3616_v50 = vadd.f32 %v13435_v17, %v3615_v51  ;;  %v9796_v63 = vpop.f32.mrb[47].mxu0 }
0x1039   :  { %v7398_v3 = vclamps-f32 %v3616_v50, 5.0 }
0x103a   :  { %v3769_v4 = vpop.f32.mrb[48].mxu0 }
0x103b   :  { %9830 = vmatmul.mubr.f32.vlgmr.msra.gmra.mrb[46].mxu1 %v7398_v3  ;;  %v9836_v20 = vpop.f32.mrb[49].mxu0  ;;  %v3770_v6 = vadd.f32 %v13395_v58, %v3769_v4 }
0x103c   :  { %11802 = vmatpush3.bf16.msra.mxu1 %v12720_v8  ;;  %9869 = vmatprep.mubr.msk.f32.mxu1 %vm12615_vm2, %v12614_v0 }
0x103d   :  { %11803 = vmatprep.subr.bf16.mxu1 %v12617_v7  ;;  %v7402_v11 = vclamps-f32 %v3770_v6, 5.0  ;;  %v13955_v6 = vld [vmem:[%s14615_s4] ss:$0 sm:$0xff] }
0x1040   :  { %11805 = vmatpush3.bf16.msra.mxu1 %v12726_v9 }
0x1041   :  { %11806 = vmatprep.subr.bf16.mxu1 %v12617_v7 }
0x1044   :  { %11808 = vmatpush3.bf16.msra.mxu1 %v12738_v12 }
0x1045   :  { %11809 = vmatprep.subr.bf16.mxu1 %v12617_v7 }
0x1048   :  { %11811 = vmatpush3.bf16.msra.mxu1 %v12748_v15 }
0x1049   :  { %11812 = vmatprep.subr.bf16.mxu1 %v12617_v7 }
0x104c   :  { %11814 = vmatpush3.bf16.msra.mxu1 %v12758_v18 }
0x104d   :  { %11815 = vmatprep.subr.bf16.mxu1 %v12617_v7 }
0x1050   :  { %11817 = vmatpush3.bf16.msra.mxu1 %v12768_v21 }
0x1051   :  { %11818 = vmatprep.subr.bf16.mxu1 %v12617_v7 }
0x1054   :  { %11820 = vmatpush3.bf16.msra.mxu1 %v12778_v24 }
0x1055   :  { %11821 = vmatprep.subr.bf16.mxu1 %v12617_v7 }
0x1058   :  { %11823 = vmatpush3.bf16.msra.mxu1 %v12789_v27 }
0x1059   :  { %9907 = vmatprep.subr.mxu1 %v12614_v0 }
0x105b   :  { %9870 = vmatmul.mubr.f32.vlgmr.msra.gmra.mrb[48].mxu1 %v7402_v11 }
0x105c   :  { %9908 = vmatpush3.msk.msra.mxu1 %vm75_vm0, %v13815_v13  ;;  %9909 = vmatprep.mubr.msk.f32.mxu1 %vm12615_vm2, %v12614_v0 }
0x105d   :  { %11872 = vmatprep.subr.bf16.mxu1 %v12617_v7 }
0x105f   :  { %9910 = vmatmul.mubr.msk.f32.vlgmr.msra.gmra.mrb[50].mxu1 %vm71_vm1, %v13177_v30 }
0x1060   :  { %11874 = vmatpush3.bf16.msra.mxu1 %v12804_v31  ;;  %9979 = vmatprep.mubr.msk.f32.mxu1 %vm12615_vm2, %v12614_v0 }
0x1061   :  { %11875 = vmatprep.subr.bf16.mxu1 %v12617_v7 }
0x1064   :  { %11877 = vmatpush3.bf16.msra.mxu1 %v12810_v33 }
0x1065   :  { %11878 = vmatprep.subr.bf16.mxu1 %v12617_v7 }
0x1068   :  { %11880 = vmatpush3.bf16.msra.mxu1 %v12820_v36 }
0x1069   :  { %11881 = vmatprep.subr.bf16.mxu1 %v12617_v7 }
0x106c   :  { %11883 = vmatpush3.bf16.msra.mxu1 %v12830_v39 }
0x106d   :  { %11884 = vmatprep.subr.bf16.mxu1 %v12617_v7 }
0x1070   :  { %11886 = vmatpush3.bf16.msra.mxu1 %v12840_v42 }
0x1071   :  { %11887 = vmatprep.subr.bf16.mxu1 %v12617_v7 }
0x1074   :  { %11889 = vmatpush3.bf16.msra.mxu1 %v12850_v45 }
0x1075   :  { %11890 = vmatprep.subr.bf16.mxu1 %v12617_v7 }
0x1078   :  { %11892 = vmatpush3.bf16.msra.mxu1 %v12860_v48 }
0x1079   :  { %11893 = vmatprep.subr.bf16.mxu1 %v12617_v7 }
0x107c   :  { %11895 = vmatpush3.bf16.msra.mxu1 %v12899_v57 }
0x107d   :  { %11896 = vmatprep.subr.bf16.mxu1 %v12617_v7 }
0x108b   :  { %v3467_v30 = vpop.permute.xlu0 %3466 }
0x108c   :  { %7394 = vst.msk [vmem:[%s14614_s7 + $0x8] sm:$0xff] %vm3469_vm3, %v3467_v30  ;;  %vm6407_vm3 = vcmask 917344  }
0x110e   :  { %v3687_v22 = vpop.f32.mrb[46].mxu1 }
0x110f   :  { %v3688_v10 = vadd.f32 %v13538_v1, %v3687_v22  ;;  %v9831_v14 = vpop.f32.mrb[47].mxu1 }
0x1111   :  { %3692 = vrot.lane.b32.xlu1 %v3688_v10, %s12641_s22 }
0x112e   :  { %v3841_v28 = vpop.f32.mrb[48].mxu1 }
0x112f   :  { %v3842_v23 = vadd.f32 %v13435_v17, %v3841_v28  ;;  %v9871_v25 = vpop.f32.mrb[49].mxu1 }
0x1131   :  { %v7403_v16 = vclamps-f32 %v3842_v23, 5.0 }
0x1132   :  { %v3995_v44 = vpop.f32.mrb[50].mxu1 }
0x1133   :  { %9905 = vmatmul.mubr.f32.vlgmr.msra.gmra.mrb[50].mxu0 %v7403_v16  ;;  %v9911_v19 = vpop.f32.mrb[51].mxu1  ;;  %v3996_v26 = vadd.f32 %v13395_v58, %v3995_v44 }
0x1134   :  { %11850 = vmatpush3.bf16.msra.mxu0 %v12720_v8  ;;  %9944 = vmatprep.mubr.msk.f32.mxu0 %vm12615_vm2, %v12614_v0 }
0x1135   :  { %11851 = vmatprep.subr.bf16.mxu0 %v12617_v7  ;;  %v7407_v29 = vclamps-f32 %v3996_v26, 5.0 }
0x1138   :  { %11853 = vmatpush3.bf16.msra.mxu0 %v12726_v9 }
0x1139   :  { %11854 = vmatprep.subr.bf16.mxu0 %v12617_v7 }
0x113c   :  { %11856 = vmatpush3.bf16.msra.mxu0 %v12738_v12 }
0x113d   :  { %11857 = vmatprep.subr.bf16.mxu0 %v12617_v7 }
0x1140   :  { %11859 = vmatpush3.bf16.msra.mxu0 %v12748_v15 }
0x1141   :  { %11860 = vmatprep.subr.bf16.mxu0 %v12617_v7 }
0x1144   :  { %11862 = vmatpush3.bf16.msra.mxu0 %v12758_v18 }
0x1145   :  { %11863 = vmatprep.subr.bf16.mxu0 %v12617_v7 }
0x1148   :  { %11865 = vmatpush3.bf16.msra.mxu0 %v12768_v21 }
0x1149   :  { %11866 = vmatprep.subr.bf16.mxu0 %v12617_v7 }
0x114c   :  { %11868 = vmatpush3.bf16.msra.mxu0 %v12778_v24 }
0x114d   :  { %11869 = vmatprep.subr.bf16.mxu0 %v12617_v7 }
0x1150   :  { %11871 = vmatpush3.bf16.msra.mxu0 %v12789_v27 }
0x1151   :  { %9982 = vmatprep.subr.mxu0 %v12614_v0 }
0x1153   :  { %9945 = vmatmul.mubr.f32.vlgmr.msra.gmra.mrb[52].mxu0 %v7407_v29 }
0x1154   :  { %9983 = vmatpush3.msk.msra.mxu0 %vm75_vm0, %v13815_v13  ;;  %9984 = vmatprep.mubr.msk.f32.mxu0 %vm12615_vm2, %v12614_v0 }
0x1155   :  { %11920 = vmatprep.subr.bf16.mxu0 %v12617_v7 }
0x1157   :  { %9985 = vmatmul.mubr.msk.f32.vlgmr.msra.gmra.mrb[54].mxu0 %vm71_vm1, %v13113_v54 }
0x1158   :  { %11922 = vmatpush3.bf16.msra.mxu0 %v12804_v31  ;;  %10054 = vmatprep.mubr.msk.f32.mxu0 %vm12615_vm2, %v12614_v0 }
0x1159   :  { %11923 = vmatprep.subr.bf16.mxu0 %v12617_v7 }
0x115c   :  { %11925 = vmatpush3.bf16.msra.mxu0 %v12810_v33 }
0x115d   :  { %11926 = vmatprep.subr.bf16.mxu0 %v12617_v7 }
0x1160   :  { %11928 = vmatpush3.bf16.msra.mxu0 %v12820_v36 }
0x1161   :  { %11929 = vmatprep.subr.bf16.mxu0 %v12617_v7 }
0x1164   :  { %11931 = vmatpush3.bf16.msra.mxu0 %v12830_v39 }
0x1165   :  { %11932 = vmatprep.subr.bf16.mxu0 %v12617_v7 }
0x1168   :  { %11934 = vmatpush3.bf16.msra.mxu0 %v12840_v42 }
0x1169   :  { %11935 = vmatprep.subr.bf16.mxu0 %v12617_v7 }
0x116c   :  { %11937 = vmatpush3.bf16.msra.mxu0 %v12850_v45 }
0x116d   :  { %11938 = vmatprep.subr.bf16.mxu0 %v12617_v7 }
0x1170   :  { %11940 = vmatpush3.bf16.msra.mxu0 %v12860_v48 }
0x1171   :  { %11941 = vmatprep.subr.bf16.mxu0 %v12617_v7 }
0x1174   :  { %11943 = vmatpush3.bf16.msra.mxu0 %v12899_v57 }
0x1175   :  { %11944 = vmatprep.subr.bf16.mxu0 %v12617_v7 }
0x1183   :  { %v3693_v54 = vpop.permute.xlu1 %3692 }
0x1184   :  { %7399 = vst.msk [vmem:[%s14614_s7 + $0x8] sm:$0xff] %vm3695_vm4, %v3693_v54  ;;  %vm7311_vm4 = vcmask 1048544  }
0x1206   :  { %v3913_v58 = vpop.f32.mrb[50].mxu0 }
0x1207   :  { %v3914_v49 = vadd.f32 %v13538_v1, %v3913_v58  ;;  %v9906_v46 = vpop.f32.mrb[51].mxu0 }
0x1209   :  { %3918 = vrot.lane.b32.xlu0 %v3914_v49, %s12626_s12 }
0x1226   :  { %v4067_v43 = vpop.f32.mrb[52].mxu0 }
0x1227   :  { %v4068_v2 = vadd.f32 %v13435_v17, %v4067_v43  ;;  %v9946_v53 = vpop.f32.mrb[53].mxu0  ;;  %v13915_v17 = vld [vmem:[%s14613_s2] ss:$0 sm:$0xff] }
0x1229   :  { %v7408_v5 = vclamps-f32 %v4068_v2, 5.0  ;;  %v14058_v2 = vld [vmem:[%s14616_s6] ss:$0 sm:$0xff] }
0x122a   :  { %v4221_v47 = vpop.f32.mrb[54].mxu0 }
0x122b   :  { %9980 = vmatmul.mubr.f32.vlgmr.msra.gmra.mrb[52].mxu1 %v7408_v5  ;;  %v9986_v52 = vpop.f32.mrb[55].mxu0  ;;  %v4222_v51 = vadd.f32 %v13915_v17, %v4221_v47 }
0x122c   :  { %11898 = vmatpush3.bf16.msra.mxu1 %v12720_v8  ;;  %10019 = vmatprep.mubr.msk.f32.mxu1 %vm12615_vm2, %v12614_v0 }
0x122d   :  { %11899 = vmatprep.subr.bf16.mxu1 %v12617_v7  ;;  %v7412_v50 = vclamps-f32 %v4222_v51, 5.0 }
0x1230   :  { %11901 = vmatpush3.bf16.msra.mxu1 %v12726_v9 }
0x1231   :  { %11902 = vmatprep.subr.bf16.mxu1 %v12617_v7 }
0x1234   :  { %11904 = vmatpush3.bf16.msra.mxu1 %v12738_v12 }
0x1235   :  { %11905 = vmatprep.subr.bf16.mxu1 %v12617_v7 }
0x1238   :  { %11907 = vmatpush3.bf16.msra.mxu1 %v12748_v15 }
0x1239   :  { %11908 = vmatprep.subr.bf16.mxu1 %v12617_v7 }
0x123c   :  { %11910 = vmatpush3.bf16.msra.mxu1 %v12758_v18 }
0x123d   :  { %11911 = vmatprep.subr.bf16.mxu1 %v12617_v7 }
0x1240   :  { %11913 = vmatpush3.bf16.msra.mxu1 %v12768_v21 }
0x1241   :  { %11914 = vmatprep.subr.bf16.mxu1 %v12617_v7 }
0x1244   :  { %11916 = vmatpush3.bf16.msra.mxu1 %v12778_v24 }
0x1245   :  { %11917 = vmatprep.subr.bf16.mxu1 %v12617_v7 }
0x1248   :  { %11919 = vmatpush3.bf16.msra.mxu1 %v12789_v27 }
0x1249   :  { %10057 = vmatprep.subr.mxu1 %v12614_v0 }
0x124b   :  { %10020 = vmatmul.mubr.f32.vlgmr.msra.gmra.mrb[54].mxu1 %v7412_v50 }
0x124c   :  { %10058 = vmatpush3.msk.msra.mxu1 %vm75_vm0, %v13815_v13  ;;  %10059 = vmatprep.mubr.msk.f32.mxu1 %vm12615_vm2, %v12614_v0 }
0x124d   :  { %11968 = vmatprep.subr.bf16.mxu1 %v12617_v7 }
0x124f   :  { %10060 = vmatmul.mubr.msk.f32.vlgmr.msra.gmra.mrb[56].mxu1 %vm71_vm1, %v13188_v32 }
0x1250   :  { %11970 = vmatpush3.bf16.msra.mxu1 %v12804_v31  ;;  %10129 = vmatprep.mubr.msk.f32.mxu1 %vm12615_vm2, %v12614_v0 }
0x1251   :  { %11971 = vmatprep.subr.bf16.mxu1 %v12617_v7 }
0x1254   :  { %11973 = vmatpush3.bf16.msra.mxu1 %v12810_v33 }
0x1255   :  { %11974 = vmatprep.subr.bf16.mxu1 %v12617_v7 }
0x1258   :  { %11976 = vmatpush3.bf16.msra.mxu1 %v12820_v36 }
0x1259   :  { %11977 = vmatprep.subr.bf16.mxu1 %v12617_v7 }
0x125c   :  { %11979 = vmatpush3.bf16.msra.mxu1 %v12830_v39 }
0x125d   :  { %11980 = vmatprep.subr.bf16.mxu1 %v12617_v7 }
0x1260   :  { %11982 = vmatpush3.bf16.msra.mxu1 %v12840_v42 }
0x1261   :  { %11983 = vmatprep.subr.bf16.mxu1 %v12617_v7 }
0x1264   :  { %11985 = vmatpush3.bf16.msra.mxu1 %v12850_v45 }
0x1265   :  { %11986 = vmatprep.subr.bf16.mxu1 %v12617_v7 }
0x1268   :  { %11988 = vmatpush3.bf16.msra.mxu1 %v12860_v48 }
0x1269   :  { %11989 = vmatprep.subr.bf16.mxu1 %v12617_v7 }
0x126c   :  { %11991 = vmatpush3.bf16.msra.mxu1 %v12899_v57 }
0x126d   :  { %11992 = vmatprep.subr.bf16.mxu1 %v12617_v7 }
0x127b   :  { %v3919_v32 = vpop.permute.xlu0 %3918 }
0x127c   :  { %7404 = vst.msk [vmem:[%s14614_s7 + $0x8] sm:$0xff] %vm3921_vm5, %v3919_v32 }
0x12fe   :  { %v4139_v63 = vpop.f32.mrb[52].mxu1 }
0x12ff   :  { %v4140_v3 = vadd.f32 %v13538_v1, %v4139_v63  ;;  %v9981_v4 = vpop.f32.mrb[53].mxu1 }
0x1301   :  { %4144 = vrot.lane.b32.xlu1 %v4140_v3, %s12640_s20 }
0x131e   :  { %v4293_v20 = vpop.f32.mrb[54].mxu1 }
0x131f   :  { %v4294_v11 = vadd.f32 %v13955_v6, %v4293_v20  ;;  %v10021_v30 = vpop.f32.mrb[55].mxu1 }
0x1321   :  { %v7413_v22 = vclamps-f32 %v4294_v11, 5.0 }
0x1322   :  { %v4447_v10 = vpop.f32.mrb[56].mxu1 }
0x1323   :  { %10055 = vmatmul.mubr.f32.vlgmr.msra.gmra.mrb[56].mxu0 %v7413_v22  ;;  %v10061_v14 = vpop.f32.mrb[57].mxu1  ;;  %v4448_v28 = vadd.f32 %v13915_v17, %v4447_v10 }
0x1324   :  { %11946 = vmatpush3.bf16.msra.mxu0 %v12720_v8  ;;  %10094 = vmatprep.mubr.msk.f32.mxu0 %vm12615_vm2, %v12614_v0 }
0x1325   :  { %11947 = vmatprep.subr.bf16.mxu0 %v12617_v7  ;;  %v7417_v23 = vclamps-f32 %v4448_v28, 5.0 }
0x1328   :  { %11949 = vmatpush3.bf16.msra.mxu0 %v12726_v9 }
0x1329   :  { %11950 = vmatprep.subr.bf16.mxu0 %v12617_v7 }
0x132c   :  { %11952 = vmatpush3.bf16.msra.mxu0 %v12738_v12 }
0x132d   :  { %11953 = vmatprep.subr.bf16.mxu0 %v12617_v7 }
0x1330   :  { %11955 = vmatpush3.bf16.msra.mxu0 %v12748_v15 }
0x1331   :  { %11956 = vmatprep.subr.bf16.mxu0 %v12617_v7 }
0x1334   :  { %11958 = vmatpush3.bf16.msra.mxu0 %v12758_v18 }
0x1335   :  { %11959 = vmatprep.subr.bf16.mxu0 %v12617_v7 }
0x1338   :  { %11961 = vmatpush3.bf16.msra.mxu0 %v12768_v21 }
0x1339   :  { %11962 = vmatprep.subr.bf16.mxu0 %v12617_v7 }
0x133c   :  { %11964 = vmatpush3.bf16.msra.mxu0 %v12778_v24 }
0x133d   :  { %11965 = vmatprep.subr.bf16.mxu0 %v12617_v7 }
0x1340   :  { %11967 = vmatpush3.bf16.msra.mxu0 %v12789_v27 }
0x1341   :  { %10132 = vmatprep.subr.mxu0 %v12614_v0 }
0x1343   :  { %10095 = vmatmul.mubr.f32.vlgmr.msra.gmra.mrb[58].mxu0 %v7417_v23 }
0x1344   :  { %10133 = vmatpush3.msk.msra.mxu0 %vm75_vm0, %v13815_v13  ;;  %10134 = vmatprep.mubr.msk.f32.mxu0 %vm12615_vm2, %v12614_v0 }
0x1345   :  { %12016 = vmatprep.subr.bf16.mxu0 %v12617_v7 }
0x1347   :  { %10135 = vmatmul.mubr.msk.f32.vlgmr.msra.gmra.mrb[60].mxu0 %vm71_vm1, %v13118_v55 }
0x1348   :  { %12018 = vmatpush3.bf16.msra.mxu0 %v12804_v31  ;;  %10204 = vmatprep.mubr.msk.f32.mxu0 %vm12615_vm2, %v12614_v0 }
0x1349   :  { %12019 = vmatprep.subr.bf16.mxu0 %v12617_v7 }
0x134c   :  { %12021 = vmatpush3.bf16.msra.mxu0 %v12810_v33 }
0x134d   :  { %12022 = vmatprep.subr.bf16.mxu0 %v12617_v7 }
0x1350   :  { %12024 = vmatpush3.bf16.msra.mxu0 %v12820_v36 }
0x1351   :  { %12025 = vmatprep.subr.bf16.mxu0 %v12617_v7 }
0x1354   :  { %12027 = vmatpush3.bf16.msra.mxu0 %v12830_v39 }
0x1355   :  { %12028 = vmatprep.subr.bf16.mxu0 %v12617_v7 }
0x1358   :  { %12030 = vmatpush3.bf16.msra.mxu0 %v12840_v42 }
0x1359   :  { %12031 = vmatprep.subr.bf16.mxu0 %v12617_v7 }
0x135c   :  { %12033 = vmatpush3.bf16.msra.mxu0 %v12850_v45 }
0x135d   :  { %12034 = vmatprep.subr.bf16.mxu0 %v12617_v7 }
0x1360   :  { %12036 = vmatpush3.bf16.msra.mxu0 %v12860_v48 }
0x1361   :  { %12037 = vmatprep.subr.bf16.mxu0 %v12617_v7 }
0x1364   :  { %12039 = vmatpush3.bf16.msra.mxu0 %v12899_v57 }
0x1365   :  { %12040 = vmatprep.subr.bf16.mxu0 %v12617_v7 }
0x1373   :  { %v4145_v55 = vpop.permute.xlu1 %4144 }
0x1374   :  { %7409 = vst.msk [vmem:[%s14614_s7 + $0x8] sm:$0xff] %vm4147_vm6, %v4145_v55 }
0x13f6   :  { %v4365_v25 = vpop.f32.mrb[56].mxu0 }
0x13f7   :  { %v4366_v16 = vadd.f32 %v13538_v1, %v4365_v25  ;;  %v10056_v44 = vpop.f32.mrb[57].mxu0 }
0x13f9   :  { %4370 = vrot.lane.b32.xlu0 %v4366_v16, %s12625_s0 }
0x1416   :  { %v4519_v19 = vpop.f32.mrb[58].mxu0 }
0x1417   :  { %v4520_v26 = vadd.f32 %v13955_v6, %v4519_v19  ;;  %v10096_v29 = vpop.f32.mrb[59].mxu0 }
0x1419   :  { %v7418_v54 = vclamps-f32 %v4520_v26, 5.0 }
0x141a   :  { %v4673_v58 = vpop.f32.mrb[60].mxu0 }
0x141b   :  { %10130 = vmatmul.mubr.f32.vlgmr.msra.gmra.mrb[58].mxu1 %v7418_v54  ;;  %v10136_v49 = vpop.f32.mrb[61].mxu0  ;;  %v4674_v1 = vadd.f32 %v13915_v17, %v4673_v58 }
0x141c   :  { %11994 = vmatpush3.bf16.msra.mxu1 %v12720_v8  ;;  %10169 = vmatprep.mubr.msk.f32.mxu1 %vm12615_vm2, %v12614_v0 }
0x141d   :  { %11995 = vmatprep.subr.bf16.mxu1 %v12617_v7  ;;  %v7422_v46 = vclamps-f32 %v4674_v1, 5.0 }
0x1420   :  { %11997 = vmatpush3.bf16.msra.mxu1 %v12726_v9 }
0x1421   :  { %11998 = vmatprep.subr.bf16.mxu1 %v12617_v7 }
0x1424   :  { %12000 = vmatpush3.bf16.msra.mxu1 %v12738_v12 }
0x1425   :  { %12001 = vmatprep.subr.bf16.mxu1 %v12617_v7 }
0x1428   :  { %12003 = vmatpush3.bf16.msra.mxu1 %v12748_v15 }
0x1429   :  { %12004 = vmatprep.subr.bf16.mxu1 %v12617_v7 }
0x142c   :  { %12006 = vmatpush3.bf16.msra.mxu1 %v12758_v18 }
0x142d   :  { %12007 = vmatprep.subr.bf16.mxu1 %v12617_v7 }
0x1430   :  { %12009 = vmatpush3.bf16.msra.mxu1 %v12768_v21 }
0x1431   :  { %12010 = vmatprep.subr.bf16.mxu1 %v12617_v7 }
0x1434   :  { %12012 = vmatpush3.bf16.msra.mxu1 %v12778_v24 }
0x1435   :  { %12013 = vmatprep.subr.bf16.mxu1 %v12617_v7 }
0x1438   :  { %12015 = vmatpush3.bf16.msra.mxu1 %v12789_v27 }
0x1439   :  { %10207 = vmatprep.subr.mxu1 %v12614_v0 }
0x143b   :  { %10170 = vmatmul.mubr.f32.vlgmr.msra.gmra.mrb[60].mxu1 %v7422_v46 }
0x143c   :  { %10208 = vmatpush3.msk.msra.mxu1 %vm75_vm0, %v13815_v13  ;;  %10209 = vmatprep.mubr.msk.f32.mxu1 %vm12615_vm2, %v12614_v0 }
0x143d   :  { %12064 = vmatprep.subr.bf16.mxu1 %v12617_v7 }
0x143f   :  { %10210 = vmatmul.mubr.msk.f32.vlgmr.msra.gmra.mrb[62].mxu1 %vm71_vm1, %v13193_v34 }
0x1440   :  { %12066 = vmatpush3.bf16.msra.mxu1 %v12804_v31  ;;  %10279 = vmatprep.mubr.msk.f32.mxu1 %vm12615_vm2, %v12614_v0 }
0x1441   :  { %12067 = vmatprep.subr.bf16.mxu1 %v12617_v7 }
0x1444   :  { %12069 = vmatpush3.bf16.msra.mxu1 %v12810_v33 }
0x1445   :  { %12070 = vmatprep.subr.bf16.mxu1 %v12617_v7 }
0x1448   :  { %12072 = vmatpush3.bf16.msra.mxu1 %v12820_v36 }
0x1449   :  { %12073 = vmatprep.subr.bf16.mxu1 %v12617_v7 }
0x144c   :  { %12075 = vmatpush3.bf16.msra.mxu1 %v12830_v39 }
0x144d   :  { %12076 = vmatprep.subr.bf16.mxu1 %v12617_v7 }
0x1450   :  { %12078 = vmatpush3.bf16.msra.mxu1 %v12840_v42 }
0x1451   :  { %12079 = vmatprep.subr.bf16.mxu1 %v12617_v7 }
0x1454   :  { %12081 = vmatpush3.bf16.msra.mxu1 %v12850_v45 }
0x1455   :  { %12082 = vmatprep.subr.bf16.mxu1 %v12617_v7 }
0x1458   :  { %12084 = vmatpush3.bf16.msra.mxu1 %v12860_v48 }
0x1459   :  { %12085 = vmatprep.subr.bf16.mxu1 %v12617_v7 }
0x145c   :  { %12087 = vmatpush3.bf16.msra.mxu1 %v12899_v57 }
0x145d   :  { %12088 = vmatprep.subr.bf16.mxu1 %v12617_v7 }
0x146b   :  { %v4371_v34 = vpop.permute.xlu0 %4370 }
0x146c   :  { %7414 = vst.msk [vmem:[%s14614_s7 + $0x8] sm:$0xff] %vm4373_vm7, %v4371_v34 }
0x14ee   :  { %v4591_v43 = vpop.f32.mrb[58].mxu1 }
0x14ef   :  { %v4592_v53 = vadd.f32 %v14058_v2, %v4591_v43  ;;  %v10131_v5 = vpop.f32.mrb[59].mxu1 }
0x14f1   :  { %4596 = vrot.lane.b32.xlu1 %v4592_v53, %s12639_s3 }
0x150e   :  { %v4745_v47 = vpop.f32.mrb[60].mxu1 }
0x150f   :  { %v4746_v52 = vadd.f32 %v13955_v6, %v4745_v47  ;;  %v10171_v51 = vpop.f32.mrb[61].mxu1 }
0x1511   :  { %v7423_v50 = vclamps-f32 %v4746_v52, 5.0 }
0x1512   :  { %v4899_v32 = vpop.f32.mrb[62].mxu1 }
0x1513   :  { %10205 = vmatmul.mubr.f32.vlgmr.msra.gmra.mrb[62].mxu0 %v7423_v50  ;;  %v10211_v63 = vpop.f32.mrb[63].mxu1  ;;  %v4900_v3 = vadd.f32 %v13915_v17, %v4899_v32 }
0x1514   :  { %12042 = vmatpush3.bf16.msra.mxu0 %v12720_v8  ;;  %10244 = vmatprep.mubr.msk.f32.mxu0 %vm12615_vm2, %v12614_v0 }
0x1515   :  { %12043 = vmatprep.subr.bf16.mxu0 %v12617_v7  ;;  %v7427_v4 = vclamps-f32 %v4900_v3, 5.0 }
0x1518   :  { %12045 = vmatpush3.bf16.msra.mxu0 %v12726_v9 }
0x1519   :  { %12046 = vmatprep.subr.bf16.mxu0 %v12617_v7 }
0x151c   :  { %12048 = vmatpush3.bf16.msra.mxu0 %v12738_v12 }
0x151d   :  { %12049 = vmatprep.subr.bf16.mxu0 %v12617_v7 }
0x1520   :  { %12051 = vmatpush3.bf16.msra.mxu0 %v12748_v15 }
0x1521   :  { %12052 = vmatprep.subr.bf16.mxu0 %v12617_v7 }
0x1524   :  { %12054 = vmatpush3.bf16.msra.mxu0 %v12758_v18 }
0x1525   :  { %12055 = vmatprep.subr.bf16.mxu0 %v12617_v7 }
0x1528   :  { %12057 = vmatpush3.bf16.msra.mxu0 %v12768_v21 }
0x1529   :  { %12058 = vmatprep.subr.bf16.mxu0 %v12617_v7 }
0x152c   :  { %12060 = vmatpush3.bf16.msra.mxu0 %v12778_v24 }
0x152d   :  { %12061 = vmatprep.subr.bf16.mxu0 %v12617_v7 }
0x1530   :  { %12063 = vmatpush3.bf16.msra.mxu0 %v12789_v27 }
0x1531   :  { %10282 = vmatprep.subr.mxu0 %v12614_v0 }
0x1533   :  { %10245 = vmatmul.mubr.f32.vlgmr.msra.gmra.mrb[64].mxu0 %v7427_v4 }
0x1534   :  { %10283 = vmatpush3.msk.msra.mxu0 %vm75_vm0, %v13815_v13  ;;  %10284 = vmatprep.mubr.msk.f32.mxu0 %vm12615_vm2, %v12614_v0 }
0x1535   :  { %12112 = vmatprep.subr.bf16.mxu0 %v12617_v7 }
0x1537   :  { %10285 = vmatmul.mubr.msk.f32.vlgmr.msra.gmra.mrb[66].mxu0 %vm71_vm1, %v13123_v56 }
0x1538   :  { %12114 = vmatpush3.bf16.msra.mxu0 %v12804_v31  ;;  %10354 = vmatprep.mubr.msk.f32.mxu0 %vm12615_vm2, %v12614_v0 }
0x1539   :  { %12115 = vmatprep.subr.bf16.mxu0 %v12617_v7 }
0x153c   :  { %12117 = vmatpush3.bf16.msra.mxu0 %v12810_v33 }
0x153d   :  { %12118 = vmatprep.subr.bf16.mxu0 %v12617_v7 }
0x1540   :  { %12120 = vmatpush3.bf16.msra.mxu0 %v12820_v36 }
0x1541   :  { %12121 = vmatprep.subr.bf16.mxu0 %v12617_v7 }
0x1544   :  { %12123 = vmatpush3.bf16.msra.mxu0 %v12830_v39 }
0x1545   :  { %12124 = vmatprep.subr.bf16.mxu0 %v12617_v7 }
0x1548   :  { %12126 = vmatpush3.bf16.msra.mxu0 %v12840_v42 }
0x1549   :  { %12127 = vmatprep.subr.bf16.mxu0 %v12617_v7 }
0x154c   :  { %12129 = vmatpush3.bf16.msra.mxu0 %v12850_v45 }
0x154d   :  { %12130 = vmatprep.subr.bf16.mxu0 %v12617_v7 }
0x1550   :  { %12132 = vmatpush3.bf16.msra.mxu0 %v12860_v48 }
0x1551   :  { %12133 = vmatprep.subr.bf16.mxu0 %v12617_v7 }
0x1554   :  { %12135 = vmatpush3.bf16.msra.mxu0 %v12899_v57 }
0x1555   :  { %12136 = vmatprep.subr.bf16.mxu0 %v12617_v7 }
0x1563   :  { %v4597_v56 = vpop.permute.xlu1 %4596 }
0x1564   :  { %7419 = vst.msk [vmem:[%s14614_s7 + $0x8] sm:$0xff] %vm4599_vm8, %v4597_v56 }
0x15e6   :  { %v4817_v20 = vpop.f32.mrb[62].mxu0 }
0x15e7   :  { %v4818_v11 = vadd.f32 %v14058_v2, %v4817_v20  ;;  %v10206_v30 = vpop.f32.mrb[63].mxu0 }
0x15e9   :  { %4822 = vrot.lane.b32.xlu0 %v4818_v11, %s12624_s11  ;;  %s14626_s11 = smov 116  }
0x1606   :  { %v4971_v22 = vpop.f32.mrb[64].mxu0 }
0x1607   :  { %v4972_v10 = vadd.f32 %v13955_v6, %v4971_v22  ;;  %v10246_v14 = vpop.f32.mrb[65].mxu0 }
0x1609   :  { %v7428_v28 = vclamps-f32 %v4972_v10, 5.0 }
0x160a   :  { %v5125_v23 = vpop.f32.mrb[66].mxu0 }
0x160b   :  { %10280 = vmatmul.mubr.f32.vlgmr.msra.gmra.mrb[64].mxu1 %v7428_v28  ;;  %v10286_v55 = vpop.f32.mrb[67].mxu0  ;;  %v5126_v25 = vadd.f32 %v13915_v17, %v5125_v23 }
0x160c   :  { %12090 = vmatpush3.bf16.msra.mxu1 %v12720_v8  ;;  %10319 = vmatprep.mubr.msk.f32.mxu1 %vm12615_vm2, %v12614_v0 }
0x160d   :  { %12091 = vmatprep.subr.bf16.mxu1 %v12617_v7  ;;  %v7432_v16 = vclamps-f32 %v5126_v25, 5.0 }
0x1610   :  { %12093 = vmatpush3.bf16.msra.mxu1 %v12726_v9 }
0x1611   :  { %12094 = vmatprep.subr.bf16.mxu1 %v12617_v7 }
0x1614   :  { %12096 = vmatpush3.bf16.msra.mxu1 %v12738_v12 }
0x1615   :  { %12097 = vmatprep.subr.bf16.mxu1 %v12617_v7 }
0x1618   :  { %12099 = vmatpush3.bf16.msra.mxu1 %v12748_v15 }
0x1619   :  { %12100 = vmatprep.subr.bf16.mxu1 %v12617_v7 }
0x161c   :  { %12102 = vmatpush3.bf16.msra.mxu1 %v12758_v18 }
0x161d   :  { %12103 = vmatprep.subr.bf16.mxu1 %v12617_v7 }
0x1620   :  { %12105 = vmatpush3.bf16.msra.mxu1 %v12768_v21 }
0x1621   :  { %12106 = vmatprep.subr.bf16.mxu1 %v12617_v7 }
0x1624   :  { %12108 = vmatpush3.bf16.msra.mxu1 %v12778_v24 }
0x1625   :  { %12109 = vmatprep.subr.bf16.mxu1 %v12617_v7 }
0x1628   :  { %12111 = vmatpush3.bf16.msra.mxu1 %v12789_v27 }
0x1629   :  { %10357 = vmatprep.subr.mxu1 %v12614_v0 }
0x162b   :  { %10320 = vmatmul.mubr.f32.vlgmr.msra.gmra.mrb[66].mxu1 %v7432_v16 }
0x162c   :  { %10358 = vmatpush3.msk.msra.mxu1 %vm75_vm0, %v13815_v13  ;;  %10359 = vmatprep.mubr.msk.f32.mxu1 %vm12615_vm2, %v12614_v0 }
0x162d   :  { %12160 = vmatprep.subr.bf16.mxu1 %v12617_v7 }
0x162f   :  { %10360 = vmatmul.mubr.msk.f32.vlgmr.msra.gmra.mrb[68].mxu1 %vm71_vm1, %v13198_v35 }
0x1630   :  { %12162 = vmatpush3.bf16.msra.mxu1 %v12804_v31  ;;  %10429 = vmatprep.mubr.msk.f32.mxu1 %vm12615_vm2, %v12614_v0 }
0x1631   :  { %12163 = vmatprep.subr.bf16.mxu1 %v12617_v7 }
0x1634   :  { %12165 = vmatpush3.bf16.msra.mxu1 %v12810_v33 }
0x1635   :  { %12166 = vmatprep.subr.bf16.mxu1 %v12617_v7 }
0x1638   :  { %12168 = vmatpush3.bf16.msra.mxu1 %v12820_v36 }
0x1639   :  { %12169 = vmatprep.subr.bf16.mxu1 %v12617_v7 }
0x163c   :  { %12171 = vmatpush3.bf16.msra.mxu1 %v12830_v39 }
0x163d   :  { %12172 = vmatprep.subr.bf16.mxu1 %v12617_v7 }
0x1640   :  { %12174 = vmatpush3.bf16.msra.mxu1 %v12840_v42 }
0x1641   :  { %12175 = vmatprep.subr.bf16.mxu1 %v12617_v7 }
0x1644   :  { %12177 = vmatpush3.bf16.msra.mxu1 %v12850_v45 }
0x1645   :  { %12178 = vmatprep.subr.bf16.mxu1 %v12617_v7 }
0x1648   :  { %12180 = vmatpush3.bf16.msra.mxu1 %v12860_v48 }
0x1649   :  { %12181 = vmatprep.subr.bf16.mxu1 %v12617_v7 }
0x164c   :  { %12183 = vmatpush3.bf16.msra.mxu1 %v12899_v57 }
0x164d   :  { %12184 = vmatprep.subr.bf16.mxu1 %v12617_v7 }
0x165b   :  { %v4823_v35 = vpop.permute.xlu0 %4822 }
0x165c   :  { %7424 = vst.msk [vmem:[%s14614_s7 + $0x8] sm:$0xff] %vm4825_vm9, %v4823_v35 }
0x16de   :  { %v5043_v44 = vpop.f32.mrb[64].mxu1 }
0x16df   :  { %v5044_v19 = vadd.f32 %v14058_v2, %v5043_v44  ;;  %v10281_v26 = vpop.f32.mrb[65].mxu1 }
0x16e1   :  { %5048 = vrot.lane.b32.xlu1 %v5044_v19, %s12638_s28  ;;  %s14627_s28 = smov 120  }
0x16fe   :  { %v5197_v29 = vpop.f32.mrb[66].mxu1 }
0x16ff   :  { %v5198_v54 = vadd.f32 %v13955_v6, %v5197_v29  ;;  %v10321_v58 = vpop.f32.mrb[67].mxu1 }
0x1701   :  { %v7433_v49 = vclamps-f32 %v5198_v54, 5.0 }
0x1702   :  { %v5351_v1 = vpop.f32.mrb[68].mxu1 }
0x1703   :  { %10355 = vmatmul.mubr.f32.vlgmr.msra.gmra.mrb[68].mxu0 %v7433_v49  ;;  %v10361_v46 = vpop.f32.mrb[69].mxu1  ;;  %v5352_v34 = vadd.f32 %v13915_v17, %v5351_v1 }
0x1704   :  { %12138 = vmatpush3.bf16.msra.mxu0 %v12720_v8  ;;  %10394 = vmatprep.mubr.msk.f32.mxu0 %vm12615_vm2, %v12614_v0 }
0x1705   :  { %12139 = vmatprep.subr.bf16.mxu0 %v12617_v7  ;;  %v7437_v43 = vclamps-f32 %v5352_v34, 5.0  ;;  %v14335_v34 = vld [vmem:[%s14609_s1] sm:$0xf] }
0x1708   :  { %12141 = vmatpush3.bf16.msra.mxu0 %v12726_v9 }
0x1709   :  { %12142 = vmatprep.subr.bf16.mxu0 %v12617_v7 }
0x170c   :  { %12144 = vmatpush3.bf16.msra.mxu0 %v12738_v12 }
0x170d   :  { %12145 = vmatprep.subr.bf16.mxu0 %v12617_v7 }
0x1710   :  { %12147 = vmatpush3.bf16.msra.mxu0 %v12748_v15 }
0x1711   :  { %12148 = vmatprep.subr.bf16.mxu0 %v12617_v7 }
0x1714   :  { %12150 = vmatpush3.bf16.msra.mxu0 %v12758_v18 }
0x1715   :  { %12151 = vmatprep.subr.bf16.mxu0 %v12617_v7 }
0x1718   :  { %12153 = vmatpush3.bf16.msra.mxu0 %v12768_v21 }
0x1719   :  { %12154 = vmatprep.subr.bf16.mxu0 %v12617_v7 }
0x171c   :  { %12156 = vmatpush3.bf16.msra.mxu0 %v12778_v24 }
0x171d   :  { %12157 = vmatprep.subr.bf16.mxu0 %v12617_v7 }
0x1720   :  { %12159 = vmatpush3.bf16.msra.mxu0 %v12789_v27 }
0x1721   :  { %10432 = vmatprep.subr.mxu0 %v12614_v0 }
0x1723   :  { %10395 = vmatmul.mubr.f32.vlgmr.msra.gmra.mrb[70].mxu0 %v7437_v43 }
0x1724   :  { %10433 = vmatpush3.msk.msra.mxu0 %vm75_vm0, %v13815_v13  ;;  %10434 = vmatprep.mubr.msk.f32.mxu0 %vm12615_vm2, %v12614_v0 }
0x1725   :  { %12208 = vmatprep.subr.bf16.mxu0 %v12617_v7 }
0x1727   :  { %10435 = vmatmul.mubr.msk.f32.vlgmr.msra.gmra.mrb[72].mxu0 %vm71_vm1, %v13128_v59 }
0x1728   :  { %12210 = vmatpush3.bf16.msra.mxu0 %v12804_v31  ;;  %10504 = vmatprep.mubr.msk.f32.mxu0 %vm12615_vm2, %v12614_v0 }
0x1729   :  { %12211 = vmatprep.subr.bf16.mxu0 %v12617_v7 }
0x172c   :  { %12213 = vmatpush3.bf16.msra.mxu0 %v12810_v33 }
0x172d   :  { %12214 = vmatprep.subr.bf16.mxu0 %v12617_v7 }
0x1730   :  { %12216 = vmatpush3.bf16.msra.mxu0 %v12820_v36 }
0x1731   :  { %12217 = vmatprep.subr.bf16.mxu0 %v12617_v7 }
0x1734   :  { %12219 = vmatpush3.bf16.msra.mxu0 %v12830_v39 }
0x1735   :  { %12220 = vmatprep.subr.bf16.mxu0 %v12617_v7 }
0x1738   :  { %12222 = vmatpush3.bf16.msra.mxu0 %v12840_v42 }
0x1739   :  { %12223 = vmatprep.subr.bf16.mxu0 %v12617_v7 }
0x173c   :  { %12225 = vmatpush3.bf16.msra.mxu0 %v12850_v45 }
0x173d   :  { %12226 = vmatprep.subr.bf16.mxu0 %v12617_v7 }
0x1740   :  { %12228 = vmatpush3.bf16.msra.mxu0 %v12860_v48 }
0x1741   :  { %12229 = vmatprep.subr.bf16.mxu0 %v12617_v7 }
0x1744   :  { %12231 = vmatpush3.bf16.msra.mxu0 %v12899_v57 }
0x1745   :  { %12232 = vmatprep.subr.bf16.mxu0 %v12617_v7 }
0x1753   :  { %v5049_v59 = vpop.permute.xlu1 %5048 }
0x1754   :  { %7429 = vst.msk [vmem:[%s14614_s7 + $0x8] sm:$0xff] %vm5051_vm10, %v5049_v59 }
0x17d6   :  { %v5269_v53 = vpop.f32.mrb[68].mxu0 }
0x17d7   :  { %v5270_v5 = vadd.f32 %v14058_v2, %v5269_v53  ;;  %v10356_v47 = vpop.f32.mrb[69].mxu0 }
0x17d9   :  { %5274 = vrot.lane.b32.xlu0 %v5270_v5, %s12623_s10 }
0x17f6   :  { %v5423_v52 = vpop.f32.mrb[70].mxu0 }
0x17f7   :  { %v5424_v51 = vadd.f32 %v13955_v6, %v5423_v52  ;;  %v10396_v50 = vpop.f32.mrb[71].mxu0 }
0x17f9   :  { %v7438_v32 = vclamps-f32 %v5424_v51, 5.0 }
0x17fa   :  { %v5577_v63 = vpop.f32.mrb[72].mxu0 }
0x17fb   :  { %10430 = vmatmul.mubr.f32.vlgmr.msra.gmra.mrb[70].mxu1 %v7438_v32  ;;  %v10436_v3 = vpop.f32.mrb[73].mxu0  ;;  %v5578_v4 = vadd.f32 %v13915_v17, %v5577_v63 }
0x17fc   :  { %12186 = vmatpush3.bf16.msra.mxu1 %v12720_v8  ;;  %10469 = vmatprep.mubr.msk.f32.mxu1 %vm12615_vm2, %v12614_v0 }
0x17fd   :  { %12187 = vmatprep.subr.bf16.mxu1 %v12617_v7  ;;  %v7442_v56 = vclamps-f32 %v5578_v4, 5.0 }
0x1800   :  { %12189 = vmatpush3.bf16.msra.mxu1 %v12726_v9 }
0x1801   :  { %12190 = vmatprep.subr.bf16.mxu1 %v12617_v7 }
0x1804   :  { %12192 = vmatpush3.bf16.msra.mxu1 %v12738_v12 }
0x1805   :  { %12193 = vmatprep.subr.bf16.mxu1 %v12617_v7 }
0x1808   :  { %12195 = vmatpush3.bf16.msra.mxu1 %v12748_v15 }
0x1809   :  { %12196 = vmatprep.subr.bf16.mxu1 %v12617_v7 }
0x180c   :  { %12198 = vmatpush3.bf16.msra.mxu1 %v12758_v18 }
0x180d   :  { %12199 = vmatprep.subr.bf16.mxu1 %v12617_v7 }
0x1810   :  { %12201 = vmatpush3.bf16.msra.mxu1 %v12768_v21 }
0x1811   :  { %12202 = vmatprep.subr.bf16.mxu1 %v12617_v7 }
0x1814   :  { %12204 = vmatpush3.bf16.msra.mxu1 %v12778_v24 }
0x1815   :  { %12205 = vmatprep.subr.bf16.mxu1 %v12617_v7 }
0x1818   :  { %12207 = vmatpush3.bf16.msra.mxu1 %v12789_v27 }
0x1819   :  { %10507 = vmatprep.subr.mxu1 %v12614_v0 }
0x181b   :  { %10470 = vmatmul.mubr.f32.vlgmr.msra.gmra.mrb[72].mxu1 %v7442_v56 }
0x181c   :  { %10508 = vmatpush3.msk.msra.mxu1 %vm75_vm0, %v13815_v13  ;;  %10509 = vmatprep.mubr.msk.f32.mxu1 %vm12615_vm2, %v12614_v0 }
0x181d   :  { %12256 = vmatprep.subr.bf16.mxu1 %v12617_v7 }
0x181f   :  { %10510 = vmatmul.mubr.msk.f32.vlgmr.msra.gmra.mrb[74].mxu1 %vm71_vm1, %v13203_v37 }
0x1820   :  { %12258 = vmatpush3.bf16.msra.mxu1 %v12804_v31  ;;  %10579 = vmatprep.mubr.msk.f32.mxu1 %vm12615_vm2, %v12614_v0 }
0x1821   :  { %12259 = vmatprep.subr.bf16.mxu1 %v12617_v7 }
0x1824   :  { %12261 = vmatpush3.bf16.msra.mxu1 %v12810_v33 }
0x1825   :  { %12262 = vmatprep.subr.bf16.mxu1 %v12617_v7 }
0x1828   :  { %12264 = vmatpush3.bf16.msra.mxu1 %v12820_v36 }
0x1829   :  { %12265 = vmatprep.subr.bf16.mxu1 %v12617_v7 }
0x182c   :  { %12267 = vmatpush3.bf16.msra.mxu1 %v12830_v39 }
0x182d   :  { %12268 = vmatprep.subr.bf16.mxu1 %v12617_v7 }
0x1830   :  { %12270 = vmatpush3.bf16.msra.mxu1 %v12840_v42 }
0x1831   :  { %12271 = vmatprep.subr.bf16.mxu1 %v12617_v7 }
0x1834   :  { %12273 = vmatpush3.bf16.msra.mxu1 %v12850_v45 }
0x1835   :  { %12274 = vmatprep.subr.bf16.mxu1 %v12617_v7 }
0x1838   :  { %12276 = vmatpush3.bf16.msra.mxu1 %v12860_v48 }
0x1839   :  { %12277 = vmatprep.subr.bf16.mxu1 %v12617_v7 }
0x183c   :  { %12279 = vmatpush3.bf16.msra.mxu1 %v12899_v57 }
0x183d   :  { %12280 = vmatprep.subr.bf16.mxu1 %v12617_v7 }
0x184b   :  { %v5275_v37 = vpop.permute.xlu0 %5274 }
0x184c   :  { %7434 = vst.msk [vmem:[%s14614_s7 + $0x8] sm:$0xff] %vm5277_vm11, %v5275_v37 }
0x18ce   :  { %v5495_v20 = vpop.f32.mrb[70].mxu1 }
0x18cf   :  { %v5496_v11 = vadd.f32 %v14058_v2, %v5495_v20  ;;  %v10431_v30 = vpop.f32.mrb[71].mxu1 }
0x18d1   :  { %5500 = vrot.lane.b32.xlu1 %v5496_v11, %s12636_s27 }
0x18ee   :  { %v5649_v22 = vpop.f32.mrb[72].mxu1 }
0x18ef   :  { %v5650_v10 = vadd.f32 %v13955_v6, %v5649_v22  ;;  %v10471_v14 = vpop.f32.mrb[73].mxu1 }
0x18f1   :  { %v7443_v28 = vclamps-f32 %v5650_v10, 5.0 }
0x18f2   :  { %v5803_v23 = vpop.f32.mrb[74].mxu1 }
0x18f3   :  { %10505 = vmatmul.mubr.f32.vlgmr.msra.gmra.mrb[74].mxu0 %v7443_v28  ;;  %v10511_v55 = vpop.f32.mrb[75].mxu1  ;;  %v5804_v25 = vadd.f32 %v13915_v17, %v5803_v23 }
0x18f4   :  { %12234 = vmatpush3.bf16.msra.mxu0 %v12720_v8  ;;  %10544 = vmatprep.mubr.msk.f32.mxu0 %vm12615_vm2, %v12614_v0 }
0x18f5   :  { %12235 = vmatprep.subr.bf16.mxu0 %v12617_v7  ;;  %v7447_v16 = vclamps-f32 %v5804_v25, 5.0 }
0x18f8   :  { %12237 = vmatpush3.bf16.msra.mxu0 %v12726_v9 }
0x18f9   :  { %12238 = vmatprep.subr.bf16.mxu0 %v12617_v7 }
0x18fc   :  { %12240 = vmatpush3.bf16.msra.mxu0 %v12738_v12 }
0x18fd   :  { %12241 = vmatprep.subr.bf16.mxu0 %v12617_v7 }
0x1900   :  { %12243 = vmatpush3.bf16.msra.mxu0 %v12748_v15 }
0x1901   :  { %12244 = vmatprep.subr.bf16.mxu0 %v12617_v7 }
0x1904   :  { %12246 = vmatpush3.bf16.msra.mxu0 %v12758_v18 }
0x1905   :  { %12247 = vmatprep.subr.bf16.mxu0 %v12617_v7 }
0x1908   :  { %12249 = vmatpush3.bf16.msra.mxu0 %v12768_v21 }
0x1909   :  { %12250 = vmatprep.subr.bf16.mxu0 %v12617_v7 }
0x190c   :  { %12252 = vmatpush3.bf16.msra.mxu0 %v12778_v24 }
0x190d   :  { %12253 = vmatprep.subr.bf16.mxu0 %v12617_v7 }
0x1910   :  { %12255 = vmatpush3.bf16.msra.mxu0 %v12789_v27 }
0x1911   :  { %10582 = vmatprep.subr.mxu0 %v12614_v0 }
0x1913   :  { %10545 = vmatmul.mubr.f32.vlgmr.msra.gmra.mrb[76].mxu0 %v7447_v16 }
0x1914   :  { %10583 = vmatpush3.msk.msra.mxu0 %vm75_vm0, %v13815_v13  ;;  %10584 = vmatprep.mubr.msk.f32.mxu0 %vm12615_vm2, %v12614_v0 }
0x1915   :  { %12304 = vmatprep.subr.bf16.mxu0 %v12617_v7 }
0x1917   :  { %10585 = vmatmul.mubr.msk.f32.vlgmr.msra.gmra.mrb[78].mxu0 %vm71_vm1, %v13133_v60 }
0x1918   :  { %12306 = vmatpush3.bf16.msra.mxu0 %v12804_v31  ;;  %10654 = vmatprep.mubr.msk.f32.mxu0 %vm12615_vm2, %v12614_v0 }
0x1919   :  { %12307 = vmatprep.subr.bf16.mxu0 %v12617_v7 }
0x191c   :  { %12309 = vmatpush3.bf16.msra.mxu0 %v12810_v33 }
0x191d   :  { %12310 = vmatprep.subr.bf16.mxu0 %v12617_v7 }
0x1920   :  { %12312 = vmatpush3.bf16.msra.mxu0 %v12820_v36 }
0x1921   :  { %12313 = vmatprep.subr.bf16.mxu0 %v12617_v7 }
0x1924   :  { %12315 = vmatpush3.bf16.msra.mxu0 %v12830_v39 }
0x1925   :  { %12316 = vmatprep.subr.bf16.mxu0 %v12617_v7 }
0x1928   :  { %12318 = vmatpush3.bf16.msra.mxu0 %v12840_v42 }
0x1929   :  { %12319 = vmatprep.subr.bf16.mxu0 %v12617_v7 }
0x192c   :  { %12321 = vmatpush3.bf16.msra.mxu0 %v12850_v45 }
0x192d   :  { %12322 = vmatprep.subr.bf16.mxu0 %v12617_v7 }
0x1930   :  { %12324 = vmatpush3.bf16.msra.mxu0 %v12860_v48 }
0x1931   :  { %12325 = vmatprep.subr.bf16.mxu0 %v12617_v7 }
0x1934   :  { %12327 = vmatpush3.bf16.msra.mxu0 %v12899_v57 }
0x1935   :  { %12328 = vmatprep.subr.bf16.mxu0 %v12617_v7 }
0x1943   :  { %v5501_v60 = vpop.permute.xlu1 %5500 }
0x1944   :  { %7439 = vst.msk [vmem:[%s14614_s7 + $0x8] sm:$0xff] %vm5503_vm12, %v5501_v60  ;;  %v14475_v60 = vld [vmem:[%s14615_s4] ss:$0 sm:$0xff] }
0x19c6   :  { %v5721_v13 = vpop.f32.mrb[74].mxu0 }
0x19c7   :  { %v5722_v35 = vadd.f32 %v14058_v2, %v5721_v13  ;;  %v10506_v44 = vpop.f32.mrb[75].mxu0 }
0x19c9   :  { %5726 = vrot.lane.b32.xlu0 %v5722_v35, %s12622_s9 }
0x19e6   :  { %v5875_v19 = vpop.f32.mrb[76].mxu0 }
0x19e7   :  { %v5876_v26 = vadd.f32 %v13955_v6, %v5875_v19  ;;  %v10546_v29 = vpop.f32.mrb[77].mxu0 }
0x19e9   :  { %v7448_v54 = vclamps-f32 %v5876_v26, 5.0 }
0x19ea   :  { %v6029_v58 = vpop.f32.mrb[78].mxu0 }
0x19eb   :  { %10580 = vmatmul.mubr.f32.vlgmr.msra.gmra.mrb[76].mxu1 %v7448_v54  ;;  %v10586_v49 = vpop.f32.mrb[79].mxu0  ;;  %v6030_v1 = vadd.f32 %v13915_v17, %v6029_v58 }
0x19ec   :  { %12282 = vmatpush3.bf16.msra.mxu1 %v12720_v8  ;;  %10619 = vmatprep.mubr.msk.f32.mxu1 %vm12615_vm2, %v12614_v0 }
0x19ed   :  { %12283 = vmatprep.subr.bf16.mxu1 %v12617_v7  ;;  %v7452_v46 = vclamps-f32 %v6030_v1, 5.0 }
0x19f0   :  { %12285 = vmatpush3.bf16.msra.mxu1 %v12726_v9 }
0x19f1   :  { %12286 = vmatprep.subr.bf16.mxu1 %v12617_v7 }
0x19f4   :  { %12288 = vmatpush3.bf16.msra.mxu1 %v12738_v12 }
0x19f5   :  { %12289 = vmatprep.subr.bf16.mxu1 %v12617_v7 }
0x19f8   :  { %12291 = vmatpush3.bf16.msra.mxu1 %v12748_v15 }
0x19f9   :  { %12292 = vmatprep.subr.bf16.mxu1 %v12617_v7 }
0x19fc   :  { %12294 = vmatpush3.bf16.msra.mxu1 %v12758_v18 }
0x19fd   :  { %12295 = vmatprep.subr.bf16.mxu1 %v12617_v7 }
0x1a00   :  { %12297 = vmatpush3.bf16.msra.mxu1 %v12768_v21 }
0x1a01   :  { %12298 = vmatprep.subr.bf16.mxu1 %v12617_v7 }
0x1a04   :  { %12300 = vmatpush3.bf16.msra.mxu1 %v12778_v24 }
0x1a05   :  { %12301 = vmatprep.subr.bf16.mxu1 %v12617_v7 }
0x1a08   :  { %12303 = vmatpush3.bf16.msra.mxu1 %v12789_v27 }
0x1a09   :  { %10657 = vmatprep.subr.mxu1 %v12614_v0 }
0x1a0b   :  { %10620 = vmatmul.mubr.f32.vlgmr.msra.gmra.mrb[78].mxu1 %v7452_v46 }
0x1a0c   :  { %10658 = vmatpush3.msk.msra.mxu1 %vm75_vm0, %v14335_v34  ;;  %10659 = vmatprep.mubr.msk.f32.mxu1 %vm12615_vm2, %v12614_v0 }
0x1a0d   :  { %12352 = vmatprep.subr.bf16.mxu1 %v12617_v7 }
0x1a0f   :  { %10660 = vmatmul.mubr.msk.f32.vlgmr.msra.gmra.mrb[80].mxu1 %vm71_vm1, %v13208_v38 }
0x1a10   :  { %12354 = vmatpush3.bf16.msra.mxu1 %v12804_v31  ;;  %10729 = vmatprep.mubr.msk.f32.mxu1 %vm12615_vm2, %v12614_v0 }
0x1a11   :  { %12355 = vmatprep.subr.bf16.mxu1 %v12617_v7 }
0x1a14   :  { %12357 = vmatpush3.bf16.msra.mxu1 %v12810_v33 }
0x1a15   :  { %12358 = vmatprep.subr.bf16.mxu1 %v12617_v7 }
0x1a18   :  { %12360 = vmatpush3.bf16.msra.mxu1 %v12820_v36 }
0x1a19   :  { %12361 = vmatprep.subr.bf16.mxu1 %v12617_v7 }
0x1a1c   :  { %12363 = vmatpush3.bf16.msra.mxu1 %v12830_v39 }
0x1a1d   :  { %12364 = vmatprep.subr.bf16.mxu1 %v12617_v7 }
0x1a20   :  { %12366 = vmatpush3.bf16.msra.mxu1 %v12840_v42 }
0x1a21   :  { %12367 = vmatprep.subr.bf16.mxu1 %v12617_v7 }
0x1a24   :  { %12369 = vmatpush3.bf16.msra.mxu1 %v12850_v45 }
0x1a25   :  { %12370 = vmatprep.subr.bf16.mxu1 %v12617_v7 }
0x1a28   :  { %12372 = vmatpush3.bf16.msra.mxu1 %v12860_v48 }
0x1a29   :  { %12373 = vmatprep.subr.bf16.mxu1 %v12617_v7 }
0x1a2c   :  { %12375 = vmatpush3.bf16.msra.mxu1 %v12899_v57 }
0x1a2d   :  { %12376 = vmatprep.subr.bf16.mxu1 %v12617_v7 }
0x1a3b   :  { %v5727_v38 = vpop.permute.xlu0 %5726 }
0x1a3c   :  { %7444 = vst.msk [vmem:[%s14614_s7 + $0x8] sm:$0xff] %vm5729_vm13, %v5727_v38 }
0x1abe   :  { %v5947_v43 = vpop.f32.mrb[76].mxu1 }
0x1abf   :  { %v5948_v59 = vadd.f32 %v14058_v2, %v5947_v43  ;;  %v10581_v53 = vpop.f32.mrb[77].mxu1 }
0x1ac1   :  { %5952 = vrot.lane.b32.xlu1 %v5948_v59, %s12635_s26 }
0x1ade   :  { %v6101_v5 = vpop.f32.mrb[78].mxu1 }
0x1adf   :  { %v6102_v47 = vadd.f32 %v13955_v6, %v6101_v5  ;;  %v10621_v52 = vpop.f32.mrb[79].mxu1 }
0x1ae1   :  { %v7453_v51 = vclamps-f32 %v6102_v47, 5.0 }
0x1ae2   :  { %v6255_v50 = vpop.f32.mrb[80].mxu1 }
0x1ae3   :  { %10655 = vmatmul.mubr.f32.vlgmr.msra.gmra.mrb[80].mxu0 %v7453_v51  ;;  %v10661_v32 = vpop.f32.mrb[81].mxu1  ;;  %v6256_v63 = vadd.f32 %v13915_v17, %v6255_v50 }
0x1ae4   :  { %12330 = vmatpush3.bf16.msra.mxu0 %v12720_v8  ;;  %10694 = vmatprep.mubr.msk.f32.mxu0 %vm12615_vm2, %v12614_v0 }
0x1ae5   :  { %12331 = vmatprep.subr.bf16.mxu0 %v12617_v7  ;;  %v7457_v3 = vclamps-f32 %v6256_v63, 5.0 }
0x1ae8   :  { %12333 = vmatpush3.bf16.msra.mxu0 %v12726_v9 }
0x1ae9   :  { %12334 = vmatprep.subr.bf16.mxu0 %v12617_v7 }
0x1aec   :  { %12336 = vmatpush3.bf16.msra.mxu0 %v12738_v12 }
0x1aed   :  { %12337 = vmatprep.subr.bf16.mxu0 %v12617_v7 }
0x1af0   :  { %12339 = vmatpush3.bf16.msra.mxu0 %v12748_v15 }
0x1af1   :  { %12340 = vmatprep.subr.bf16.mxu0 %v12617_v7 }
0x1af4   :  { %12342 = vmatpush3.bf16.msra.mxu0 %v12758_v18 }
0x1af5   :  { %12343 = vmatprep.subr.bf16.mxu0 %v12617_v7 }
0x1af8   :  { %12345 = vmatpush3.bf16.msra.mxu0 %v12768_v21 }
0x1af9   :  { %12346 = vmatprep.subr.bf16.mxu0 %v12617_v7 }
0x1afc   :  { %12348 = vmatpush3.bf16.msra.mxu0 %v12778_v24 }
0x1afd   :  { %12349 = vmatprep.subr.bf16.mxu0 %v12617_v7 }
0x1b00   :  { %12351 = vmatpush3.bf16.msra.mxu0 %v12789_v27 }
0x1b01   :  { %10732 = vmatprep.subr.mxu0 %v12614_v0 }
0x1b03   :  { %10695 = vmatmul.mubr.f32.vlgmr.msra.gmra.mrb[82].mxu0 %v7457_v3 }
0x1b04   :  { %10733 = vmatpush3.msk.msra.mxu0 %vm75_vm0, %v14335_v34  ;;  %10734 = vmatprep.mubr.msk.f32.mxu0 %vm12615_vm2, %v12614_v0 }
0x1b05   :  { %12400 = vmatprep.subr.bf16.mxu0 %v12617_v7 }
0x1b07   :  { %10735 = vmatmul.mubr.msk.f32.vlgmr.msra.gmra.mrb[84].mxu0 %vm71_vm1, %v13138_v61 }
0x1b08   :  { %12402 = vmatpush3.bf16.msra.mxu0 %v12804_v31  ;;  %10804 = vmatprep.mubr.msk.f32.mxu0 %vm12615_vm2, %v12614_v0 }
0x1b09   :  { %12403 = vmatprep.subr.bf16.mxu0 %v12617_v7 }
0x1b0c   :  { %12405 = vmatpush3.bf16.msra.mxu0 %v12810_v33 }
0x1b0d   :  { %12406 = vmatprep.subr.bf16.mxu0 %v12617_v7 }
0x1b10   :  { %12408 = vmatpush3.bf16.msra.mxu0 %v12820_v36 }
0x1b11   :  { %12409 = vmatprep.subr.bf16.mxu0 %v12617_v7 }
0x1b14   :  { %12411 = vmatpush3.bf16.msra.mxu0 %v12830_v39 }
0x1b15   :  { %12412 = vmatprep.subr.bf16.mxu0 %v12617_v7 }
0x1b18   :  { %12414 = vmatpush3.bf16.msra.mxu0 %v12840_v42 }
0x1b19   :  { %12415 = vmatprep.subr.bf16.mxu0 %v12617_v7 }
0x1b1c   :  { %12417 = vmatpush3.bf16.msra.mxu0 %v12850_v45 }
0x1b1d   :  { %12418 = vmatprep.subr.bf16.mxu0 %v12617_v7 }
0x1b20   :  { %12420 = vmatpush3.bf16.msra.mxu0 %v12860_v48 }
0x1b21   :  { %12421 = vmatprep.subr.bf16.mxu0 %v12617_v7 }
0x1b24   :  { %12423 = vmatpush3.bf16.msra.mxu0 %v12899_v57 }
0x1b25   :  { %12424 = vmatprep.subr.bf16.mxu0 %v12617_v7 }
0x1b33   :  { %v5953_v61 = vpop.permute.xlu1 %5952 }
0x1b34   :  { %7449 = vst.msk [vmem:[%s14614_s7 + $0x8] sm:$0xff] %vm5955_vm14, %v5953_v61 }
0x1bb6   :  { %v6173_v17 = vpop.f32.mrb[80].mxu0 }
0x1bb7   :  { %v6174_v4 = vadd.f32 %v14058_v2, %v6173_v17  ;;  %v10656_v56 = vpop.f32.mrb[81].mxu0 }
0x1bb9   :  { %6178 = vrot.lane.b32.xlu0 %v6174_v4, %s14623_s14 }
0x1bd6   :  { %v6327_v37 = vpop.f32.mrb[82].mxu0 }
0x1bd7   :  { %v6328_v20 = vadd.f32 %v13955_v6, %v6327_v37  ;;  %v10696_v11 = vpop.f32.mrb[83].mxu0  ;;  %v14435_v6 = vld [vmem:[%s14613_s2] ss:$0 sm:$0xff] }
0x1bd9   :  { %v7458_v30 = vclamps-f32 %v6328_v20, 5.0 }
0x1bda   :  { %v6481_v22 = vpop.f32.mrb[84].mxu0 }
0x1bdb   :  { %10730 = vmatmul.mubr.f32.vlgmr.msra.gmra.mrb[82].mxu1 %v7458_v30  ;;  %v10736_v10 = vpop.f32.mrb[85].mxu0  ;;  %v6482_v14 = vadd.f32 %v14435_v6, %v6481_v22 }
0x1bdc   :  { %12378 = vmatpush3.bf16.msra.mxu1 %v12720_v8  ;;  %10769 = vmatprep.mubr.msk.f32.mxu1 %vm12615_vm2, %v12614_v0 }
0x1bdd   :  { %12379 = vmatprep.subr.bf16.mxu1 %v12617_v7  ;;  %v7462_v28 = vclamps-f32 %v6482_v14, 5.0 }
0x1be0   :  { %12381 = vmatpush3.bf16.msra.mxu1 %v12726_v9 }
0x1be1   :  { %12382 = vmatprep.subr.bf16.mxu1 %v12617_v7 }
0x1be4   :  { %12384 = vmatpush3.bf16.msra.mxu1 %v12738_v12 }
0x1be5   :  { %12385 = vmatprep.subr.bf16.mxu1 %v12617_v7 }
0x1be8   :  { %12387 = vmatpush3.bf16.msra.mxu1 %v12748_v15 }
0x1be9   :  { %12388 = vmatprep.subr.bf16.mxu1 %v12617_v7 }
0x1bec   :  { %12390 = vmatpush3.bf16.msra.mxu1 %v12758_v18 }
0x1bed   :  { %12391 = vmatprep.subr.bf16.mxu1 %v12617_v7 }
0x1bf0   :  { %12393 = vmatpush3.bf16.msra.mxu1 %v12768_v21 }
0x1bf1   :  { %12394 = vmatprep.subr.bf16.mxu1 %v12617_v7 }
0x1bf4   :  { %12396 = vmatpush3.bf16.msra.mxu1 %v12778_v24 }
0x1bf5   :  { %12397 = vmatprep.subr.bf16.mxu1 %v12617_v7 }
0x1bf8   :  { %12399 = vmatpush3.bf16.msra.mxu1 %v12789_v27 }
0x1bf9   :  { %10807 = vmatprep.subr.mxu1 %v12614_v0 }
0x1bfb   :  { %10770 = vmatmul.mubr.f32.vlgmr.msra.gmra.mrb[84].mxu1 %v7462_v28 }
0x1bfc   :  { %10808 = vmatpush3.msk.msra.mxu1 %vm75_vm0, %v14335_v34  ;;  %10809 = vmatprep.mubr.msk.f32.mxu1 %vm12615_vm2, %v12614_v0 }
0x1bfd   :  { %12448 = vmatprep.subr.bf16.mxu1 %v12617_v7 }
0x1bff   :  { %10810 = vmatmul.mubr.msk.f32.vlgmr.msra.gmra.mrb[86].mxu1 %vm71_vm1, %v13213_v40 }
0x1c00   :  { %12450 = vmatpush3.bf16.msra.mxu1 %v12804_v31  ;;  %10879 = vmatprep.mubr.msk.f32.mxu1 %vm12615_vm2, %v12614_v0 }
0x1c01   :  { %12451 = vmatprep.subr.bf16.mxu1 %v12617_v7 }
0x1c04   :  { %12453 = vmatpush3.bf16.msra.mxu1 %v12810_v33 }
0x1c05   :  { %12454 = vmatprep.subr.bf16.mxu1 %v12617_v7 }
0x1c08   :  { %12456 = vmatpush3.bf16.msra.mxu1 %v12820_v36 }
0x1c09   :  { %12457 = vmatprep.subr.bf16.mxu1 %v12617_v7 }
0x1c0c   :  { %12459 = vmatpush3.bf16.msra.mxu1 %v12830_v39 }
0x1c0d   :  { %12460 = vmatprep.subr.bf16.mxu1 %v12617_v7 }
0x1c10   :  { %12462 = vmatpush3.bf16.msra.mxu1 %v12840_v42 }
0x1c11   :  { %12463 = vmatprep.subr.bf16.mxu1 %v12617_v7 }
0x1c14   :  { %12465 = vmatpush3.bf16.msra.mxu1 %v12850_v45 }
0x1c15   :  { %12466 = vmatprep.subr.bf16.mxu1 %v12617_v7 }
0x1c18   :  { %12468 = vmatpush3.bf16.msra.mxu1 %v12860_v48 }
0x1c19   :  { %12469 = vmatprep.subr.bf16.mxu1 %v12617_v7 }
0x1c1c   :  { %12471 = vmatpush3.bf16.msra.mxu1 %v12899_v57 }
0x1c1d   :  { %12472 = vmatprep.subr.bf16.mxu1 %v12617_v7 }
0x1c2b   :  { %v6179_v40 = vpop.permute.xlu0 %6178 }
0x1c2c   :  { %7454 = vst.msk [vmem:[%s14614_s7 + $0x8] sm:$0xff] %vm6181_vm15, %v6179_v40 }
0x1cae   :  { %v6399_v23 = vpop.f32.mrb[82].mxu1 }
0x1caf   :  { %v6400_v55 = vadd.f32 %v14058_v2, %v6399_v23  ;;  %v10731_v25 = vpop.f32.mrb[83].mxu1 }
0x1cb1   :  { %6404 = vrot.lane.b32.xlu1 %v6400_v55, %s14624_s30 }
0x1cce   :  { %v6553_v16 = vpop.f32.mrb[84].mxu1 }
0x1ccf   :  { %v6554_v13 = vadd.f32 %v14475_v60, %v6553_v16  ;;  %v10771_v35 = vpop.f32.mrb[85].mxu1 }
0x1cd1   :  { %v7463_v44 = vclamps-f32 %v6554_v13, 5.0 }
0x1cd2   :  { %v6707_v19 = vpop.f32.mrb[86].mxu1 }
0x1cd3   :  { %10805 = vmatmul.mubr.f32.vlgmr.msra.gmra.mrb[86].mxu0 %v7463_v44  ;;  %v10811_v26 = vpop.f32.mrb[87].mxu1  ;;  %v6708_v29 = vadd.f32 %v14435_v6, %v6707_v19 }
0x1cd4   :  { %12426 = vmatpush3.bf16.msra.mxu0 %v12720_v8  ;;  %10844 = vmatprep.mubr.msk.f32.mxu0 %vm12615_vm2, %v12614_v0 }
0x1cd5   :  { %12427 = vmatprep.subr.bf16.mxu0 %v12617_v7  ;;  %v7467_v54 = vclamps-f32 %v6708_v29, 5.0 }
0x1cd8   :  { %12429 = vmatpush3.bf16.msra.mxu0 %v12726_v9 }
0x1cd9   :  { %12430 = vmatprep.subr.bf16.mxu0 %v12617_v7 }
0x1cdc   :  { %12432 = vmatpush3.bf16.msra.mxu0 %v12738_v12 }
0x1cdd   :  { %12433 = vmatprep.subr.bf16.mxu0 %v12617_v7 }
0x1ce0   :  { %12435 = vmatpush3.bf16.msra.mxu0 %v12748_v15 }
0x1ce1   :  { %12436 = vmatprep.subr.bf16.mxu0 %v12617_v7 }
0x1ce4   :  { %12438 = vmatpush3.bf16.msra.mxu0 %v12758_v18 }
0x1ce5   :  { %12439 = vmatprep.subr.bf16.mxu0 %v12617_v7 }
0x1ce8   :  { %12441 = vmatpush3.bf16.msra.mxu0 %v12768_v21 }
0x1ce9   :  { %12442 = vmatprep.subr.bf16.mxu0 %v12617_v7 }
0x1cec   :  { %12444 = vmatpush3.bf16.msra.mxu0 %v12778_v24 }
0x1ced   :  { %12445 = vmatprep.subr.bf16.mxu0 %v12617_v7 }
0x1cf0   :  { %12447 = vmatpush3.bf16.msra.mxu0 %v12789_v27 }
0x1cf1   :  { %10882 = vmatprep.subr.mxu0 %v12614_v0 }
0x1cf3   :  { %10845 = vmatmul.mubr.f32.vlgmr.msra.gmra.mrb[88].mxu0 %v7467_v54 }
0x1cf4   :  { %10883 = vmatpush3.msk.msra.mxu0 %vm75_vm0, %v14335_v34  ;;  %10884 = vmatprep.mubr.msk.f32.mxu0 %vm12615_vm2, %v12614_v0 }
0x1cf5   :  { %12496 = vmatprep.subr.bf16.mxu0 %v12617_v7 }
0x1cf7   :  { %10885 = vmatmul.mubr.msk.f32.vlgmr.msra.gmra.mrb[90].mxu0 %vm71_vm1, %v13140_v62 }
0x1cf8   :  { %12498 = vmatpush3.bf16.msra.mxu0 %v12804_v31  ;;  %10954 = vmatprep.mubr.msk.f32.mxu0 %vm12615_vm2, %v12614_v0 }
0x1cf9   :  { %12499 = vmatprep.subr.bf16.mxu0 %v12617_v7 }
0x1cfc   :  { %12501 = vmatpush3.bf16.msra.mxu0 %v12810_v33 }
0x1cfd   :  { %12502 = vmatprep.subr.bf16.mxu0 %v12617_v7 }
0x1d00   :  { %12504 = vmatpush3.bf16.msra.mxu0 %v12820_v36 }
0x1d01   :  { %12505 = vmatprep.subr.bf16.mxu0 %v12617_v7 }
0x1d04   :  { %12507 = vmatpush3.bf16.msra.mxu0 %v12830_v39 }
0x1d05   :  { %12508 = vmatprep.subr.bf16.mxu0 %v12617_v7 }
0x1d08   :  { %12510 = vmatpush3.bf16.msra.mxu0 %v12840_v42 }
0x1d09   :  { %12511 = vmatprep.subr.bf16.mxu0 %v12617_v7 }
0x1d0c   :  { %12513 = vmatpush3.bf16.msra.mxu0 %v12850_v45 }
0x1d0d   :  { %12514 = vmatprep.subr.bf16.mxu0 %v12617_v7 }
0x1d10   :  { %12516 = vmatpush3.bf16.msra.mxu0 %v12860_v48 }
0x1d11   :  { %12517 = vmatprep.subr.bf16.mxu0 %v12617_v7 }
0x1d14   :  { %12519 = vmatpush3.bf16.msra.mxu0 %v12899_v57 }
0x1d15   :  { %12520 = vmatprep.subr.bf16.mxu0 %v12617_v7 }
0x1d23   :  { %v6405_v62 = vpop.permute.xlu1 %6404 }
0x1d24   :  { %7459 = vst.msk [vmem:[%s14614_s7 + $0x8] sm:$0xff] %vm6407_vm3, %v6405_v62 }
0x1da6   :  { %v6625_v58 = vpop.f32.mrb[86].mxu0 }
0x1da7   :  { %v6626_v49 = vadd.f32 %v14058_v2, %v6625_v58  ;;  %v10806_v1 = vpop.f32.mrb[87].mxu0 }
0x1da9   :  { %6630 = vrot.lane.b32.xlu0 %v6626_v49, %s14625_s15 }
0x1dc6   :  { %v6779_v46 = vpop.f32.mrb[88].mxu0 }
0x1dc7   :  { %v6780_v38 = vadd.f32 %v14475_v60, %v6779_v46  ;;  %v10846_v43 = vpop.f32.mrb[89].mxu0 }
0x1dc9   :  { %v7468_v59 = vclamps-f32 %v6780_v38, 5.0 }
0x1dca   :  { %v6933_v53 = vpop.f32.mrb[90].mxu0 }
0x1dcb   :  { %10880 = vmatmul.mubr.f32.vlgmr.msra.gmra.mrb[88].mxu1 %v7468_v59  ;;  %v10886_v5 = vpop.f32.mrb[91].mxu0  ;;  %v6934_v2 = vadd.f32 %v14435_v6, %v6933_v53 }
0x1dcc   :  { %12474 = vmatpush3.bf16.msra.mxu1 %v12720_v8  ;;  %10919 = vmatprep.mubr.msk.f32.mxu1 %vm12615_vm2, %v12614_v0 }
0x1dcd   :  { %12475 = vmatprep.subr.bf16.mxu1 %v12617_v7  ;;  %v7472_v47 = vclamps-f32 %v6934_v2, 5.0 }
0x1dd0   :  { %12477 = vmatpush3.bf16.msra.mxu1 %v12726_v9 }
0x1dd1   :  { %12478 = vmatprep.subr.bf16.mxu1 %v12617_v7 }
0x1dd4   :  { %12480 = vmatpush3.bf16.msra.mxu1 %v12738_v12 }
0x1dd5   :  { %12481 = vmatprep.subr.bf16.mxu1 %v12617_v7 }
0x1dd8   :  { %12483 = vmatpush3.bf16.msra.mxu1 %v12748_v15 }
0x1dd9   :  { %12484 = vmatprep.subr.bf16.mxu1 %v12617_v7 }
0x1ddc   :  { %12486 = vmatpush3.bf16.msra.mxu1 %v12758_v18 }
0x1ddd   :  { %12487 = vmatprep.subr.bf16.mxu1 %v12617_v7 }
0x1de0   :  { %12489 = vmatpush3.bf16.msra.mxu1 %v12768_v21 }
0x1de1   :  { %12490 = vmatprep.subr.bf16.mxu1 %v12617_v7 }
0x1de4   :  { %12492 = vmatpush3.bf16.msra.mxu1 %v12778_v24 }
0x1de5   :  { %12493 = vmatprep.subr.bf16.mxu1 %v12617_v7 }
0x1de8   :  { %12495 = vmatpush3.bf16.msra.mxu1 %v12789_v27 }
0x1de9   :  { %10957 = vmatprep.subr.mxu1 %v12614_v0 }
0x1deb   :  { %10920 = vmatmul.mubr.f32.vlgmr.msra.gmra.mrb[90].mxu1 %v7472_v47 }
0x1dec   :  { %10958 = vmatpush3.msk.msra.mxu1 %vm75_vm0, %v14335_v34  ;;  %10959 = vmatprep.mubr.msk.f32.mxu1 %vm12615_vm2, %v12614_v0  ;;  %vm6633_vm0 = vcmask 950144  }
0x1ded   :  { %12544 = vmatprep.subr.bf16.mxu1 %v12617_v7 }
0x1def   :  { %10960 = vmatmul.mubr.msk.f32.vlgmr.msra.gmra.mrb[92].mxu1 %vm71_vm1, %v13215_v41  ;;  %vm6859_vm1 = vcmask 982944  }
0x1df0   :  { %12546 = vmatpush3.bf16.msra.mxu1 %v12804_v31  ;;  %11029 = vmatprep.mubr.msk.f32.mxu1 %vm12615_vm2, %v12614_v0 }
0x1df1   :  { %12547 = vmatprep.subr.bf16.mxu1 %v12617_v7 }
0x1df4   :  { %12549 = vmatpush3.bf16.msra.mxu1 %v12810_v33 }
0x1df5   :  { %12550 = vmatprep.subr.bf16.mxu1 %v12617_v7 }
0x1df8   :  { %12552 = vmatpush3.bf16.msra.mxu1 %v12820_v36  ;;  %v12613_v36 = vld [vmem:[%s14616_s6] ss:$0 sm:$0xff] }
0x1df9   :  { %12553 = vmatprep.subr.bf16.mxu1 %v12617_v7 }
0x1dfc   :  { %12555 = vmatpush3.bf16.msra.mxu1 %v12830_v39 }
0x1dfd   :  { %12556 = vmatprep.subr.bf16.mxu1 %v12617_v7 }
0x1e00   :  { %12558 = vmatpush3.bf16.msra.mxu1 %v12840_v42 }
0x1e01   :  { %12559 = vmatprep.subr.bf16.mxu1 %v12617_v7 }
0x1e04   :  { %12561 = vmatpush3.bf16.msra.mxu1 %v12850_v45 }
0x1e05   :  { %12562 = vmatprep.subr.bf16.mxu1 %v12617_v7 }
0x1e08   :  { %12564 = vmatpush3.bf16.msra.mxu1 %v12860_v48 }
0x1e09   :  { %12565 = vmatprep.subr.bf16.mxu1 %v12617_v7 }
0x1e0c   :  { %12567 = vmatpush3.bf16.msra.mxu1 %v12899_v57 }
0x1e1b   :  { %v6631_v31 = vpop.permute.xlu0 %6630 }
0x1e1c   :  { %7464 = vst.msk [vmem:[%s14614_s7 + $0x8] sm:$0xff] %vm6633_vm0, %v6631_v31 }
0x1e9e   :  { %v6851_v33 = vpop.f32.mrb[88].mxu1 }
0x1e9f   :  { %v6852_v39 = vadd.f32 %v12613_v36, %v6851_v33  ;;  %v10881_v42 = vpop.f32.mrb[89].mxu1 }
0x1ea1   :  { %6856 = vrot.lane.b32.xlu1 %v6852_v39, %s14626_s11 }
0x1ebe   :  { %v7005_v45 = vpop.f32.mrb[90].mxu1 }
0x1ebf   :  { %v7006_v48 = vadd.f32 %v14475_v60, %v7005_v45  ;;  %v10921_v41 = vpop.f32.mrb[91].mxu1 }
0x1ec1   :  { %v7473_v57 = vclamps-f32 %v7006_v48, 5.0 }
0x1ec2   :  { %v7159_v34 = vpop.f32.mrb[92].mxu1 }
0x1ec3   :  { %10955 = vmatmul.mubr.f32.vlgmr.msra.gmra.mrb[92].mxu0 %v7473_v57  ;;  %v10961_v52 = vpop.f32.mrb[93].mxu1 }
0x1ec4   :  { %12522 = vmatpush3.bf16.msra.mxu0 %v12720_v8  ;;  %10994 = vmatprep.mubr.msk.f32.mxu0 %vm12615_vm2, %v12614_v0  ;;  %v7160_v0 = vadd.f32 %v14435_v6, %v7159_v34  ;;  %vm7085_vm2 = vcmask 1015744  }
0x1ec5   :  { %12523 = vmatprep.subr.bf16.mxu0 %v12617_v7 }
0x1ec6   :  { %v7477_v8 = vclamps-f32 %v7160_v0, 5.0 }
0x1ec8   :  { %12525 = vmatpush3.bf16.msra.mxu0 %v12726_v9 }
0x1ec9   :  { %12526 = vmatprep.subr.bf16.mxu0 %v12617_v7 }
0x1ecc   :  { %12528 = vmatpush3.bf16.msra.mxu0 %v12738_v12 }
0x1ecd   :  { %12529 = vmatprep.subr.bf16.mxu0 %v12617_v7 }
0x1ed0   :  { %12531 = vmatpush3.bf16.msra.mxu0 %v12748_v15 }
0x1ed1   :  { %12532 = vmatprep.subr.bf16.mxu0 %v12617_v7 }
0x1ed4   :  { %12534 = vmatpush3.bf16.msra.mxu0 %v12758_v18 }
0x1ed5   :  { %12535 = vmatprep.subr.bf16.mxu0 %v12617_v7 }
0x1ed8   :  { %12537 = vmatpush3.bf16.msra.mxu0 %v12768_v21 }
0x1ed9   :  { %12538 = vmatprep.subr.bf16.mxu0 %v12617_v7 }
0x1edc   :  { %12540 = vmatpush3.bf16.msra.mxu0 %v12778_v24 }
0x1edd   :  { %12541 = vmatprep.subr.bf16.mxu0 %v12617_v7 }
0x1ee0   :  { %12543 = vmatpush3.bf16.msra.mxu0 %v12789_v27 }
0x1ee3   :  { %10995 = vmatmul.mubr.f32.vlgmr.msra.gmra.mrb[94].mxu0 %v7477_v8 }
0x1f13   :  { %v6857_v9 = vpop.permute.xlu1 %6856 }
0x1f14   :  { %7469 = vst.msk [vmem:[%s14614_s7 + $0x8] sm:$0xff] %vm6859_vm1, %v6857_v9 }
0x1f96   :  { %v7077_v12 = vpop.f32.mrb[92].mxu0 }
0x1f97   :  { %v7078_v15 = vadd.f32 %v12613_v36, %v7077_v12  ;;  %v10956_v18 = vpop.f32.mrb[93].mxu0 }
0x1f99   :  { %7082 = vrot.lane.b32.xlu0 %v7078_v15, %s14627_s28 }
0x1fb6   :  { %v7231_v21 = vpop.f32.mrb[94].mxu0 }
0x1fb7   :  { %v7232_v24 = vadd.f32 %v14475_v60, %v7231_v21  ;;  %v10996_v51 = vpop.f32.mrb[95].mxu0 }
0x1fb9   :  { %v7478_v7 = vclamps-f32 %v7232_v24, 5.0 }
0x1fbb   :  { %11030 = vmatmul.mubr.f32.vlgmr.msra.gmra.mrb[94].mxu1 %v7478_v7 }
0x200b   :  { %v7083_v27 = vpop.permute.xlu0 %7082 }
0x200c   :  { %7474 = vst.msk [vmem:[%s14614_s7 + $0x8] sm:$0xff] %vm7085_vm2, %v7083_v27 }
0x208e   :  { %v7303_v50 = vpop.f32.mrb[94].mxu1 }
0x208f   :  { %v7304_v32 = vadd.f32 %v12613_v36, %v7303_v50  ;;  %v11031_v63 = vpop.f32.mrb[95].mxu1 }
0x2091   :  { %7308 = vrot.lane.b32.xlu1 %v7304_v32, %s14628_s18 }
0x2103   :  { %v7309_v3 = vpop.permute.xlu1 %7308 }
0x2104   :  { %7479 = vst.msk [vmem:[%s14614_s7 + $0x8] sm:$0xff] %vm7311_vm4, %v7309_v3 }

</bundles_post_ra>
